<compile_context>
chip_gen: v7x
topology: tpu7x:2x2x1
jax: 0.10.0
libtpu: 0.0.40
codegen_flags: <defaults>
</compile_context>

<pallas_src>
import numpy as np
import jax
import jax.numpy as jnp
from jax.experimental import pallas as pl
from jax.experimental.pallas import tpu as pltpu

_MASK_NEG = -1e9


# ----------------------------- shared math helpers -----------------------------

def _layer_norm(x, g, b, eps=1e-5):
    # torch.nn.LayerNorm semantics: biased variance over last dim, eps inside sqrt.
    mu = jnp.mean(x, axis=-1, keepdims=True)
    xc = x - mu
    var = jnp.mean(xc * xc, axis=-1, keepdims=True)
    return xc * jax.lax.rsqrt(var + eps) * g + b


def _erf_poly_kernel(x):
    # Abramowitz & Stegun 7.1.26 rational erf approximation, |err| < ~1e-3 with the
    # approximate EUP reciprocal (well inside the 3e-2 test tolerance).
    a1, a2, a3, a4, a5 = 0.254829592, -0.284496736, 1.421413741, -1.453152027, 1.061405429
    p = 0.3275911
    sgn = jnp.where(x < 0.0, -1.0, 1.0)
    ax = jnp.abs(x)
    t = pl.reciprocal(1.0 + p * ax, approx=True)         # EUP, not VALU divide
    poly = ((((a5 * t + a4) * t + a3) * t + a2) * t + a1) * t
    return sgn * (1.0 - poly * jnp.exp(-ax * ax))


def _gelu_kernel(x):
    # torch F.gelu default = exact erf-GELU.
    return 0.5 * x * (1.0 + _erf_poly_kernel(x * 0.7071067811865476))


def _gelu_exact_ref(x):
    return 0.5 * x * (1.0 + jax.scipy.special.erf(x * 0.7071067811865476))


def _pad_lanes(arr, pad):
    if pad == 0:
        return arr
    return jnp.concatenate([arr, jnp.zeros((arr.shape[0], pad), arr.dtype)], axis=-1)


# ----------------------------- Pallas kernel -----------------------------

def _make_kernel(num_heads, head_dim, pad_a, pad_b):

    def _mha(q, k, v, mask):
        # q: (M, D), k/v: (N, D); mask: (M, N) block-diagonal additive mask over the
        # flattened batch, so one softmax over N gives exactly the per-batch result.
        outs = []
        for h in range(num_heads):            # small static loop; slices are lane slices
            sl = slice(h * head_dim, (h + 1) * head_dim)
            s = jnp.dot(q[:, sl], k[:, sl].T, preferred_element_type=jnp.float32) + mask
            s = s - jnp.max(s, axis=-1, keepdims=True)
            p = jnp.exp(s)
            p = p * pl.reciprocal(jnp.sum(p, axis=-1, keepdims=True), approx=True)
            outs.append(jnp.dot(p, v[:, sl], preferred_element_type=jnp.float32))
        return jnp.concatenate(outs, axis=-1)

    def kernel(x_ref, enc_ref, smask_ref, emask_ref,
               qw, qb, kw, kb, vw, vb, ow, ob,
               cqw, cqb, ckw, ckb, cvw, cvb, cow, cob,
               ln1g, ln1b, ln2g, ln2b, ln3g, ln3b,
               f1w, f1b, f2w, f2b,
               outA_ref, outB_ref):
        x = x_ref[...]          # (B*T, D)
        enc = enc_ref[...]      # (B*S, D)
        smask = smask_ref[...]  # (B*T, B*T) block-diagonal
        emask = emask_ref[...]  # (B*T, B*S) block-diagonal

        # ---- self attention (+ residual + task LayerNorm); scaling folded into qw/qb ----
        residual = x
        q = jnp.dot(x, qw[...], preferred_element_type=jnp.float32) + qb[...]
        k_self = jnp.dot(x, kw[...], preferred_element_type=jnp.float32) + kb[...]
        v_self = jnp.dot(x, vw[...], preferred_element_type=jnp.float32) + vb[...]
        a = _mha(q, k_self, v_self, smask)
        a = jnp.dot(a, ow[...], preferred_element_type=jnp.float32) + ob[...]
        x = _layer_norm(residual + a, ln1g[...], ln1b[...])

        # ---- cross attention (task-specific q_proj selected in wrapper) ----
        residual = x
        q = jnp.dot(x, cqw[...], preferred_element_type=jnp.float32) + cqb[...]
        k_cross = jnp.dot(enc, ckw[...], preferred_element_type=jnp.float32) + ckb[...]
        v_cross = jnp.dot(enc, cvw[...], preferred_element_type=jnp.float32) + cvb[...]
        a = _mha(q, k_cross, v_cross, emask)
        a = jnp.dot(a, cow[...], preferred_element_type=jnp.float32) + cob[...]
        x = _layer_norm(residual + a, ln2g[...], ln2b[...])

        # ---- feed-forward (fc1 -> gelu -> fc2) + residual + task LayerNorm ----
        residual = x
        hmid = _gelu_kernel(
            jnp.dot(x, f1w[...], preferred_element_type=jnp.float32) + f1b[...])
        hout = jnp.dot(hmid, f2w[...], preferred_element_type=jnp.float32) + f2b[...]
        x = _layer_norm(residual + hout, ln3g[...], ln3b[...])

        # ---- lane-dense packed writeback ----
        outA_ref[...] = _pad_lanes(jnp.concatenate([x, k_self, v_self], axis=-1), pad_a)
        outB_ref[...] = _pad_lanes(jnp.concatenate([k_cross, v_cross], axis=-1), pad_b)

    return kernel


# ----------------------------- wrapper -----------------------------

def fold_q_scaling(params, num_heads=4):
    """Parameter-prep (once, outside the hot path): fold head_dim**-0.5 into q projections."""
    D = params["self_q_w"].shape[0]
    scaling = float(D // num_heads) ** -0.5
    p = dict(params)
    p["self_q_w"] = params["self_q_w"] * scaling
    p["self_q_b"] = params["self_q_b"] * scaling
    p["cross_q_w"] = {k: v * scaling for k, v in params["cross_q_w"].items()}
    p["cross_q_b"] = {k: v * scaling for k, v in params["cross_q_b"].items()}
    return p


def _block_diag_mask(mask):
    """(B, Tq, Tk) additive mask -> (B*Tq, B*Tk) block-diagonal additive mask."""
    B, Tq, Tk = mask.shape
    same = jnp.eye(B, dtype=bool)[:, None, :, None]                 # (B,1,B,1)
    full = jnp.where(same, mask[:, :, None, :], jnp.float32(_MASK_NEG))
    return full.reshape(B * Tq, B * Tk)


def stylized_decoder_layer(hidden_states, attention_mask, encoder_hidden_states,
                           encoder_attention_mask, params, task_id=0, num_heads=4):
    """Returns (hidden_states, present_key_value) like the torch module with
    use_cache=True, output_attentions=False, no past_key_value, eval mode.
    `params` must have the q scaling already folded in (see fold_q_scaling)."""
    B, T, D = hidden_states.shape
    S = encoder_hidden_states.shape[1]
    assert D % num_heads == 0
    head_dim = D // num_heads
    tid = str(task_id)
    w = params

    # (B,1,T,L) torch masks -> flattened block-diagonal additive masks (glue, wrapper-side)
    smask_full = _block_diag_mask(attention_mask[:, 0].astype(jnp.float32))         # (B*T, B*T)
    emask_full = _block_diag_mask(encoder_attention_mask[:, 0].astype(jnp.float32))  # (B*T, B*S)

    x2d = hidden_states.reshape(B * T, D).astype(jnp.float32)
    enc2d = encoder_hidden_states.reshape(B * S, D).astype(jnp.float32)

    weights = (
        w["self_q_w"], w["self_q_b"], w["self_k_w"], w["self_k_b"],
        w["self_v_w"], w["self_v_b"], w["self_o_w"], w["self_o_b"],
        w["cross_q_w"][tid], w["cross_q_b"][tid], w["cross_k_w"], w["cross_k_b"],
        w["cross_v_w"], w["cross_v_b"], w["cross_o_w"], w["cross_o_b"],
        w["ln1_g"][tid], w["ln1_b"][tid], w["ln2_g"][tid], w["ln2_b"][tid],
        w["ln3_g"][tid], w["ln3_b"][tid],
        w["fc1_w"], w["fc1_b"], w["fc2_w"], w["fc2_b"],
    )

    # lane-dense packed outputs: pad last dim up to a multiple of 128
    pad_a = (-(3 * D)) % 128
    pad_b = (-(2 * D)) % 128
    WA, WB = 3 * D + pad_a, 2 * D + pad_b

    def full_spec(shape):
        nd = len(shape)
        return pl.BlockSpec(shape, lambda *_: (0,) * nd)

    inputs = (x2d, enc2d, smask_full, emask_full) + weights
    in_specs = [full_spec(a.shape) for a in inputs]
    out_shape = (jax.ShapeDtypeStruct((B * T, WA), jnp.float32),
                 jax.ShapeDtypeStruct((B * S, WB), jnp.float32))
    out_specs = (full_spec((B * T, WA)), full_spec((B * S, WB)))

    kernel = _make_kernel(num_heads, head_dim, pad_a, pad_b)
    outA, outB = pl.pallas_call(
        kernel,
        grid=(1,),
        in_specs=in_specs,
        out_specs=out_specs,
        out_shape=out_shape,
        compiler_params=pltpu.CompilerParams(dimension_semantics=("arbitrary",)),
    )(*inputs)

    hs = outA[:, :D].reshape(B, T, D)
    k_self = outA[:, D:2 * D]
    v_self = outA[:, 2 * D:3 * D]
    k_cross = outB[:, :D]
    v_cross = outB[:, D:2 * D]

    # TODO(synk): at production sizes emit the KV cache in bf16 / pre-transposed layout
    # inside the kernel; here the reshape/transpose is a tiny wrapper-side XLA op.
    def to_heads(t, L):
        return t.reshape(B, L, num_heads, head_dim).transpose(0, 2, 1, 3)

    present_key_value = (to_heads(k_self, T), to_heads(v_self, T),
                         to_heads(k_cross, S), to_heads(v_cross, S))
    return hs, present_key_value


# ----------------------------- params (deterministic synthetic init) -----------------------------

def init_params(key, D, F_dim, num_tasks=4):
    keys = list(jax.random.split(key, 32))
    it = iter(keys)

    def lin(kk, din, dout):
        kw, kb = jax.random.split(kk)
        return (0.05 * jax.random.normal(kw, (din, dout), jnp.float32),
                0.02 * jax.random.normal(kb, (1, dout), jnp.float32))

    p = {}
    p["self_q_w"], p["self_q_b"] = lin(next(it), D, D)
    p["self_k_w"], p["self_k_b"] = lin(next(it), D, D)
    p["self_v_w"], p["self_v_b"] = lin(next(it), D, D)
    p["self_o_w"], p["self_o_b"] = lin(next(it), D, D)
    p["cross_k_w"], p["cross_k_b"] = lin(next(it), D, D)
    p["cross_v_w"], p["cross_v_b"] = lin(next(it), D, D)
    p["cross_o_w"], p["cross_o_b"] = lin(next(it), D, D)
    p["fc1_w"], p["fc1_b"] = lin(next(it), D, F_dim)
    p["fc2_w"], p["fc2_b"] = lin(next(it), F_dim, D)

    p["cross_q_w"], p["cross_q_b"] = {}, {}
    for t in range(num_tasks):  # q_proj_dict: one q_proj per task
        wq, bq = lin(next(it), D, D)
        p["cross_q_w"][str(t)], p["cross_q_b"][str(t)] = wq, bq

    for name in ("ln1", "ln2", "ln3"):  # task-specific LayerNorm dicts
        p[name + "_g"], p[name + "_b"] = {}, {}
        for t in range(num_tasks):
            kg, kb = jax.random.split(next(it))
            p[name + "_g"][str(t)] = 1.0 + 0.1 * jax.random.normal(kg, (1, D), jnp.float32)
            p[name + "_b"][str(t)] = 0.1 * jax.random.normal(kb, (1, D), jnp.float32)
    return p


# ----------------------------- pure-JAX reference -----------------------------

def reference(hidden_states, attention_mask, encoder_hidden_states,
              encoder_attention_mask, params, task_id=0, num_heads=4):
    B, T, D = hidden_states.shape
    head_dim = D // num_heads
    scaling = float(head_dim) ** -0.5
    tid = str(task_id)
    w = params

    def shape_heads(t, L):
        return t.reshape(B, L, num_heads, head_dim).transpose(0, 2, 1, 3)

    def attn(x, kvx, qw, qb, kw_, kb_, vw, vb, ow, ob, mask):
        Lq, Lk = x.shape[1], kvx.shape[1]
        q = (x @ qw + qb) * scaling
        k = kvx @ kw_ + kb_
        v = kvx @ vw + vb
        qh, kh, vh = shape_heads(q, Lq), shape_heads(k, Lk), shape_heads(v, Lk)
        s = jnp.einsum("bhqd,bhkd->bhqk", qh, kh) + mask  # mask (B,1,Lq,Lk)
        p = jax.nn.softmax(s, axis=-1)
        o = jnp.einsum("bhqk,bhkd->bhqd", p, vh)
        return o.transpose(0, 2, 1, 3).reshape(B, Lq, D) @ ow + ob

    x = hidden_states
    residual = x
    a = attn(x, x, w["self_q_w"], w["self_q_b"], w["self_k_w"], w["self_k_b"],
             w["self_v_w"], w["self_v_b"], w["self_o_w"], w["self_o_b"], attention_mask)
    x = _layer_norm(residual + a, w["ln1_g"][tid], w["ln1_b"][tid])
    residual = x
    a = attn(x, encoder_hidden_states, w["cross_q_w"][tid], w["cross_q_b"][tid],
             w["cross_k_w"], w["cross_k_b"], w["cross_v_w"], w["cross_v_b"],
             w["cross_o_w"], w["cross_o_b"], encoder_attention_mask)
    x = _layer_norm(residual + a, w["ln2_g"][tid], w["ln2_b"][tid])
    residual = x
    h = _gelu_exact_ref(x @ w["fc1_w"] + w["fc1_b"])
    h = h @ w["fc2_w"] + w["fc2_b"]
    x = _layer_norm(residual + h, w["ln3_g"][tid], w["ln3_b"][tid])
    return x


# ----------------------------- main -----------------------------

if __name__ == "__main__":
    # small BART-like config: d_model=32, heads=4, ffn=64, tgt=8, src=16, batch=2
    B, T, S, D, H, F_dim = 2, 8, 16, 32, 4, 64
    key = jax.random.PRNGKey(0)
    k1, k2, kp = jax.random.split(key, 3)
    hidden_states = jax.random.normal(k1, (B, T, D), jnp.float32)
    encoder_hidden_states = jax.random.normal(k2, (B, S, D), jnp.float32)
    params = init_params(kp, D, F_dim)
    kernel_params = fold_q_scaling(params, num_heads=H)   # parameter-prep, outside hot path

    # causal additive self-attn mask, torch shape (B, 1, T, T)
    causal = jnp.where(jnp.arange(T)[:, None] >= jnp.arange(T)[None, :], 0.0, _MASK_NEG)
    attention_mask = jnp.broadcast_to(causal, (B, 1, T, T)).astype(jnp.float32)
    # encoder padding mask (B, 1, T, S): mask last 4 encoder positions of batch 1
    enc_valid = jnp.ones((B, S), jnp.float32).at[1, 12:].set(0.0)
    encoder_attention_mask = jnp.broadcast_to(
        ((1.0 - enc_valid) * _MASK_NEG)[:, None, None, :], (B, 1, T, S)).astype(jnp.float32)

    # TODO(synk): dropout layers are identity here (eval mode); training-mode dropout
    # would need pltpu PRNG inside the kernel.
    out, present_kv = stylized_decoder_layer(
        hidden_states, attention_mask, encoder_hidden_states, encoder_attention_mask,
        kernel_params, task_id=0, num_heads=H)
    out = jax.block_until_ready(out)

    ref = reference(hidden_states, attention_mask, encoder_hidden_states,
                    encoder_attention_mask, params, task_id=0, num_heads=H)

    assert out.shape == (B, T, D)
    assert present_kv[0].shape == (B, H, T, D // H)
    assert present_kv[2].shape == (B, H, S, D // H)
    np.testing.assert_allclose(np.asarray(out), np.asarray(ref), rtol=3e-2, atol=3e-2)

    # sanity-check the KV cache outputs against direct projections
    k_self_ref = (hidden_states @ params["self_k_w"] + params["self_k_b"]
                  ).reshape(B, T, H, D // H).transpose(0, 2, 1, 3)
    v_cross_ref = (encoder_hidden_states @ params["cross_v_w"] + params["cross_v_b"]
                   ).reshape(B, S, H, D // H).transpose(0, 2, 1, 3)
    np.testing.assert_allclose(np.asarray(present_kv[0]), np.asarray(k_self_ref),
                               rtol=3e-2, atol=3e-2)
    np.testing.assert_allclose(np.asarray(present_kv[3]), np.asarray(v_cross_ref),
                               rtol=3e-2, atol=3e-2)
    print("KERNEL_OK")
</pallas_src>

<mosaic_0001>
module attributes {stable_mosaic.version = 11 : i64} {
  func.func @kernel(%arg0: i32, %arg1: memref<16x32xf32, #tpu.memory_space<vmem>>, %arg2: memref<32x32xf32, #tpu.memory_space<vmem>>, %arg3: memref<16x16xf32, #tpu.memory_space<vmem>>, %arg4: memref<16x32xf32, #tpu.memory_space<vmem>>, %arg5: memref<32x32xf32, #tpu.memory_space<vmem>>, %arg6: memref<1x32xf32, #tpu.memory_space<vmem>>, %arg7: memref<32x32xf32, #tpu.memory_space<vmem>>, %arg8: memref<1x32xf32, #tpu.memory_space<vmem>>, %arg9: memref<32x32xf32, #tpu.memory_space<vmem>>, %arg10: memref<1x32xf32, #tpu.memory_space<vmem>>, %arg11: memref<32x32xf32, #tpu.memory_space<vmem>>, %arg12: memref<1x32xf32, #tpu.memory_space<vmem>>, %arg13: memref<32x32xf32, #tpu.memory_space<vmem>>, %arg14: memref<1x32xf32, #tpu.memory_space<vmem>>, %arg15: memref<32x32xf32, #tpu.memory_space<vmem>>, %arg16: memref<1x32xf32, #tpu.memory_space<vmem>>, %arg17: memref<32x32xf32, #tpu.memory_space<vmem>>, %arg18: memref<1x32xf32, #tpu.memory_space<vmem>>, %arg19: memref<32x32xf32, #tpu.memory_space<vmem>>, %arg20: memref<1x32xf32, #tpu.memory_space<vmem>>, %arg21: memref<1x32xf32, #tpu.memory_space<vmem>>, %arg22: memref<1x32xf32, #tpu.memory_space<vmem>>, %arg23: memref<1x32xf32, #tpu.memory_space<vmem>>, %arg24: memref<1x32xf32, #tpu.memory_space<vmem>>, %arg25: memref<1x32xf32, #tpu.memory_space<vmem>>, %arg26: memref<1x32xf32, #tpu.memory_space<vmem>>, %arg27: memref<32x64xf32, #tpu.memory_space<vmem>>, %arg28: memref<1x64xf32, #tpu.memory_space<vmem>>, %arg29: memref<64x32xf32, #tpu.memory_space<vmem>>, %arg30: memref<1x32xf32, #tpu.memory_space<vmem>>, %arg31: memref<16x128xf32, #tpu.memory_space<vmem>>, %arg32: memref<32x128xf32, #tpu.memory_space<vmem>>) attributes {dimension_semantics = [#tpu.dimension_semantics<arbitrary>], iteration_bounds = array<i64: 1>, scalar_prefetch = 0 : i64, scratch_operands = 0 : i64, tpu.core_type = #tpu.core_type<tc>, window_params = [{pipeline_mode = #tpu.pipeline_mode<synchronous>, transform_indices = @transform_0, window_bounds = array<i64: 16, 32>}, {pipeline_mode = #tpu.pipeline_mode<synchronous>, transform_indices = @transform_1, window_bounds = array<i64: 32, 32>}, {pipeline_mode = #tpu.pipeline_mode<synchronous>, transform_indices = @transform_2, window_bounds = array<i64: 16, 16>}, {pipeline_mode = #tpu.pipeline_mode<synchronous>, transform_indices = @transform_3, window_bounds = array<i64: 16, 32>}, {pipeline_mode = #tpu.pipeline_mode<synchronous>, transform_indices = @transform_4, window_bounds = array<i64: 32, 32>}, {pipeline_mode = #tpu.pipeline_mode<synchronous>, transform_indices = @transform_5, window_bounds = array<i64: 1, 32>}, {pipeline_mode = #tpu.pipeline_mode<synchronous>, transform_indices = @transform_6, window_bounds = array<i64: 32, 32>}, {pipeline_mode = #tpu.pipeline_mode<synchronous>, transform_indices = @transform_7, window_bounds = array<i64: 1, 32>}, {pipeline_mode = #tpu.pipeline_mode<synchronous>, transform_indices = @transform_8, window_bounds = array<i64: 32, 32>}, {pipeline_mode = #tpu.pipeline_mode<synchronous>, transform_indices = @transform_9, window_bounds = array<i64: 1, 32>}, {pipeline_mode = #tpu.pipeline_mode<synchronous>, transform_indices = @transform_10, window_bounds = array<i64: 32, 32>}, {pipeline_mode = #tpu.pipeline_mode<synchronous>, transform_indices = @transform_11, window_bounds = array<i64: 1, 32>}, {pipeline_mode = #tpu.pipeline_mode<synchronous>, transform_indices = @transform_12, window_bounds = array<i64: 32, 32>}, {pipeline_mode = #tpu.pipeline_mode<synchronous>, transform_indices = @transform_13, window_bounds = array<i64: 1, 32>}, {pipeline_mode = #tpu.pipeline_mode<synchronous>, transform_indices = @transform_14, window_bounds = array<i64: 32, 32>}, {pipeline_mode = #tpu.pipeline_mode<synchronous>, transform_indices = @transform_15, window_bounds = array<i64: 1, 32>}, {pipeline_mode = #tpu.pipeline_mode<synchronous>, transform_indices = @transform_16, window_bounds = array<i64: 32, 32>}, {pipeline_mode = #tpu.pipeline_mode<synchronous>, transform_indices = @transform_17, window_bounds = array<i64: 1, 32>}, {pipeline_mode = #tpu.pipeline_mode<synchronous>, transform_indices = @transform_18, window_bounds = array<i64: 32, 32>}, {pipeline_mode = #tpu.pipeline_mode<synchronous>, transform_indices = @transform_19, window_bounds = array<i64: 1, 32>}, {pipeline_mode = #tpu.pipeline_mode<synchronous>, transform_indices = @transform_20, window_bounds = array<i64: 1, 32>}, {pipeline_mode = #tpu.pipeline_mode<synchronous>, transform_indices = @transform_21, window_bounds = array<i64: 1, 32>}, {pipeline_mode = #tpu.pipeline_mode<synchronous>, transform_indices = @transform_22, window_bounds = array<i64: 1, 32>}, {pipeline_mode = #tpu.pipeline_mode<synchronous>, transform_indices = @transform_23, window_bounds = array<i64: 1, 32>}, {pipeline_mode = #tpu.pipeline_mode<synchronous>, transform_indices = @transform_24, window_bounds = array<i64: 1, 32>}, {pipeline_mode = #tpu.pipeline_mode<synchronous>, transform_indices = @transform_25, window_bounds = array<i64: 1, 32>}, {pipeline_mode = #tpu.pipeline_mode<synchronous>, transform_indices = @transform_26, window_bounds = array<i64: 32, 64>}, {pipeline_mode = #tpu.pipeline_mode<synchronous>, transform_indices = @transform_27, window_bounds = array<i64: 1, 64>}, {pipeline_mode = #tpu.pipeline_mode<synchronous>, transform_indices = @transform_28, window_bounds = array<i64: 64, 32>}, {pipeline_mode = #tpu.pipeline_mode<synchronous>, transform_indices = @transform_29, window_bounds = array<i64: 1, 32>}, {pipeline_mode = #tpu.pipeline_mode<synchronous>, transform_indices = @transform_30, window_bounds = array<i64: 16, 128>}, {pipeline_mode = #tpu.pipeline_mode<synchronous>, transform_indices = @transform_31, window_bounds = array<i64: 32, 128>}]} {
    %c0 = arith.constant 0 : index
    %c0_0 = arith.constant 0 : index
    %0 = vector.load %arg1[%c0, %c0_0] : memref<16x32xf32, #tpu.memory_space<vmem>>, vector<16x32xf32>
    %c0_1 = arith.constant 0 : index
    %c0_2 = arith.constant 0 : index
    %1 = vector.load %arg2[%c0_1, %c0_2] : memref<32x32xf32, #tpu.memory_space<vmem>>, vector<32x32xf32>
    %c0_3 = arith.constant 0 : index
    %c0_4 = arith.constant 0 : index
    %2 = vector.load %arg3[%c0_3, %c0_4] : memref<16x16xf32, #tpu.memory_space<vmem>>, vector<16x16xf32>
    %c0_5 = arith.constant 0 : index
    %c0_6 = arith.constant 0 : index
    %3 = vector.load %arg4[%c0_5, %c0_6] : memref<16x32xf32, #tpu.memory_space<vmem>>, vector<16x32xf32>
    %c0_7 = arith.constant 0 : index
    %c0_8 = arith.constant 0 : index
    %4 = vector.load %arg5[%c0_7, %c0_8] : memref<32x32xf32, #tpu.memory_space<vmem>>, vector<32x32xf32>
    %cst = arith.constant dense<0.000000e+00> : vector<16x32xf32>
    %5 = tpu.matmul %0, %4, %cst {dimension_numbers = #tpu.dot_dimension_numbers<[1], [0], [0], [1], [0, 0, 1, 1], [], []>} : vector<16x32xf32>, vector<32x32xf32>, vector<16x32xf32> -> vector<16x32xf32>
    %c0_9 = arith.constant 0 : index
    %c0_10 = arith.constant 0 : index
    %6 = vector.load %arg6[%c0_9, %c0_10] : memref<1x32xf32, #tpu.memory_space<vmem>>, vector<1x32xf32>
    %7 = vector.broadcast %6 : vector<1x32xf32> to vector<16x32xf32>
    %8 = arith.addf %5, %7 : vector<16x32xf32>
    %c0_11 = arith.constant 0 : index
    %c0_12 = arith.constant 0 : index
    %9 = vector.load %arg7[%c0_11, %c0_12] : memref<32x32xf32, #tpu.memory_space<vmem>>, vector<32x32xf32>
    %cst_13 = arith.constant dense<0.000000e+00> : vector<16x32xf32>
    %10 = tpu.matmul %0, %9, %cst_13 {dimension_numbers = #tpu.dot_dimension_numbers<[1], [0], [0], [1], [0, 0, 1, 1], [], []>} : vector<16x32xf32>, vector<32x32xf32>, vector<16x32xf32> -> vector<16x32xf32>
    %c0_14 = arith.constant 0 : index
    %c0_15 = arith.constant 0 : index
    %11 = vector.load %arg8[%c0_14, %c0_15] : memref<1x32xf32, #tpu.memory_space<vmem>>, vector<1x32xf32>
    %12 = vector.broadcast %11 : vector<1x32xf32> to vector<16x32xf32>
    %13 = arith.addf %10, %12 : vector<16x32xf32>
    %c0_16 = arith.constant 0 : index
    %c0_17 = arith.constant 0 : index
    %14 = vector.load %arg9[%c0_16, %c0_17] : memref<32x32xf32, #tpu.memory_space<vmem>>, vector<32x32xf32>
    %cst_18 = arith.constant dense<0.000000e+00> : vector<16x32xf32>
    %15 = tpu.matmul %0, %14, %cst_18 {dimension_numbers = #tpu.dot_dimension_numbers<[1], [0], [0], [1], [0, 0, 1, 1], [], []>} : vector<16x32xf32>, vector<32x32xf32>, vector<16x32xf32> -> vector<16x32xf32>
    %c0_19 = arith.constant 0 : index
    %c0_20 = arith.constant 0 : index
    %16 = vector.load %arg10[%c0_19, %c0_20] : memref<1x32xf32, #tpu.memory_space<vmem>>, vector<1x32xf32>
    %17 = vector.broadcast %16 : vector<1x32xf32> to vector<16x32xf32>
    %18 = arith.addf %15, %17 : vector<16x32xf32>
    %19 = vector.extract_strided_slice %8 {offsets = [0, 0], sizes = [16, 8], strides = [1, 1]} : vector<16x32xf32> to vector<16x8xf32>
    %20 = vector.extract_strided_slice %13 {offsets = [0, 0], sizes = [16, 8], strides = [1, 1]} : vector<16x32xf32> to vector<16x8xf32>
    %21 = tpu.transpose %20, [1, 0] : vector<16x8xf32> -> vector<8x16xf32>
    %cst_21 = arith.constant dense<0.000000e+00> : vector<16x16xf32>
    %22 = tpu.matmul %19, %21, %cst_21 {dimension_numbers = #tpu.dot_dimension_numbers<[1], [0], [0], [1], [0, 0, 1, 1], [], []>} : vector<16x8xf32>, vector<8x16xf32>, vector<16x16xf32> -> vector<16x16xf32>
    %23 = arith.addf %22, %2 : vector<16x16xf32>
    %cst_22 = arith.constant dense<0xFF800000> : vector<16xf32>
    %24 = vector.multi_reduction <maximumf>, %23, %cst_22 [1] : vector<16x16xf32> to vector<16xf32>
    %25 = vector.shape_cast %24 : vector<16xf32> to vector<16x1xf32>
    %26 = vector.broadcast %25 : vector<16x1xf32> to vector<16x16xf32>
    %27 = arith.subf %23, %26 : vector<16x16xf32>
    %28 = math.exp %27 : vector<16x16xf32>
    %cst_23 = arith.constant dense<0.000000e+00> : vector<16xf32>
    %29 = vector.multi_reduction <add>, %28, %cst_23 [1] : vector<16x16xf32> to vector<16xf32>
    %30 = vector.shape_cast %29 : vector<16xf32> to vector<16x1xf32>
    %31 = tpu.reciprocal %30 {approx = true} : vector<16x1xf32> -> vector<16x1xf32>
    %32 = vector.broadcast %31 : vector<16x1xf32> to vector<16x16xf32>
    %33 = arith.mulf %28, %32 : vector<16x16xf32>
    %34 = vector.extract_strided_slice %18 {offsets = [0, 0], sizes = [16, 8], strides = [1, 1]} : vector<16x32xf32> to vector<16x8xf32>
    %cst_24 = arith.constant dense<0.000000e+00> : vector<16x8xf32>
    %35 = tpu.matmul %33, %34, %cst_24 {dimension_numbers = #tpu.dot_dimension_numbers<[1], [0], [0], [1], [0, 0, 1, 1], [], []>} : vector<16x16xf32>, vector<16x8xf32>, vector<16x8xf32> -> vector<16x8xf32>
    %36 = vector.extract_strided_slice %8 {offsets = [0, 8], sizes = [16, 8], strides = [1, 1]} : vector<16x32xf32> to vector<16x8xf32>
    %37 = vector.extract_strided_slice %13 {offsets = [0, 8], sizes = [16, 8], strides = [1, 1]} : vector<16x32xf32> to vector<16x8xf32>
    %38 = tpu.transpose %37, [1, 0] : vector<16x8xf32> -> vector<8x16xf32>
    %cst_25 = arith.constant dense<0.000000e+00> : vector<16x16xf32>
    %39 = tpu.matmul %36, %38, %cst_25 {dimension_numbers = #tpu.dot_dimension_numbers<[1], [0], [0], [1], [0, 0, 1, 1], [], []>} : vector<16x8xf32>, vector<8x16xf32>, vector<16x16xf32> -> vector<16x16xf32>
    %40 = arith.addf %39, %2 : vector<16x16xf32>
    %cst_26 = arith.constant dense<0xFF800000> : vector<16xf32>
    %41 = vector.multi_reduction <maximumf>, %40, %cst_26 [1] : vector<16x16xf32> to vector<16xf32>
    %42 = vector.shape_cast %41 : vector<16xf32> to vector<16x1xf32>
    %43 = vector.broadcast %42 : vector<16x1xf32> to vector<16x16xf32>
    %44 = arith.subf %40, %43 : vector<16x16xf32>
    %45 = math.exp %44 : vector<16x16xf32>
    %cst_27 = arith.constant dense<0.000000e+00> : vector<16xf32>
    %46 = vector.multi_reduction <add>, %45, %cst_27 [1] : vector<16x16xf32> to vector<16xf32>
    %47 = vector.shape_cast %46 : vector<16xf32> to vector<16x1xf32>
    %48 = tpu.reciprocal %47 {approx = true} : vector<16x1xf32> -> vector<16x1xf32>
    %49 = vector.broadcast %48 : vector<16x1xf32> to vector<16x16xf32>
    %50 = arith.mulf %45, %49 : vector<16x16xf32>
    %51 = vector.extract_strided_slice %18 {offsets = [0, 8], sizes = [16, 8], strides = [1, 1]} : vector<16x32xf32> to vector<16x8xf32>
    %cst_28 = arith.constant dense<0.000000e+00> : vector<16x8xf32>
    %52 = tpu.matmul %50, %51, %cst_28 {dimension_numbers = #tpu.dot_dimension_numbers<[1], [0], [0], [1], [0, 0, 1, 1], [], []>} : vector<16x16xf32>, vector<16x8xf32>, vector<16x8xf32> -> vector<16x8xf32>
    %53 = vector.extract_strided_slice %8 {offsets = [0, 16], sizes = [16, 8], strides = [1, 1]} : vector<16x32xf32> to vector<16x8xf32>
    %54 = vector.extract_strided_slice %13 {offsets = [0, 16], sizes = [16, 8], strides = [1, 1]} : vector<16x32xf32> to vector<16x8xf32>
    %55 = tpu.transpose %54, [1, 0] : vector<16x8xf32> -> vector<8x16xf32>
    %cst_29 = arith.constant dense<0.000000e+00> : vector<16x16xf32>
    %56 = tpu.matmul %53, %55, %cst_29 {dimension_numbers = #tpu.dot_dimension_numbers<[1], [0], [0], [1], [0, 0, 1, 1], [], []>} : vector<16x8xf32>, vector<8x16xf32>, vector<16x16xf32> -> vector<16x16xf32>
    %57 = arith.addf %56, %2 : vector<16x16xf32>
    %cst_30 = arith.constant dense<0xFF800000> : vector<16xf32>
    %58 = vector.multi_reduction <maximumf>, %57, %cst_30 [1] : vector<16x16xf32> to vector<16xf32>
    %59 = vector.shape_cast %58 : vector<16xf32> to vector<16x1xf32>
    %60 = vector.broadcast %59 : vector<16x1xf32> to vector<16x16xf32>
    %61 = arith.subf %57, %60 : vector<16x16xf32>
    %62 = math.exp %61 : vector<16x16xf32>
    %cst_31 = arith.constant dense<0.000000e+00> : vector<16xf32>
    %63 = vector.multi_reduction <add>, %62, %cst_31 [1] : vector<16x16xf32> to vector<16xf32>
    %64 = vector.shape_cast %63 : vector<16xf32> to vector<16x1xf32>
    %65 = tpu.reciprocal %64 {approx = true} : vector<16x1xf32> -> vector<16x1xf32>
    %66 = vector.broadcast %65 : vector<16x1xf32> to vector<16x16xf32>
    %67 = arith.mulf %62, %66 : vector<16x16xf32>
    %68 = vector.extract_strided_slice %18 {offsets = [0, 16], sizes = [16, 8], strides = [1, 1]} : vector<16x32xf32> to vector<16x8xf32>
    %cst_32 = arith.constant dense<0.000000e+00> : vector<16x8xf32>
    %69 = tpu.matmul %67, %68, %cst_32 {dimension_numbers = #tpu.dot_dimension_numbers<[1], [0], [0], [1], [0, 0, 1, 1], [], []>} : vector<16x16xf32>, vector<16x8xf32>, vector<16x8xf32> -> vector<16x8xf32>
    %70 = vector.extract_strided_slice %8 {offsets = [0, 24], sizes = [16, 8], strides = [1, 1]} : vector<16x32xf32> to vector<16x8xf32>
    %71 = vector.extract_strided_slice %13 {offsets = [0, 24], sizes = [16, 8], strides = [1, 1]} : vector<16x32xf32> to vector<16x8xf32>
    %72 = tpu.transpose %71, [1, 0] : vector<16x8xf32> -> vector<8x16xf32>
    %cst_33 = arith.constant dense<0.000000e+00> : vector<16x16xf32>
    %73 = tpu.matmul %70, %72, %cst_33 {dimension_numbers = #tpu.dot_dimension_numbers<[1], [0], [0], [1], [0, 0, 1, 1], [], []>} : vector<16x8xf32>, vector<8x16xf32>, vector<16x16xf32> -> vector<16x16xf32>
    %74 = arith.addf %73, %2 : vector<16x16xf32>
    %cst_34 = arith.constant dense<0xFF800000> : vector<16xf32>
    %75 = vector.multi_reduction <maximumf>, %74, %cst_34 [1] : vector<16x16xf32> to vector<16xf32>
    %76 = vector.shape_cast %75 : vector<16xf32> to vector<16x1xf32>
    %77 = vector.broadcast %76 : vector<16x1xf32> to vector<16x16xf32>
    %78 = arith.subf %74, %77 : vector<16x16xf32>
    %79 = math.exp %78 : vector<16x16xf32>
    %cst_35 = arith.constant dense<0.000000e+00> : vector<16xf32>
    %80 = vector.multi_reduction <add>, %79, %cst_35 [1] : vector<16x16xf32> to vector<16xf32>
    %81 = vector.shape_cast %80 : vector<16xf32> to vector<16x1xf32>
    %82 = tpu.reciprocal %81 {approx = true} : vector<16x1xf32> -> vector<16x1xf32>
    %83 = vector.broadcast %82 : vector<16x1xf32> to vector<16x16xf32>
    %84 = arith.mulf %79, %83 : vector<16x16xf32>
    %85 = vector.extract_strided_slice %18 {offsets = [0, 24], sizes = [16, 8], strides = [1, 1]} : vector<16x32xf32> to vector<16x8xf32>
    %cst_36 = arith.constant dense<0.000000e+00> : vector<16x8xf32>
    %86 = tpu.matmul %84, %85, %cst_36 {dimension_numbers = #tpu.dot_dimension_numbers<[1], [0], [0], [1], [0, 0, 1, 1], [], []>} : vector<16x16xf32>, vector<16x8xf32>, vector<16x8xf32> -> vector<16x8xf32>
    %87 = tpu.concatenate %35, %52, %69, %86 in 1 : vector<16x8xf32>, vector<16x8xf32>, vector<16x8xf32>, vector<16x8xf32> -> vector<16x32xf32>
    %c0_37 = arith.constant 0 : index
    %c0_38 = arith.constant 0 : index
    %88 = vector.load %arg11[%c0_37, %c0_38] : memref<32x32xf32, #tpu.memory_space<vmem>>, vector<32x32xf32>
    %cst_39 = arith.constant dense<0.000000e+00> : vector<16x32xf32>
    %89 = tpu.matmul %87, %88, %cst_39 {dimension_numbers = #tpu.dot_dimension_numbers<[1], [0], [0], [1], [0, 0, 1, 1], [], []>} : vector<16x32xf32>, vector<32x32xf32>, vector<16x32xf32> -> vector<16x32xf32>
    %c0_40 = arith.constant 0 : index
    %c0_41 = arith.constant 0 : index
    %90 = vector.load %arg12[%c0_40, %c0_41] : memref<1x32xf32, #tpu.memory_space<vmem>>, vector<1x32xf32>
    %91 = vector.broadcast %90 : vector<1x32xf32> to vector<16x32xf32>
    %92 = arith.addf %89, %91 : vector<16x32xf32>
    %93 = arith.addf %0, %92 : vector<16x32xf32>
    %c0_42 = arith.constant 0 : index
    %c0_43 = arith.constant 0 : index
    %94 = vector.load %arg21[%c0_42, %c0_43] : memref<1x32xf32, #tpu.memory_space<vmem>>, vector<1x32xf32>
    %c0_44 = arith.constant 0 : index
    %c0_45 = arith.constant 0 : index
    %95 = vector.load %arg22[%c0_44, %c0_45] : memref<1x32xf32, #tpu.memory_space<vmem>>, vector<1x32xf32>
    %cst_46 = arith.constant dense<0.000000e+00> : vector<16xf32>
    %96 = vector.multi_reduction <add>, %93, %cst_46 [1] : vector<16x32xf32> to vector<16xf32>
    %97 = vector.shape_cast %96 : vector<16xf32> to vector<16x1xf32>
    %cst_47 = arith.constant 3.200000e+01 : f32
    %98 = vector.broadcast %cst_47 : f32 to vector<16x1xf32>
    %99 = arith.divf %97, %98 : vector<16x1xf32>
    %100 = vector.broadcast %99 : vector<16x1xf32> to vector<16x32xf32>
    %101 = arith.subf %93, %100 : vector<16x32xf32>
    %102 = arith.mulf %101, %101 : vector<16x32xf32>
    %cst_48 = arith.constant dense<0.000000e+00> : vector<16xf32>
    %103 = vector.multi_reduction <add>, %102, %cst_48 [1] : vector<16x32xf32> to vector<16xf32>
    %104 = vector.shape_cast %103 : vector<16xf32> to vector<16x1xf32>
    %cst_49 = arith.constant 3.200000e+01 : f32
    %105 = vector.broadcast %cst_49 : f32 to vector<16x1xf32>
    %106 = arith.divf %104, %105 : vector<16x1xf32>
    %cst_50 = arith.constant 9.99999974E-6 : f32
    %107 = vector.broadcast %cst_50 : f32 to vector<16x1xf32>
    %108 = arith.addf %106, %107 : vector<16x1xf32>
    %109 = math.rsqrt %108 : vector<16x1xf32>
    %110 = vector.broadcast %109 : vector<16x1xf32> to vector<16x32xf32>
    %111 = arith.mulf %101, %110 : vector<16x32xf32>
    %112 = vector.broadcast %94 : vector<1x32xf32> to vector<16x32xf32>
    %113 = arith.mulf %111, %112 : vector<16x32xf32>
    %114 = vector.broadcast %95 : vector<1x32xf32> to vector<16x32xf32>
    %115 = arith.addf %113, %114 : vector<16x32xf32>
    %c0_51 = arith.constant 0 : index
    %c0_52 = arith.constant 0 : index
    %116 = vector.load %arg13[%c0_51, %c0_52] : memref<32x32xf32, #tpu.memory_space<vmem>>, vector<32x32xf32>
    %cst_53 = arith.constant dense<0.000000e+00> : vector<16x32xf32>
    %117 = tpu.matmul %115, %116, %cst_53 {dimension_numbers = #tpu.dot_dimension_numbers<[1], [0], [0], [1], [0, 0, 1, 1], [], []>} : vector<16x32xf32>, vector<32x32xf32>, vector<16x32xf32> -> vector<16x32xf32>
    %c0_54 = arith.constant 0 : index
    %c0_55 = arith.constant 0 : index
    %118 = vector.load %arg14[%c0_54, %c0_55] : memref<1x32xf32, #tpu.memory_space<vmem>>, vector<1x32xf32>
    %119 = vector.broadcast %118 : vector<1x32xf32> to vector<16x32xf32>
    %120 = arith.addf %117, %119 : vector<16x32xf32>
    %c0_56 = arith.constant 0 : index
    %c0_57 = arith.constant 0 : index
    %121 = vector.load %arg15[%c0_56, %c0_57] : memref<32x32xf32, #tpu.memory_space<vmem>>, vector<32x32xf32>
    %cst_58 = arith.constant dense<0.000000e+00> : vector<32x32xf32>
    %122 = tpu.matmul %1, %121, %cst_58 {dimension_numbers = #tpu.dot_dimension_numbers<[1], [0], [0], [1], [0, 0, 1, 1], [], []>} : vector<32x32xf32>, vector<32x32xf32>, vector<32x32xf32> -> vector<32x32xf32>
    %c0_59 = arith.constant 0 : index
    %c0_60 = arith.constant 0 : index
    %123 = vector.load %arg16[%c0_59, %c0_60] : memref<1x32xf32, #tpu.memory_space<vmem>>, vector<1x32xf32>
    %124 = vector.broadcast %123 : vector<1x32xf32> to vector<32x32xf32>
    %125 = arith.addf %122, %124 : vector<32x32xf32>
    %c0_61 = arith.constant 0 : index
    %c0_62 = arith.constant 0 : index
    %126 = vector.load %arg17[%c0_61, %c0_62] : memref<32x32xf32, #tpu.memory_space<vmem>>, vector<32x32xf32>
    %cst_63 = arith.constant dense<0.000000e+00> : vector<32x32xf32>
    %127 = tpu.matmul %1, %126, %cst_63 {dimension_numbers = #tpu.dot_dimension_numbers<[1], [0], [0], [1], [0, 0, 1, 1], [], []>} : vector<32x32xf32>, vector<32x32xf32>, vector<32x32xf32> -> vector<32x32xf32>
    %c0_64 = arith.constant 0 : index
    %c0_65 = arith.constant 0 : index
    %128 = vector.load %arg18[%c0_64, %c0_65] : memref<1x32xf32, #tpu.memory_space<vmem>>, vector<1x32xf32>
    %129 = vector.broadcast %128 : vector<1x32xf32> to vector<32x32xf32>
    %130 = arith.addf %127, %129 : vector<32x32xf32>
    %131 = vector.extract_strided_slice %120 {offsets = [0, 0], sizes = [16, 8], strides = [1, 1]} : vector<16x32xf32> to vector<16x8xf32>
    %132 = vector.extract_strided_slice %125 {offsets = [0, 0], sizes = [32, 8], strides = [1, 1]} : vector<32x32xf32> to vector<32x8xf32>
    %133 = tpu.transpose %132, [1, 0] : vector<32x8xf32> -> vector<8x32xf32>
    %cst_66 = arith.constant dense<0.000000e+00> : vector<16x32xf32>
    %134 = tpu.matmul %131, %133, %cst_66 {dimension_numbers = #tpu.dot_dimension_numbers<[1], [0], [0], [1], [0, 0, 1, 1], [], []>} : vector<16x8xf32>, vector<8x32xf32>, vector<16x32xf32> -> vector<16x32xf32>
    %135 = arith.addf %134, %3 : vector<16x32xf32>
    %cst_67 = arith.constant dense<0xFF800000> : vector<16xf32>
    %136 = vector.multi_reduction <maximumf>, %135, %cst_67 [1] : vector<16x32xf32> to vector<16xf32>
    %137 = vector.shape_cast %136 : vector<16xf32> to vector<16x1xf32>
    %138 = vector.broadcast %137 : vector<16x1xf32> to vector<16x32xf32>
    %139 = arith.subf %135, %138 : vector<16x32xf32>
    %140 = math.exp %139 : vector<16x32xf32>
    %cst_68 = arith.constant dense<0.000000e+00> : vector<16xf32>
    %141 = vector.multi_reduction <add>, %140, %cst_68 [1] : vector<16x32xf32> to vector<16xf32>
    %142 = vector.shape_cast %141 : vector<16xf32> to vector<16x1xf32>
    %143 = tpu.reciprocal %142 {approx = true} : vector<16x1xf32> -> vector<16x1xf32>
    %144 = vector.broadcast %143 : vector<16x1xf32> to vector<16x32xf32>
    %145 = arith.mulf %140, %144 : vector<16x32xf32>
    %146 = vector.extract_strided_slice %130 {offsets = [0, 0], sizes = [32, 8], strides = [1, 1]} : vector<32x32xf32> to vector<32x8xf32>
    %cst_69 = arith.constant dense<0.000000e+00> : vector<16x8xf32>
    %147 = tpu.matmul %145, %146, %cst_69 {dimension_numbers = #tpu.dot_dimension_numbers<[1], [0], [0], [1], [0, 0, 1, 1], [], []>} : vector<16x32xf32>, vector<32x8xf32>, vector<16x8xf32> -> vector<16x8xf32>
    %148 = vector.extract_strided_slice %120 {offsets = [0, 8], sizes = [16, 8], strides = [1, 1]} : vector<16x32xf32> to vector<16x8xf32>
    %149 = vector.extract_strided_slice %125 {offsets = [0, 8], sizes = [32, 8], strides = [1, 1]} : vector<32x32xf32> to vector<32x8xf32>
    %150 = tpu.transpose %149, [1, 0] : vector<32x8xf32> -> vector<8x32xf32>
    %cst_70 = arith.constant dense<0.000000e+00> : vector<16x32xf32>
    %151 = tpu.matmul %148, %150, %cst_70 {dimension_numbers = #tpu.dot_dimension_numbers<[1], [0], [0], [1], [0, 0, 1, 1], [], []>} : vector<16x8xf32>, vector<8x32xf32>, vector<16x32xf32> -> vector<16x32xf32>
    %152 = arith.addf %151, %3 : vector<16x32xf32>
    %cst_71 = arith.constant dense<0xFF800000> : vector<16xf32>
    %153 = vector.multi_reduction <maximumf>, %152, %cst_71 [1] : vector<16x32xf32> to vector<16xf32>
    %154 = vector.shape_cast %153 : vector<16xf32> to vector<16x1xf32>
    %155 = vector.broadcast %154 : vector<16x1xf32> to vector<16x32xf32>
    %156 = arith.subf %152, %155 : vector<16x32xf32>
    %157 = math.exp %156 : vector<16x32xf32>
    %cst_72 = arith.constant dense<0.000000e+00> : vector<16xf32>
    %158 = vector.multi_reduction <add>, %157, %cst_72 [1] : vector<16x32xf32> to vector<16xf32>
    %159 = vector.shape_cast %158 : vector<16xf32> to vector<16x1xf32>
    %160 = tpu.reciprocal %159 {approx = true} : vector<16x1xf32> -> vector<16x1xf32>
    %161 = vector.broadcast %160 : vector<16x1xf32> to vector<16x32xf32>
    %162 = arith.mulf %157, %161 : vector<16x32xf32>
    %163 = vector.extract_strided_slice %130 {offsets = [0, 8], sizes = [32, 8], strides = [1, 1]} : vector<32x32xf32> to vector<32x8xf32>
    %cst_73 = arith.constant dense<0.000000e+00> : vector<16x8xf32>
    %164 = tpu.matmul %162, %163, %cst_73 {dimension_numbers = #tpu.dot_dimension_numbers<[1], [0], [0], [1], [0, 0, 1, 1], [], []>} : vector<16x32xf32>, vector<32x8xf32>, vector<16x8xf32> -> vector<16x8xf32>
    %165 = vector.extract_strided_slice %120 {offsets = [0, 16], sizes = [16, 8], strides = [1, 1]} : vector<16x32xf32> to vector<16x8xf32>
    %166 = vector.extract_strided_slice %125 {offsets = [0, 16], sizes = [32, 8], strides = [1, 1]} : vector<32x32xf32> to vector<32x8xf32>
    %167 = tpu.transpose %166, [1, 0] : vector<32x8xf32> -> vector<8x32xf32>
    %cst_74 = arith.constant dense<0.000000e+00> : vector<16x32xf32>
    %168 = tpu.matmul %165, %167, %cst_74 {dimension_numbers = #tpu.dot_dimension_numbers<[1], [0], [0], [1], [0, 0, 1, 1], [], []>} : vector<16x8xf32>, vector<8x32xf32>, vector<16x32xf32> -> vector<16x32xf32>
    %169 = arith.addf %168, %3 : vector<16x32xf32>
    %cst_75 = arith.constant dense<0xFF800000> : vector<16xf32>
    %170 = vector.multi_reduction <maximumf>, %169, %cst_75 [1] : vector<16x32xf32> to vector<16xf32>
    %171 = vector.shape_cast %170 : vector<16xf32> to vector<16x1xf32>
    %172 = vector.broadcast %171 : vector<16x1xf32> to vector<16x32xf32>
    %173 = arith.subf %169, %172 : vector<16x32xf32>
    %174 = math.exp %173 : vector<16x32xf32>
    %cst_76 = arith.constant dense<0.000000e+00> : vector<16xf32>
    %175 = vector.multi_reduction <add>, %174, %cst_76 [1] : vector<16x32xf32> to vector<16xf32>
    %176 = vector.shape_cast %175 : vector<16xf32> to vector<16x1xf32>
    %177 = tpu.reciprocal %176 {approx = true} : vector<16x1xf32> -> vector<16x1xf32>
    %178 = vector.broadcast %177 : vector<16x1xf32> to vector<16x32xf32>
    %179 = arith.mulf %174, %178 : vector<16x32xf32>
    %180 = vector.extract_strided_slice %130 {offsets = [0, 16], sizes = [32, 8], strides = [1, 1]} : vector<32x32xf32> to vector<32x8xf32>
    %cst_77 = arith.constant dense<0.000000e+00> : vector<16x8xf32>
    %181 = tpu.matmul %179, %180, %cst_77 {dimension_numbers = #tpu.dot_dimension_numbers<[1], [0], [0], [1], [0, 0, 1, 1], [], []>} : vector<16x32xf32>, vector<32x8xf32>, vector<16x8xf32> -> vector<16x8xf32>
    %182 = vector.extract_strided_slice %120 {offsets = [0, 24], sizes = [16, 8], strides = [1, 1]} : vector<16x32xf32> to vector<16x8xf32>
    %183 = vector.extract_strided_slice %125 {offsets = [0, 24], sizes = [32, 8], strides = [1, 1]} : vector<32x32xf32> to vector<32x8xf32>
    %184 = tpu.transpose %183, [1, 0] : vector<32x8xf32> -> vector<8x32xf32>
    %cst_78 = arith.constant dense<0.000000e+00> : vector<16x32xf32>
    %185 = tpu.matmul %182, %184, %cst_78 {dimension_numbers = #tpu.dot_dimension_numbers<[1], [0], [0], [1], [0, 0, 1, 1], [], []>} : vector<16x8xf32>, vector<8x32xf32>, vector<16x32xf32> -> vector<16x32xf32>
    %186 = arith.addf %185, %3 : vector<16x32xf32>
    %cst_79 = arith.constant dense<0xFF800000> : vector<16xf32>
    %187 = vector.multi_reduction <maximumf>, %186, %cst_79 [1] : vector<16x32xf32> to vector<16xf32>
    %188 = vector.shape_cast %187 : vector<16xf32> to vector<16x1xf32>
    %189 = vector.broadcast %188 : vector<16x1xf32> to vector<16x32xf32>
    %190 = arith.subf %186, %189 : vector<16x32xf32>
    %191 = math.exp %190 : vector<16x32xf32>
    %cst_80 = arith.constant dense<0.000000e+00> : vector<16xf32>
    %192 = vector.multi_reduction <add>, %191, %cst_80 [1] : vector<16x32xf32> to vector<16xf32>
    %193 = vector.shape_cast %192 : vector<16xf32> to vector<16x1xf32>
    %194 = tpu.reciprocal %193 {approx = true} : vector<16x1xf32> -> vector<16x1xf32>
    %195 = vector.broadcast %194 : vector<16x1xf32> to vector<16x32xf32>
    %196 = arith.mulf %191, %195 : vector<16x32xf32>
    %197 = vector.extract_strided_slice %130 {offsets = [0, 24], sizes = [32, 8], strides = [1, 1]} : vector<32x32xf32> to vector<32x8xf32>
    %cst_81 = arith.constant dense<0.000000e+00> : vector<16x8xf32>
    %198 = tpu.matmul %196, %197, %cst_81 {dimension_numbers = #tpu.dot_dimension_numbers<[1], [0], [0], [1], [0, 0, 1, 1], [], []>} : vector<16x32xf32>, vector<32x8xf32>, vector<16x8xf32> -> vector<16x8xf32>
    %199 = tpu.concatenate %147, %164, %181, %198 in 1 : vector<16x8xf32>, vector<16x8xf32>, vector<16x8xf32>, vector<16x8xf32> -> vector<16x32xf32>
    %c0_82 = arith.constant 0 : index
    %c0_83 = arith.constant 0 : index
    %200 = vector.load %arg19[%c0_82, %c0_83] : memref<32x32xf32, #tpu.memory_space<vmem>>, vector<32x32xf32>
    %cst_84 = arith.constant dense<0.000000e+00> : vector<16x32xf32>
    %201 = tpu.matmul %199, %200, %cst_84 {dimension_numbers = #tpu.dot_dimension_numbers<[1], [0], [0], [1], [0, 0, 1, 1], [], []>} : vector<16x32xf32>, vector<32x32xf32>, vector<16x32xf32> -> vector<16x32xf32>
    %c0_85 = arith.constant 0 : index
    %c0_86 = arith.constant 0 : index
    %202 = vector.load %arg20[%c0_85, %c0_86] : memref<1x32xf32, #tpu.memory_space<vmem>>, vector<1x32xf32>
    %203 = vector.broadcast %202 : vector<1x32xf32> to vector<16x32xf32>
    %204 = arith.addf %201, %203 : vector<16x32xf32>
    %205 = arith.addf %115, %204 : vector<16x32xf32>
    %c0_87 = arith.constant 0 : index
    %c0_88 = arith.constant 0 : index
    %206 = vector.load %arg23[%c0_87, %c0_88] : memref<1x32xf32, #tpu.memory_space<vmem>>, vector<1x32xf32>
    %c0_89 = arith.constant 0 : index
    %c0_90 = arith.constant 0 : index
    %207 = vector.load %arg24[%c0_89, %c0_90] : memref<1x32xf32, #tpu.memory_space<vmem>>, vector<1x32xf32>
    %cst_91 = arith.constant dense<0.000000e+00> : vector<16xf32>
    %208 = vector.multi_reduction <add>, %205, %cst_91 [1] : vector<16x32xf32> to vector<16xf32>
    %209 = vector.shape_cast %208 : vector<16xf32> to vector<16x1xf32>
    %cst_92 = arith.constant 3.200000e+01 : f32
    %210 = vector.broadcast %cst_92 : f32 to vector<16x1xf32>
    %211 = arith.divf %209, %210 : vector<16x1xf32>
    %212 = vector.broadcast %211 : vector<16x1xf32> to vector<16x32xf32>
    %213 = arith.subf %205, %212 : vector<16x32xf32>
    %214 = arith.mulf %213, %213 : vector<16x32xf32>
    %cst_93 = arith.constant dense<0.000000e+00> : vector<16xf32>
    %215 = vector.multi_reduction <add>, %214, %cst_93 [1] : vector<16x32xf32> to vector<16xf32>
    %216 = vector.shape_cast %215 : vector<16xf32> to vector<16x1xf32>
    %cst_94 = arith.constant 3.200000e+01 : f32
    %217 = vector.broadcast %cst_94 : f32 to vector<16x1xf32>
    %218 = arith.divf %216, %217 : vector<16x1xf32>
    %cst_95 = arith.constant 9.99999974E-6 : f32
    %219 = vector.broadcast %cst_95 : f32 to vector<16x1xf32>
    %220 = arith.addf %218, %219 : vector<16x1xf32>
    %221 = math.rsqrt %220 : vector<16x1xf32>
    %222 = vector.broadcast %221 : vector<16x1xf32> to vector<16x32xf32>
    %223 = arith.mulf %213, %222 : vector<16x32xf32>
    %224 = vector.broadcast %206 : vector<1x32xf32> to vector<16x32xf32>
    %225 = arith.mulf %223, %224 : vector<16x32xf32>
    %226 = vector.broadcast %207 : vector<1x32xf32> to vector<16x32xf32>
    %227 = arith.addf %225, %226 : vector<16x32xf32>
    %c0_96 = arith.constant 0 : index
    %c0_97 = arith.constant 0 : index
    %228 = vector.load %arg27[%c0_96, %c0_97] : memref<32x64xf32, #tpu.memory_space<vmem>>, vector<32x64xf32>
    %cst_98 = arith.constant dense<0.000000e+00> : vector<16x64xf32>
    %229 = tpu.matmul %227, %228, %cst_98 {dimension_numbers = #tpu.dot_dimension_numbers<[1], [0], [0], [1], [0, 0, 1, 1], [], []>} : vector<16x32xf32>, vector<32x64xf32>, vector<16x64xf32> -> vector<16x64xf32>
    %c0_99 = arith.constant 0 : index
    %c0_100 = arith.constant 0 : index
    %230 = vector.load %arg28[%c0_99, %c0_100] : memref<1x64xf32, #tpu.memory_space<vmem>>, vector<1x64xf32>
    %231 = vector.broadcast %230 : vector<1x64xf32> to vector<16x64xf32>
    %232 = arith.addf %229, %231 : vector<16x64xf32>
    %cst_101 = arith.constant 5.000000e-01 : f32
    %233 = vector.broadcast %cst_101 : f32 to vector<16x64xf32>
    %234 = arith.mulf %233, %232 : vector<16x64xf32>
    %cst_102 = arith.constant 0.707106769 : f32
    %235 = vector.broadcast %cst_102 : f32 to vector<16x64xf32>
    %236 = arith.mulf %232, %235 : vector<16x64xf32>
    %cst_103 = arith.constant 0.000000e+00 : f32
    %237 = vector.broadcast %cst_103 : f32 to vector<16x64xf32>
    %238 = arith.cmpf olt, %236, %237 : vector<16x64xf32>
    %cst_104 = arith.constant -1.000000e+00 : f32
    %cst_105 = arith.constant 1.000000e+00 : f32
    %239 = vector.broadcast %cst_104 : f32 to vector<16x64xf32>
    %240 = vector.broadcast %cst_105 : f32 to vector<16x64xf32>
    %241 = arith.select %238, %239, %240 : vector<16x64xi1>, vector<16x64xf32>
    %242 = math.absf %236 : vector<16x64xf32>
    %cst_106 = arith.constant 0.327591091 : f32
    %243 = vector.broadcast %cst_106 : f32 to vector<16x64xf32>
    %244 = arith.mulf %243, %242 : vector<16x64xf32>
    %cst_107 = arith.constant 1.000000e+00 : f32
    %245 = vector.broadcast %cst_107 : f32 to vector<16x64xf32>
    %246 = arith.addf %245, %244 : vector<16x64xf32>
    %247 = tpu.reciprocal %246 {approx = true} : vector<16x64xf32> -> vector<16x64xf32>
    %cst_108 = arith.constant 1.06140542 : f32
    %248 = vector.broadcast %cst_108 : f32 to vector<16x64xf32>
    %249 = arith.mulf %248, %247 : vector<16x64xf32>
    %cst_109 = arith.constant -1.45315206 : f32
    %250 = vector.broadcast %cst_109 : f32 to vector<16x64xf32>
    %251 = arith.addf %249, %250 : vector<16x64xf32>
    %252 = arith.mulf %251, %247 : vector<16x64xf32>
    %cst_110 = arith.constant 1.42141378 : f32
    %253 = vector.broadcast %cst_110 : f32 to vector<16x64xf32>
    %254 = arith.addf %252, %253 : vector<16x64xf32>
    %255 = arith.mulf %254, %247 : vector<16x64xf32>
    %cst_111 = arith.constant -0.284496725 : f32
    %256 = vector.broadcast %cst_111 : f32 to vector<16x64xf32>
    %257 = arith.addf %255, %256 : vector<16x64xf32>
    %258 = arith.mulf %257, %247 : vector<16x64xf32>
    %cst_112 = arith.constant 0.254829586 : f32
    %259 = vector.broadcast %cst_112 : f32 to vector<16x64xf32>
    %260 = arith.addf %258, %259 : vector<16x64xf32>
    %261 = arith.mulf %260, %247 : vector<16x64xf32>
    %cst_113 = arith.constant 0.000000e+00 : f32
    %262 = vector.broadcast %cst_113 : f32 to vector<16x64xf32>
    %263 = arith.subf %262, %242 : vector<16x64xf32>
    %264 = arith.mulf %263, %242 : vector<16x64xf32>
    %265 = math.exp %264 : vector<16x64xf32>
    %266 = arith.mulf %261, %265 : vector<16x64xf32>
    %cst_114 = arith.constant 1.000000e+00 : f32
    %267 = vector.broadcast %cst_114 : f32 to vector<16x64xf32>
    %268 = arith.subf %267, %266 : vector<16x64xf32>
    %269 = arith.mulf %241, %268 : vector<16x64xf32>
    %cst_115 = arith.constant 1.000000e+00 : f32
    %270 = vector.broadcast %cst_115 : f32 to vector<16x64xf32>
    %271 = arith.addf %270, %269 : vector<16x64xf32>
    %272 = arith.mulf %234, %271 : vector<16x64xf32>
    %c0_116 = arith.constant 0 : index
    %c0_117 = arith.constant 0 : index
    %273 = vector.load %arg29[%c0_116, %c0_117] : memref<64x32xf32, #tpu.memory_space<vmem>>, vector<64x32xf32>
    %cst_118 = arith.constant dense<0.000000e+00> : vector<16x32xf32>
    %274 = tpu.matmul %272, %273, %cst_118 {dimension_numbers = #tpu.dot_dimension_numbers<[1], [0], [0], [1], [0, 0, 1, 1], [], []>} : vector<16x64xf32>, vector<64x32xf32>, vector<16x32xf32> -> vector<16x32xf32>
    %c0_119 = arith.constant 0 : index
    %c0_120 = arith.constant 0 : index
    %275 = vector.load %arg30[%c0_119, %c0_120] : memref<1x32xf32, #tpu.memory_space<vmem>>, vector<1x32xf32>
    %276 = vector.broadcast %275 : vector<1x32xf32> to vector<16x32xf32>
    %277 = arith.addf %274, %276 : vector<16x32xf32>
    %278 = arith.addf %227, %277 : vector<16x32xf32>
    %c0_121 = arith.constant 0 : index
    %c0_122 = arith.constant 0 : index
    %279 = vector.load %arg25[%c0_121, %c0_122] : memref<1x32xf32, #tpu.memory_space<vmem>>, vector<1x32xf32>
    %c0_123 = arith.constant 0 : index
    %c0_124 = arith.constant 0 : index
    %280 = vector.load %arg26[%c0_123, %c0_124] : memref<1x32xf32, #tpu.memory_space<vmem>>, vector<1x32xf32>
    %cst_125 = arith.constant dense<0.000000e+00> : vector<16xf32>
    %281 = vector.multi_reduction <add>, %278, %cst_125 [1] : vector<16x32xf32> to vector<16xf32>
    %282 = vector.shape_cast %281 : vector<16xf32> to vector<16x1xf32>
    %cst_126 = arith.constant 3.200000e+01 : f32
    %283 = vector.broadcast %cst_126 : f32 to vector<16x1xf32>
    %284 = arith.divf %282, %283 : vector<16x1xf32>
    %285 = vector.broadcast %284 : vector<16x1xf32> to vector<16x32xf32>
    %286 = arith.subf %278, %285 : vector<16x32xf32>
    %287 = arith.mulf %286, %286 : vector<16x32xf32>
    %cst_127 = arith.constant dense<0.000000e+00> : vector<16xf32>
    %288 = vector.multi_reduction <add>, %287, %cst_127 [1] : vector<16x32xf32> to vector<16xf32>
    %289 = vector.shape_cast %288 : vector<16xf32> to vector<16x1xf32>
    %cst_128 = arith.constant 3.200000e+01 : f32
    %290 = vector.broadcast %cst_128 : f32 to vector<16x1xf32>
    %291 = arith.divf %289, %290 : vector<16x1xf32>
    %cst_129 = arith.constant 9.99999974E-6 : f32
    %292 = vector.broadcast %cst_129 : f32 to vector<16x1xf32>
    %293 = arith.addf %291, %292 : vector<16x1xf32>
    %294 = math.rsqrt %293 : vector<16x1xf32>
    %295 = vector.broadcast %294 : vector<16x1xf32> to vector<16x32xf32>
    %296 = arith.mulf %286, %295 : vector<16x32xf32>
    %297 = vector.broadcast %279 : vector<1x32xf32> to vector<16x32xf32>
    %298 = arith.mulf %296, %297 : vector<16x32xf32>
    %299 = vector.broadcast %280 : vector<1x32xf32> to vector<16x32xf32>
    %300 = arith.addf %298, %299 : vector<16x32xf32>
    %301 = tpu.concatenate %300, %13, %18 in 1 : vector<16x32xf32>, vector<16x32xf32>, vector<16x32xf32> -> vector<16x96xf32>
    %cst_130 = arith.constant 0.000000e+00 : f32
    %302 = vector.broadcast %cst_130 : f32 to vector<16x32xf32>
    %303 = tpu.concatenate %301, %302 in 1 : vector<16x96xf32>, vector<16x32xf32> -> vector<16x128xf32>
    %c0_131 = arith.constant 0 : index
    %c0_132 = arith.constant 0 : index
    %304 = vector.load %arg31[%c0_131, %c0_132] : memref<16x128xf32, #tpu.memory_space<vmem>>, vector<16x128xf32>
    tpu.vector_store %arg31[%c0_131, %c0_132], %303 {strides = array<i32>} : memref<16x128xf32, #tpu.memory_space<vmem>>, vector<16x128xf32>,
    %305 = tpu.concatenate %125, %130 in 1 : vector<32x32xf32>, vector<32x32xf32> -> vector<32x64xf32>
    %cst_133 = arith.constant 0.000000e+00 : f32
    %306 = vector.broadcast %cst_133 : f32 to vector<32x64xf32>
    %307 = tpu.concatenate %305, %306 in 1 : vector<32x64xf32>, vector<32x64xf32> -> vector<32x128xf32>
    %c0_134 = arith.constant 0 : index
    %c0_135 = arith.constant 0 : index
    %308 = vector.load %arg32[%c0_134, %c0_135] : memref<32x128xf32, #tpu.memory_space<vmem>>, vector<32x128xf32>
    tpu.vector_store %arg32[%c0_134, %c0_135], %307 {strides = array<i32>} : memref<32x128xf32, #tpu.memory_space<vmem>>, vector<32x128xf32>,
    return
  }
  func.func @transform_0(%arg0: i32) -> (i32, i32) {
    %c0_i32 = arith.constant 0 : i32
    %c0_i32_0 = arith.constant 0 : i32
    %c0_i32_1 = arith.constant 0 : i32
    return %c0_i32, %c0_i32_0 : i32, i32
  }
  func.func @transform_1(%arg0: i32) -> (i32, i32) {
    %c0_i32 = arith.constant 0 : i32
    %c0_i32_0 = arith.constant 0 : i32
    %c0_i32_1 = arith.constant 0 : i32
    return %c0_i32, %c0_i32_0 : i32, i32
  }
  func.func @transform_2(%arg0: i32) -> (i32, i32) {
    %c0_i32 = arith.constant 0 : i32
    %c0_i32_0 = arith.constant 0 : i32
    %c0_i32_1 = arith.constant 0 : i32
    return %c0_i32, %c0_i32_0 : i32, i32
  }
  func.func @transform_3(%arg0: i32) -> (i32, i32) {
    %c0_i32 = arith.constant 0 : i32
    %c0_i32_0 = arith.constant 0 : i32
    %c0_i32_1 = arith.constant 0 : i32
    return %c0_i32, %c0_i32_0 : i32, i32
  }
  func.func @transform_4(%arg0: i32) -> (i32, i32) {
    %c0_i32 = arith.constant 0 : i32
    %c0_i32_0 = arith.constant 0 : i32
    %c0_i32_1 = arith.constant 0 : i32
    return %c0_i32, %c0_i32_0 : i32, i32
  }
  func.func @transform_5(%arg0: i32) -> (i32, i32) {
    %c0_i32 = arith.constant 0 : i32
    %c0_i32_0 = arith.constant 0 : i32
    %c0_i32_1 = arith.constant 0 : i32
    return %c0_i32, %c0_i32_0 : i32, i32
  }
  func.func @transform_6(%arg0: i32) -> (i32, i32) {
    %c0_i32 = arith.constant 0 : i32
    %c0_i32_0 = arith.constant 0 : i32
    %c0_i32_1 = arith.constant 0 : i32
    return %c0_i32, %c0_i32_0 : i32, i32
  }
  func.func @transform_7(%arg0: i32) -> (i32, i32) {
    %c0_i32 = arith.constant 0 : i32
    %c0_i32_0 = arith.constant 0 : i32
    %c0_i32_1 = arith.constant 0 : i32
    return %c0_i32, %c0_i32_0 : i32, i32
  }
  func.func @transform_8(%arg0: i32) -> (i32, i32) {
    %c0_i32 = arith.constant 0 : i32
    %c0_i32_0 = arith.constant 0 : i32
    %c0_i32_1 = arith.constant 0 : i32
    return %c0_i32, %c0_i32_0 : i32, i32
  }
  func.func @transform_9(%arg0: i32) -> (i32, i32) {
    %c0_i32 = arith.constant 0 : i32
    %c0_i32_0 = arith.constant 0 : i32
    %c0_i32_1 = arith.constant 0 : i32
    return %c0_i32, %c0_i32_0 : i32, i32
  }
  func.func @transform_10(%arg0: i32) -> (i32, i32) {
    %c0_i32 = arith.constant 0 : i32
    %c0_i32_0 = arith.constant 0 : i32
    %c0_i32_1 = arith.constant 0 : i32
    return %c0_i32, %c0_i32_0 : i32, i32
  }
  func.func @transform_11(%arg0: i32) -> (i32, i32) {
    %c0_i32 = arith.constant 0 : i32
    %c0_i32_0 = arith.constant 0 : i32
    %c0_i32_1 = arith.constant 0 : i32
    return %c0_i32, %c0_i32_0 : i32, i32
  }
  func.func @transform_12(%arg0: i32) -> (i32, i32) {
    %c0_i32 = arith.constant 0 : i32
    %c0_i32_0 = arith.constant 0 : i32
    %c0_i32_1 = arith.constant 0 : i32
    return %c0_i32, %c0_i32_0 : i32, i32
  }
  func.func @transform_13(%arg0: i32) -> (i32, i32) {
    %c0_i32 = arith.constant 0 : i32
    %c0_i32_0 = arith.constant 0 : i32
    %c0_i32_1 = arith.constant 0 : i32
    return %c0_i32, %c0_i32_0 : i32, i32
  }
  func.func @transform_14(%arg0: i32) -> (i32, i32) {
    %c0_i32 = arith.constant 0 : i32
    %c0_i32_0 = arith.constant 0 : i32
    %c0_i32_1 = arith.constant 0 : i32
    return %c0_i32, %c0_i32_0 : i32, i32
  }
  func.func @transform_15(%arg0: i32) -> (i32, i32) {
    %c0_i32 = arith.constant 0 : i32
    %c0_i32_0 = arith.constant 0 : i32
    %c0_i32_1 = arith.constant 0 : i32
    return %c0_i32, %c0_i32_0 : i32, i32
  }
  func.func @transform_16(%arg0: i32) -> (i32, i32) {
    %c0_i32 = arith.constant 0 : i32
    %c0_i32_0 = arith.constant 0 : i32
    %c0_i32_1 = arith.constant 0 : i32
    return %c0_i32, %c0_i32_0 : i32, i32
  }
  func.func @transform_17(%arg0: i32) -> (i32, i32) {
    %c0_i32 = arith.constant 0 : i32
    %c0_i32_0 = arith.constant 0 : i32
    %c0_i32_1 = arith.constant 0 : i32
    return %c0_i32, %c0_i32_0 : i32, i32
  }
  func.func @transform_18(%arg0: i32) -> (i32, i32) {
    %c0_i32 = arith.constant 0 : i32
    %c0_i32_0 = arith.constant 0 : i32
    %c0_i32_1 = arith.constant 0 : i32
    return %c0_i32, %c0_i32_0 : i32, i32
  }
  func.func @transform_19(%arg0: i32) -> (i32, i32) {
    %c0_i32 = arith.constant 0 : i32
    %c0_i32_0 = arith.constant 0 : i32
    %c0_i32_1 = arith.constant 0 : i32
    return %c0_i32, %c0_i32_0 : i32, i32
  }
  func.func @transform_20(%arg0: i32) -> (i32, i32) {
    %c0_i32 = arith.constant 0 : i32
    %c0_i32_0 = arith.constant 0 : i32
    %c0_i32_1 = arith.constant 0 : i32
    return %c0_i32, %c0_i32_0 : i32, i32
  }
  func.func @transform_21(%arg0: i32) -> (i32, i32) {
    %c0_i32 = arith.constant 0 : i32
    %c0_i32_0 = arith.constant 0 : i32
    %c0_i32_1 = arith.constant 0 : i32
    return %c0_i32, %c0_i32_0 : i32, i32
  }
  func.func @transform_22(%arg0: i32) -> (i32, i32) {
    %c0_i32 = arith.constant 0 : i32
    %c0_i32_0 = arith.constant 0 : i32
    %c0_i32_1 = arith.constant 0 : i32
    return %c0_i32, %c0_i32_0 : i32, i32
  }
  func.func @transform_23(%arg0: i32) -> (i32, i32) {
    %c0_i32 = arith.constant 0 : i32
    %c0_i32_0 = arith.constant 0 : i32
    %c0_i32_1 = arith.constant 0 : i32
    return %c0_i32, %c0_i32_0 : i32, i32
  }
  func.func @transform_24(%arg0: i32) -> (i32, i32) {
    %c0_i32 = arith.constant 0 : i32
    %c0_i32_0 = arith.constant 0 : i32
    %c0_i32_1 = arith.constant 0 : i32
    return %c0_i32, %c0_i32_0 : i32, i32
  }
  func.func @transform_25(%arg0: i32) -> (i32, i32) {
    %c0_i32 = arith.constant 0 : i32
    %c0_i32_0 = arith.constant 0 : i32
    %c0_i32_1 = arith.constant 0 : i32
    return %c0_i32, %c0_i32_0 : i32, i32
  }
  func.func @transform_26(%arg0: i32) -> (i32, i32) {
    %c0_i32 = arith.constant 0 : i32
    %c0_i32_0 = arith.constant 0 : i32
    %c0_i32_1 = arith.constant 0 : i32
    return %c0_i32, %c0_i32_0 : i32, i32
  }
  func.func @transform_27(%arg0: i32) -> (i32, i32) {
    %c0_i32 = arith.constant 0 : i32
    %c0_i32_0 = arith.constant 0 : i32
    %c0_i32_1 = arith.constant 0 : i32
    return %c0_i32, %c0_i32_0 : i32, i32
  }
  func.func @transform_28(%arg0: i32) -> (i32, i32) {
    %c0_i32 = arith.constant 0 : i32
    %c0_i32_0 = arith.constant 0 : i32
    %c0_i32_1 = arith.constant 0 : i32
    return %c0_i32, %c0_i32_0 : i32, i32
  }
  func.func @transform_29(%arg0: i32) -> (i32, i32) {
    %c0_i32 = arith.constant 0 : i32
    %c0_i32_0 = arith.constant 0 : i32
    %c0_i32_1 = arith.constant 0 : i32
    return %c0_i32, %c0_i32_0 : i32, i32
  }
  func.func @transform_30(%arg0: i32) -> (i32, i32) {
    %c0_i32 = arith.constant 0 : i32
    %c0_i32_0 = arith.constant 0 : i32
    %c0_i32_1 = arith.constant 0 : i32
    return %c0_i32, %c0_i32_0 : i32, i32
  }
  func.func @transform_31(%arg0: i32) -> (i32, i32) {
    %c0_i32 = arith.constant 0 : i32
    %c0_i32_0 = arith.constant 0 : i32
    %c0_i32_1 = arith.constant 0 : i32
    return %c0_i32, %c0_i32_0 : i32, i32
  }
}

</mosaic_0001>

<bundles_post_ra>
// kernel: tpu_custom_call.1
= control target key start
LH: loop header
LB: loop body
LE: loop exit
PB: predicated region body
PF: predicated region fallthrough
CT: control target
= control target key end

     0   :  { %s4756_s6 = smov 1   ;;  %s4757_s10 = smov 2   ;;  %s5587_s0 = inlined_call_operand.smem [shape: u32[32], index: -1, kind: input, shape index: {}] }
   0x1   :  { %s4826_s5 = sld [smem:[%s5587_s0]]   ;;  %s4758_s14 = smov 3  }
   0x2   :  { %s4831_s9 = sld [smem:[%s5587_s0 + %s4756_s6]]   ;;  %s4759_s18 = smov 4  }
   0x3   :  { %s4836_s13 = sld [smem:[%s5587_s0 + %s4757_s10]]   ;;  %s4760_s22 = smov 5  }
   0x4   :  { %s4841_s17 = sld [smem:[%s5587_s0 + %s4758_s14]]   ;;  %s4761_s26 = smov 6  }
   0x5   :  { %s4846_s21 = sld [smem:[%s5587_s0 + %s4759_s18]]   ;;  %s4762_s30 = smov 7  }
   0x6   :  { %s4851_s25 = sld [smem:[%s5587_s0 + %s4760_s22]]   ;;  %s4763_s4 = smov 8  }
   0x7   :  { %s4856_s29 = sld [smem:[%s5587_s0 + %s4761_s26]]   ;;  %s4764_s10 = smov 9  }
   0x8   :  { %5599 = sst [smem:[#allocation47_spill]] %s4831_s9  ;;  %s4765_s15 = smov 10  }
   0x9   :  { %s4861_s3 = sld [smem:[%s5587_s0 + %s4762_s30]]   ;;  %s4766_s20 = smov 11  }
   0xa   :  { %s4866_s8 = sld [smem:[%s5587_s0 + %s4763_s4]]   ;;  %s4767_s26 = smov 12  }
   0xb   :  { %5600 = sst [smem:[#allocation48_spill]] %s4846_s21  ;;  %s4768_s1 = smov 13  }
   0xc   :  { %s4871_s14 = sld [smem:[%s5587_s0 + %s4764_s10]]   ;;  %s4769_s7 = smov 14  }
   0xd   :  { %5601 = sst [smem:[#allocation49_spill]] %s4856_s29  ;;  %s4771_s22 = smov 16  }
   0xe   :  { %s4876_s19 = sld [smem:[%s5587_s0 + %s4765_s15]]   ;;  %s4770_s15 = smov 15  }
   0xf   :  { %s4881_s24 = sld [smem:[%s5587_s0 + %s4766_s20]]   ;;  %s4772_s28 = smov 17  }
  0x10   :  { %s4886_s30 = sld [smem:[%s5587_s0 + %s4767_s26]]  }
  0x11   :  { %s4891_s6 = sld [smem:[%s5587_s0 + %s4768_s1]]  }
  0x12   :  { %s4896_s12 = sld [smem:[%s5587_s0 + %s4769_s7]]   ;;  %s4773_s7 = smov 18  }
  0x13   :  { %s4901_s20 = sld [smem:[%s5587_s0 + %s4770_s15]]   ;;  %s4774_s15 = smov 19  }
  0x14   :  { %5602 = sst [smem:[#allocation50_spill]] %s4876_s19 }
  0x15   :  { %s4906_s27 = sld [smem:[%s5587_s0 + %s4771_s22]]   ;;  %s4775_s22 = smov 20  }
  0x16   :  { %s4911_s4 = sld [smem:[%s5587_s0 + %s4772_s28]]   ;;  %s4776_s28 = smov 21  }
  0x17   :  { %s4916_s9 = sld [smem:[%s5587_s0 + %s4773_s7]]   ;;  %s4777_s7 = smov 22  }
  0x18   :  { %5603 = sst [smem:[#allocation51_spill]] %s4896_s12 }
  0x19   :  { %s4921_s19 = sld [smem:[%s5587_s0 + %s4774_s15]]   ;;  %s4778_s15 = smov 23  }
  0x1a   :  { %s4926_s29 = sld [smem:[%s5587_s0 + %s4775_s22]]   ;;  %s4779_s22 = smov 24  }
  0x1b   :  { %5604 = sst [smem:[#allocation52_spill]] %s4906_s27 }
  0x1c   :  { %s4931_s21 = sld [smem:[%s5587_s0 + %s4776_s28]]   ;;  %s4780_s28 = smov 25  }
  0x1d   :  { %5605 = sst [smem:[#allocation53_spill]] %s4916_s9 }
  0x1e   :  { %s4936_s9 = sld [smem:[%s5587_s0 + %s4777_s7]]   ;;  %s4781_s7 = smov 26  }
  0x1f   :  { %5606 = sst [smem:[#allocation54_spill]] %s4921_s19 }
  0x20   :  { %5607 = sst [smem:[#allocation55_spill]] %s4926_s29 }
  0x21   :  { %s4941_s19 = sld [smem:[%s5587_s0 + %s4778_s15]]   ;;  %s4782_s15 = smov 27  }
  0x22   :  { %5608 = sst [smem:[#allocation56_spill]] %s4931_s21 }
  0x23   :  { %s4946_s29 = sld [smem:[%s5587_s0 + %s4779_s22]]   ;;  %s4783_s22 = smov 28  }
  0x24   :  { %s4951_s21 = sld [smem:[%s5587_s0 + %s4780_s28]]   ;;  %s4784_s28 = smov 29  }
  0x25   :  { %s4956_s27 = sld [smem:[%s5587_s0 + %s4781_s7]]   ;;  %s4785_s7 = smov 30  }
  0x26   :  { %s4966_s12 = sld [smem:[%s5587_s0 + %s4783_s22]]  }
  0x27   :  { %5609 = sst [smem:[#allocation57_spill]] %s4941_s19 }
  0x28   :  { %s4961_s19 = sld [smem:[%s5587_s0 + %s4782_s15]]   ;;  %s4786_s15 = smov 31  }
  0x2a   :  { %5610 = sst [smem:[#allocation58_spill]] %s4951_s21 }
  0x2b   :  { %5611 = sst [smem:[#allocation59_spill]] %s4956_s27 }
  0x2c   :  { %s4971_s21 = sld [smem:[%s5587_s0 + %s4784_s28]]  }
  0x2d   :  { %s4976_s27 = sld [smem:[%s5587_s0 + %s4785_s7]]  }
  0x2e   :  { %5612 = sst [smem:[#allocation60_spill]] %s4961_s19 }
  0x2f   :  { %s4981_s19 = sld [smem:[%s5587_s0 + %s4786_s15]]  }
  0x30   :  { %69 = vsyncpa [#allocation3], 0 }
  0x31   :  { %70 = vsyncpa [#allocation6], 0 }
  0x32   :  { %71 = vsyncpa [#allocation9], 0 }
  0x33   :  { %72 = vsyncpa [#allocation12], 0 }
  0x34   :  { %73 = vsyncpa [#allocation15], 0 }
  0x35   :  { %74 = vsyncpa [#allocation18], 0 }
  0x36   :  { %75 = vsyncpa [#allocation21], 0 }
  0x37   :  { %76 = vsyncpa [#allocation24], 0 }
  0x38   :  { %77 = vsyncpa [#allocation27], 0 }
  0x39   :  { %78 = vsyncpa [#allocation30], 0 }
  0x3a   :  { %79 = vsyncpa [#allocation4], 0 }
  0x3b   :  { %80 = vsyncpa [#allocation34], 0  ;;  %s4787_s22 = smov [#allocation5]   ;;  %s4788_s26 = smov [#allocation8]  }
  0x3c   :  { %s100_s23 = sshll.u32 %s4787_s22, 4  ;;  %s127_s0 = sshll.u32 %s4788_s26, 4  ;;  %s101_s23 = int_to_ptr.vmem [resolvable:$true] %s100_s23  ;;  %s4983_s0 = int_to_ptr.vmem [resolvable:$true] %s127_s0 }
  0x3d   :  { %s4270_s28 = scalar_lea.hbm %s4836_s13, 256 }
  0x3e   :  { %p4271_p0 = scmp.ne.s32.totalorder %s4836_s13, %s4270_s28  ;;  %p4274_p1 = scmp.lt.u32.totalorder %s4270_s28, %s4836_s13 }
  0x40   :  { %p4276_p2 = pnand %p4274_p1, %p4271_p0 }
  0x42   :  { %4279 = shalt.err (!%p4276_p2)
}
  0x43   :  { %s4280_s1 = scalar_lea.vmem %s101_s23, 256  ;;  %p4285_p4 = scmp.lt.s32.totalorder %s101_s23, %s101_s23 }
  0x44   :  { %p4281_p3 = scmp.ne.s32.totalorder %s101_s23, %s4280_s1  ;;  %p4286_p5 = scmp.lt.s32.totalorder %s4280_s1, %s4280_s1 }
  0x46   :  { %p4287_p6 = por %p4286_p5, %p4285_p4 }
  0x48   :  { %p4288_p7 = pnand %p4287_p6, %p4281_p3 }
  0x4a   :  { %4291 = shalt.err (!%p4288_p7)
}
  0x4b   :  { %s4789_s2 = smov 128   ;;  %s4790_s7 = smov 8  }
  0x4c   :  { %106 = dma.hbm_to_vmem [thread:$0]  %s4836_s13, 256, %s101_s23, [#allocation6], %s4789_s2, %s4789_s2, %s4790_s7  }
  0x4d   :  { %s4292_s10 = scalar_lea.hbm %s4851_s25, 16 }
  0x4e   :  { %p4293_p8 = scmp.ne.s32.totalorder %s4851_s25, %s4292_s10  ;;  %p4296_p9 = scmp.lt.u32.totalorder %s4292_s10, %s4851_s25 }
  0x50   :  { %p4298_p10 = pnand %p4296_p9, %p4293_p8 }
  0x52   :  { %4301 = shalt.err (!%p4298_p10)
}
  0x53   :  { %s4302_s11 = scalar_lea.vmem %s4983_s0, 16  ;;  %s4306_s15 = scalar_lea.vmem %s4983_s0, 32 }
  0x54   :  { %p4303_p11 = scmp.ne.s32.totalorder %s4983_s0, %s4302_s11  ;;  %p4307_p12 = scmp.lt.s32.totalorder %s4983_s0, %s4983_s0 }
  0x55   :  { %p4308_p13 = scmp.lt.s32.totalorder %s4306_s15, %s4302_s11 }
  0x57   :  { %p4309_p0 = por %p4308_p13, %p4307_p12 }
  0x59   :  { %p4310_p1 = pnand %p4309_p0, %p4303_p11 }
  0x5b   :  { %4313 = shalt.err (!%p4310_p1)
}
  0x5c   :  { %130 = dma.hbm_to_vmem [thread:$0]  %s4851_s25, 16, %s4983_s0, [#allocation9]  }
  0x5d   :  { %s4791_s13 = smov [#allocation11]   ;;  %s4792_s18 = smov [#allocation14]  }
  0x5e   :  { %s148_s16 = sshll.u32 %s4791_s13, 4  ;;  %s173_s22 = sshll.u32 %s4792_s18, 4  ;;  %s149_s16 = int_to_ptr.vmem [resolvable:$true] %s148_s16  ;;  %s174_s22 = int_to_ptr.vmem [resolvable:$true] %s173_s22 }
  0x5f   :  { %s4314_s23 = scalar_lea.hbm %s4866_s8, 512 }
  0x60   :  { %p4315_p2 = scmp.ne.s32.totalorder %s4866_s8, %s4314_s23  ;;  %p4318_p3 = scmp.lt.u32.totalorder %s4314_s23, %s4866_s8 }
  0x62   :  { %p4320_p4 = pnand %p4318_p3, %p4315_p2 }
  0x64   :  { %4323 = shalt.err (!%p4320_p4)
}
  0x65   :  { %s4324_s26 = scalar_lea.vmem %s149_s16, 512  ;;  %p4329_p6 = scmp.lt.s32.totalorder %s149_s16, %s149_s16 }
  0x66   :  { %p4325_p5 = scmp.ne.s32.totalorder %s149_s16, %s4324_s26  ;;  %p4330_p7 = scmp.lt.s32.totalorder %s4324_s26, %s4324_s26 }
  0x68   :  { %p4331_p8 = por %p4330_p7, %p4329_p6 }
  0x6a   :  { %p4332_p9 = pnand %p4331_p8, %p4325_p5 }
  0x6c   :  { %4335 = shalt.err (!%p4332_p9)
}
  0x6d   :  { %154 = dma.hbm_to_vmem [thread:$0]  %s4866_s8, 512, %s149_s16, [#allocation12], %s4789_s2, %s4789_s2, %s4790_s7  }
  0x6e   :  { %s4336_s25 = scalar_lea.hbm %s4881_s24, 16 }
  0x6f   :  { %p4337_p10 = scmp.ne.s32.totalorder %s4881_s24, %s4336_s25  ;;  %p4340_p11 = scmp.lt.u32.totalorder %s4336_s25, %s4881_s24 }
  0x71   :  { %p4342_p12 = pnand %p4340_p11, %p4337_p10 }
  0x73   :  { %4345 = shalt.err (!%p4342_p12)
}
  0x74   :  { %s4346_s0 = scalar_lea.vmem %s174_s22, 16  ;;  %s4350_s28 = scalar_lea.vmem %s174_s22, 32 }
  0x75   :  { %p4347_p13 = scmp.ne.s32.totalorder %s174_s22, %s4346_s0  ;;  %p4351_p0 = scmp.lt.s32.totalorder %s174_s22, %s174_s22 }
  0x76   :  { %p4352_p1 = scmp.lt.s32.totalorder %s4350_s28, %s4346_s0 }
  0x78   :  { %p4353_p2 = por %p4352_p1, %p4351_p0 }
  0x7a   :  { %p4354_p3 = pnand %p4353_p2, %p4347_p13 }
  0x7c   :  { %4357 = shalt.err (!%p4354_p3)
}
  0x7d   :  { %176 = dma.hbm_to_vmem [thread:$0]  %s4881_s24, 16, %s174_s22, [#allocation15]  }
  0x7e   :  { %s4793_s1 = smov [#allocation17]   ;;  %s4794_s10 = smov [#allocation20]  }
  0x7f   :  { %s195_s8 = sshll.u32 %s4793_s1, 4  ;;  %s217_s11 = sshll.u32 %s4794_s10, 4  ;;  %s196_s8 = int_to_ptr.vmem [resolvable:$true] %s195_s8  ;;  %s218_s11 = int_to_ptr.vmem [resolvable:$true] %s217_s11 }
  0x80   :  { %s4358_s15 = scalar_lea.hbm %s4891_s6, 16 }
  0x81   :  { %p4359_p4 = scmp.ne.s32.totalorder %s4891_s6, %s4358_s15  ;;  %p4362_p5 = scmp.lt.u32.totalorder %s4358_s15, %s4891_s6 }
  0x83   :  { %p4364_p6 = pnand %p4362_p5, %p4359_p4 }
  0x85   :  { %4367 = shalt.err (!%p4364_p6)
}
  0x86   :  { %s4368_s13 = scalar_lea.vmem %s196_s8, 16  ;;  %s4372_s16 = scalar_lea.vmem %s196_s8, 32 }
  0x87   :  { %p4369_p7 = scmp.ne.s32.totalorder %s196_s8, %s4368_s13  ;;  %p4373_p8 = scmp.lt.s32.totalorder %s196_s8, %s196_s8 }
  0x88   :  { %p4374_p9 = scmp.lt.s32.totalorder %s4372_s16, %s4368_s13 }
  0x8a   :  { %p4375_p10 = por %p4374_p9, %p4373_p8 }
  0x8c   :  { %p4376_p11 = pnand %p4375_p10, %p4369_p7 }
  0x8e   :  { %4379 = shalt.err (!%p4376_p11)
}
  0x8f   :  { %198 = dma.hbm_to_vmem [thread:$0]  %s4891_s6, 16, %s196_s8, [#allocation18]  }
  0x90   :  { %s4380_s24 = scalar_lea.hbm %s4901_s20, 16 }
  0x91   :  { %p4381_p12 = scmp.ne.s32.totalorder %s4901_s20, %s4380_s24  ;;  %p4384_p13 = scmp.lt.u32.totalorder %s4380_s24, %s4901_s20 }
  0x93   :  { %p4386_p0 = pnand %p4384_p13, %p4381_p12 }
  0x95   :  { %4389 = shalt.err (!%p4386_p0)
}
  0x96   :  { %s4390_s18 = scalar_lea.vmem %s218_s11, 16  ;;  %s4394_s22 = scalar_lea.vmem %s218_s11, 32 }
  0x97   :  { %p4391_p1 = scmp.ne.s32.totalorder %s218_s11, %s4390_s18  ;;  %p4395_p2 = scmp.lt.s32.totalorder %s218_s11, %s218_s11 }
  0x98   :  { %p4396_p3 = scmp.lt.s32.totalorder %s4394_s22, %s4390_s18 }
  0x9a   :  { %p4397_p4 = por %p4396_p3, %p4395_p2 }
  0x9c   :  { %p4398_p5 = pnand %p4397_p4, %p4391_p1 }
  0x9e   :  { %4401 = shalt.err (!%p4398_p5)
}
  0x9f   :  { %220 = dma.hbm_to_vmem [thread:$0]  %s4901_s20, 16, %s218_s11, [#allocation21]  }
  0xa0   :  { %s4795_s23 = smov [#allocation23]   ;;  %s4796_s26 = smov [#allocation26]  }
  0xa1   :  { %s239_s6 = sshll.u32 %s4795_s23, 4  ;;  %s265_s25 = sshll.u32 %s4796_s26, 4  ;;  %s240_s6 = int_to_ptr.vmem [resolvable:$true] %s239_s6  ;;  %s266_s25 = int_to_ptr.vmem [resolvable:$true] %s265_s25 }
  0xa2   :  { %s4402_s0 = scalar_lea.hbm %s4911_s4, 16 }
  0xa3   :  { %p4403_p6 = scmp.ne.s32.totalorder %s4911_s4, %s4402_s0  ;;  %p4406_p7 = scmp.lt.u32.totalorder %s4402_s0, %s4911_s4 }
  0xa5   :  { %p4408_p8 = pnand %p4406_p7, %p4403_p6 }
  0xa7   :  { %4411 = shalt.err (!%p4408_p8)
}
  0xa8   :  { %s4412_s28 = scalar_lea.vmem %s240_s6, 16  ;;  %s4416_s1 = scalar_lea.vmem %s240_s6, 32 }
  0xa9   :  { %p4413_p9 = scmp.ne.s32.totalorder %s240_s6, %s4412_s28  ;;  %p4417_p10 = scmp.lt.s32.totalorder %s240_s6, %s240_s6 }
  0xaa   :  { %p4418_p11 = scmp.lt.s32.totalorder %s4416_s1, %s4412_s28 }
  0xac   :  { %p4419_p12 = por %p4418_p11, %p4417_p10 }
  0xae   :  { %p4420_p13 = pnand %p4419_p12, %p4413_p9 }
  0xb0   :  { %4423 = shalt.err (!%p4420_p13)
}
  0xb1   :  { %242 = dma.hbm_to_vmem [thread:$0]  %s4911_s4, 16, %s240_s6, [#allocation24]  }
  0xb2   :  { %s4424_s20 = scalar_lea.hbm %s4936_s9, 16 }
  0xb3   :  { %p4425_p0 = scmp.ne.s32.totalorder %s4936_s9, %s4424_s20  ;;  %p4428_p1 = scmp.lt.u32.totalorder %s4424_s20, %s4936_s9 }
  0xb5   :  { %p4430_p2 = pnand %p4428_p1, %p4425_p0 }
  0xb7   :  { %4433 = shalt.err (!%p4430_p2)
}
  0xb8   :  { %s4434_s8 = scalar_lea.vmem %s266_s25, 16  ;;  %s4438_s10 = scalar_lea.vmem %s266_s25, 32 }
  0xb9   :  { %p4435_p3 = scmp.ne.s32.totalorder %s266_s25, %s4434_s8  ;;  %p4439_p4 = scmp.lt.s32.totalorder %s266_s25, %s266_s25 }
  0xba   :  { %p4440_p5 = scmp.lt.s32.totalorder %s4438_s10, %s4434_s8 }
  0xbc   :  { %p4441_p6 = por %p4440_p5, %p4439_p4 }
  0xbe   :  { %p4442_p7 = pnand %p4441_p6, %p4435_p3 }
  0xc0   :  { %4445 = shalt.err (!%p4442_p7)
}
  0xc1   :  { %268 = dma.hbm_to_vmem [thread:$0]  %s4936_s9, 16, %s266_s25, [#allocation27]  }
  0xc2   :  { %s4797_s11 = smov [#allocation29]   ;;  %s4798_s15 = smov [#allocation2]  }
  0xc3   :  { %s285_s4 = sshll.u32 %s4797_s11, 4  ;;  %s86_s13 = sshll.u32 %s4798_s15, 4  ;;  %s286_s4 = int_to_ptr.vmem [resolvable:$true] %s285_s4  ;;  %s5029_s13 = int_to_ptr.vmem [resolvable:$true] %s86_s13 }
  0xc4   :  { %s4446_s16 = scalar_lea.hbm %s4946_s29, 16 }
  0xc5   :  { %p4447_p8 = scmp.ne.s32.totalorder %s4946_s29, %s4446_s16  ;;  %p4450_p9 = scmp.lt.u32.totalorder %s4446_s16, %s4946_s29 }
  0xc7   :  { %p4452_p10 = pnand %p4450_p9, %p4447_p8 }
  0xc9   :  { %4455 = shalt.err (!%p4452_p10)
}
  0xca   :  { %s4456_s24 = scalar_lea.vmem %s286_s4, 16  ;;  %s4460_s18 = scalar_lea.vmem %s286_s4, 32 }
  0xcb   :  { %p4457_p11 = scmp.ne.s32.totalorder %s286_s4, %s4456_s24  ;;  %p4461_p12 = scmp.lt.s32.totalorder %s286_s4, %s286_s4 }
  0xcc   :  { %p4462_p13 = scmp.lt.s32.totalorder %s4460_s18, %s4456_s24 }
  0xce   :  { %p4463_p0 = por %p4462_p13, %p4461_p12 }
  0xd0   :  { %p4464_p1 = pnand %p4463_p0, %p4457_p11 }
  0xd2   :  { %4467 = shalt.err (!%p4464_p1)
}
  0xd3   :  { %288 = dma.hbm_to_vmem [thread:$0]  %s4946_s29, 16, %s286_s4, [#allocation30]  }
  0xd4   :  { %s4468_s9 = scalar_lea.hbm %s4826_s5, 256 }
  0xd5   :  { %p4469_p2 = scmp.ne.s32.totalorder %s4826_s5, %s4468_s9  ;;  %p4472_p3 = scmp.lt.u32.totalorder %s4468_s9, %s4826_s5 }
  0xd7   :  { %p4474_p4 = pnand %p4472_p3, %p4469_p2 }
  0xd9   :  { %4477 = shalt.err (!%p4474_p4)
}
  0xda   :  { %s4478_s22 = scalar_lea.vmem %s5029_s13, 256  ;;  %p4483_p6 = scmp.lt.s32.totalorder %s5029_s13, %s5029_s13 }
  0xdb   :  { %p4479_p5 = scmp.ne.s32.totalorder %s5029_s13, %s4478_s22  ;;  %p4484_p7 = scmp.lt.s32.totalorder %s4478_s22, %s4478_s22 }
  0xdd   :  { %p4485_p8 = por %p4484_p7, %p4483_p6 }
  0xdf   :  { %p4486_p9 = pnand %p4485_p8, %p4479_p5 }
  0xe1   :  { %4489 = shalt.err (!%p4486_p9)
}
  0xe2   :  { %92 = dma.hbm_to_vmem [thread:$0]  %s4826_s5, 256, %s5029_s13, [#allocation3], %s4789_s2, %s4789_s2, %s4790_s7  }
  0xe3   :  { %s4799_s29 = smov [#allocation7]   ;;  %s4800_s6 = smov [#allocation10]  }
  0xe4   :  { %s112_s23 = sshll.u32 %s4799_s29, 4  ;;  %s139_s26 = sshll.u32 %s4800_s6, 4  ;;  %s113_s23 = int_to_ptr.vmem [resolvable:$true] %s112_s23  ;;  %s140_s26 = int_to_ptr.vmem [resolvable:$true] %s139_s26 }
  0xe5   :  { %s4490_s25 = scalar_lea.hbm %s4841_s17, 256 }
  0xe6   :  { %p4491_p10 = scmp.ne.s32.totalorder %s4841_s17, %s4490_s25  ;;  %p4494_p11 = scmp.lt.u32.totalorder %s4490_s25, %s4841_s17 }
  0xe8   :  { %p4496_p12 = pnand %p4494_p11, %p4491_p10 }
  0xea   :  { %4499 = shalt.err (!%p4496_p12)
}
  0xeb   :  { %s4500_s0 = scalar_lea.vmem %s113_s23, 256  ;;  %p4505_p0 = scmp.lt.s32.totalorder %s113_s23, %s113_s23 }
  0xec   :  { %p4501_p13 = scmp.ne.s32.totalorder %s113_s23, %s4500_s0  ;;  %p4506_p1 = scmp.lt.s32.totalorder %s4500_s0, %s4500_s0 }
  0xee   :  { %p4507_p2 = por %p4506_p1, %p4505_p0 }
  0xf0   :  { %p4508_p3 = pnand %p4507_p2, %p4501_p13 }
  0xf2   :  { %4511 = shalt.err (!%p4508_p3)
}
  0xf3   :  { %118 = dma.hbm_to_vmem [thread:$0]  %s4841_s17, 256, %s113_s23, [#allocation6], %s4789_s2, %s4789_s2, %s4790_s7  }
  0xf4   :  { %s4512_s5 = scalar_lea.hbm %s4861_s3, 16 }
  0xf5   :  { %p4513_p4 = scmp.ne.s32.totalorder %s4861_s3, %s4512_s5  ;;  %p4516_p5 = scmp.lt.u32.totalorder %s4512_s5, %s4861_s3 }
  0xf7   :  { %p4518_p6 = pnand %p4516_p5, %p4513_p4 }
  0xf9   :  { %4521 = shalt.err (!%p4518_p6)
}
  0xfa   :  { %s4522_s28 = scalar_lea.vmem %s140_s26, 16  ;;  %s4526_s1 = scalar_lea.vmem %s140_s26, 32 }
  0xfb   :  { %p4523_p7 = scmp.ne.s32.totalorder %s140_s26, %s4522_s28  ;;  %p4527_p8 = scmp.lt.s32.totalorder %s140_s26, %s140_s26 }
  0xfc   :  { %p4528_p9 = scmp.lt.s32.totalorder %s4526_s1, %s4522_s28 }
  0xfe   :  { %p4529_p10 = por %p4528_p9, %p4527_p8 }
 0x100   :  { %p4530_p11 = pnand %p4529_p10, %p4523_p7 }
 0x102   :  { %4533 = shalt.err (!%p4530_p11)
}
 0x103   :  { %142 = dma.hbm_to_vmem [thread:$0]  %s4861_s3, 16, %s140_s26, [#allocation9]  }
 0x104   :  { %s4801_s20 = smov [#allocation13]   ;;  %s4802_s8 = smov [#allocation16]  }
 0x105   :  { %s161_s17 = sshll.u32 %s4801_s20, 4  ;;  %s182_s10 = sshll.u32 %s4802_s8, 4  ;;  %s162_s17 = int_to_ptr.vmem [resolvable:$true] %s161_s17  ;;  %s5058_s10 = int_to_ptr.vmem [resolvable:$true] %s182_s10 }
 0x106   :  { %s4534_s11 = scalar_lea.hbm %s4871_s14, 16 }
 0x107   :  { %p4535_p12 = scmp.ne.s32.totalorder %s4871_s14, %s4534_s11  ;;  %p4538_p13 = scmp.lt.u32.totalorder %s4534_s11, %s4871_s14 }
 0x109   :  { %p4540_p0 = pnand %p4538_p13, %p4535_p12 }
 0x10b   :  { %4543 = shalt.err (!%p4540_p0)
}
 0x10c   :  { %s4544_s4 = scalar_lea.vmem %s162_s17, 16  ;;  %s4548_s15 = scalar_lea.vmem %s162_s17, 32 }
 0x10d   :  { %p4545_p1 = scmp.ne.s32.totalorder %s162_s17, %s4544_s4  ;;  %p4549_p2 = scmp.lt.s32.totalorder %s162_s17, %s162_s17 }
 0x10e   :  { %p4550_p3 = scmp.lt.s32.totalorder %s4548_s15, %s4544_s4 }
 0x110   :  { %p4551_p4 = por %p4550_p3, %p4549_p2 }
 0x112   :  { %p4552_p5 = pnand %p4551_p4, %p4545_p1 }
 0x114   :  { %4555 = shalt.err (!%p4552_p5)
}
 0x115   :  { %164 = dma.hbm_to_vmem [thread:$0]  %s4871_s14, 16, %s162_s17, [#allocation12]  }
 0x116   :  { %s4556_s3 = scalar_lea.hbm %s4886_s30, 512 }
 0x117   :  { %p4557_p6 = scmp.ne.s32.totalorder %s4886_s30, %s4556_s3  ;;  %p4560_p7 = scmp.lt.u32.totalorder %s4556_s3, %s4886_s30 }
 0x119   :  { %p4562_p8 = pnand %p4560_p7, %p4557_p6 }
 0x11b   :  { %4565 = shalt.err (!%p4562_p8)
}
 0x11c   :  { %s4566_s13 = scalar_lea.vmem %s5058_s10, 512  ;;  %p4571_p10 = scmp.lt.s32.totalorder %s5058_s10, %s5058_s10 }
 0x11d   :  { %p4567_p9 = scmp.ne.s32.totalorder %s5058_s10, %s4566_s13  ;;  %p4572_p11 = scmp.lt.s32.totalorder %s4566_s13, %s4566_s13 }
 0x11f   :  { %p4573_p12 = por %p4572_p11, %p4571_p10 }
 0x121   :  { %p4574_p13 = pnand %p4573_p12, %p4567_p9 }
 0x123   :  { %4577 = shalt.err (!%p4574_p13)
}
 0x124   :  { %s5613_s14 = sld [smem:[#allocation51_spill]]  ;;  %s4803_s16 = smov [#allocation19]  }
 0x125   :  { %188 = dma.hbm_to_vmem [thread:$0]  %s4886_s30, 512, %s5058_s10, [#allocation15], %s4789_s2, %s4789_s2, %s4790_s7  }
 0x126   :  { %s204_s24 = sshll.u32 %s4803_s16, 4  ;;  %s4804_s18 = smov [#allocation22]   ;;  %s205_s24 = int_to_ptr.vmem [resolvable:$true] %s204_s24 }
 0x127   :  { %s226_s9 = sshll.u32 %s4804_s18, 4  ;;  %s5076_s9 = int_to_ptr.vmem [resolvable:$true] %s226_s9 }
 0x12a   :  { %s4578_s22 = scalar_lea.hbm %s5613_s14, 512 }
 0x12b   :  { %p4579_p0 = scmp.ne.s32.totalorder %s5613_s14, %s4578_s22  ;;  %p4582_p1 = scmp.lt.u32.totalorder %s4578_s22, %s5613_s14 }
 0x12d   :  { %p4584_p2 = pnand %p4582_p1, %p4579_p0 }
 0x12f   :  { %4587 = shalt.err (!%p4584_p2)
}
 0x130   :  { %s4588_s29 = scalar_lea.vmem %s205_s24, 512  ;;  %p4593_p4 = scmp.lt.s32.totalorder %s205_s24, %s205_s24 }
 0x131   :  { %p4589_p3 = scmp.ne.s32.totalorder %s205_s24, %s4588_s29  ;;  %p4594_p5 = scmp.lt.s32.totalorder %s4588_s29, %s4588_s29 }
 0x133   :  { %p4595_p6 = por %p4594_p5, %p4593_p4 }
 0x135   :  { %p4596_p7 = pnand %p4595_p6, %p4589_p3 }
 0x137   :  { %4599 = shalt.err (!%p4596_p7)
}
 0x138   :  { %s5614_s30 = sld [smem:[#allocation52_spill]] }
 0x139   :  { %210 = dma.hbm_to_vmem [thread:$0]  %s5613_s14, 512, %s205_s24, [#allocation18], %s4789_s2, %s4789_s2, %s4790_s7  }
 0x13e   :  { %s4600_s23 = scalar_lea.hbm %s5614_s30, 512 }
 0x13f   :  { %p4601_p8 = scmp.ne.s32.totalorder %s5614_s30, %s4600_s23  ;;  %p4604_p9 = scmp.lt.u32.totalorder %s4600_s23, %s5614_s30 }
 0x141   :  { %p4606_p10 = pnand %p4604_p9, %p4601_p8 }
 0x143   :  { %4609 = shalt.err (!%p4606_p10)
}
 0x144   :  { %s4610_s6 = scalar_lea.vmem %s5076_s9, 512  ;;  %p4615_p12 = scmp.lt.s32.totalorder %s5076_s9, %s5076_s9 }
 0x145   :  { %p4611_p11 = scmp.ne.s32.totalorder %s5076_s9, %s4610_s6  ;;  %p4616_p13 = scmp.lt.s32.totalorder %s4610_s6, %s4610_s6 }
 0x147   :  { %p4617_p0 = por %p4616_p13, %p4615_p12 }
 0x149   :  { %p4618_p1 = pnand %p4617_p0, %p4611_p11 }
 0x14b   :  { %4621 = shalt.err (!%p4618_p1)
}
 0x14c   :  { %s5615_s26 = sld [smem:[#allocation56_spill]]  ;;  %s4805_s25 = smov [#allocation25]  }
 0x14d   :  { %232 = dma.hbm_to_vmem [thread:$0]  %s5614_s30, 512, %s5076_s9, [#allocation21], %s4789_s2, %s4789_s2, %s4790_s7  }
 0x14e   :  { %s255_s0 = sshll.u32 %s4805_s25, 4  ;;  %s4806_s5 = smov [#allocation28]   ;;  %s256_s0 = int_to_ptr.vmem [resolvable:$true] %s255_s0 }
 0x14f   :  { %s275_s28 = sshll.u32 %s4806_s5, 4  ;;  %s276_s28 = int_to_ptr.vmem [resolvable:$true] %s275_s28 }
 0x152   :  { %s4622_s1 = scalar_lea.hbm %s5615_s26, 16 }
 0x153   :  { %p4623_p2 = scmp.ne.s32.totalorder %s5615_s26, %s4622_s1  ;;  %p4626_p3 = scmp.lt.u32.totalorder %s4622_s1, %s5615_s26 }
 0x155   :  { %p4628_p4 = pnand %p4626_p3, %p4623_p2 }
 0x157   :  { %4631 = shalt.err (!%p4628_p4)
}
 0x158   :  { %s4632_s20 = scalar_lea.vmem %s256_s0, 16  ;;  %s4636_s17 = scalar_lea.vmem %s256_s0, 32 }
 0x159   :  { %p4633_p5 = scmp.ne.s32.totalorder %s256_s0, %s4632_s20  ;;  %p4637_p6 = scmp.lt.s32.totalorder %s256_s0, %s256_s0 }
 0x15a   :  { %p4638_p7 = scmp.lt.s32.totalorder %s4636_s17, %s4632_s20 }
 0x15c   :  { %p4639_p8 = por %p4638_p7, %p4637_p6 }
 0x15e   :  { %p4640_p9 = pnand %p4639_p8, %p4633_p5 }
 0x160   :  { %4643 = shalt.err (!%p4640_p9)
}
 0x161   :  { %s5616_s8 = sld [smem:[#allocation57_spill]] }
 0x162   :  { %258 = dma.hbm_to_vmem [thread:$0]  %s5615_s26, 16, %s256_s0, [#allocation24]  }
 0x167   :  { %s4644_s10 = scalar_lea.hbm %s5616_s8, 16 }
 0x168   :  { %p4645_p10 = scmp.ne.s32.totalorder %s5616_s8, %s4644_s10  ;;  %p4648_p11 = scmp.lt.u32.totalorder %s4644_s10, %s5616_s8 }
 0x16a   :  { %p4650_p12 = pnand %p4648_p11, %p4645_p10 }
 0x16c   :  { %4653 = shalt.err (!%p4650_p12)
}
 0x16d   :  { %s4654_s11 = scalar_lea.vmem %s276_s28, 16  ;;  %s4658_s4 = scalar_lea.vmem %s276_s28, 32 }
 0x16e   :  { %p4655_p13 = scmp.ne.s32.totalorder %s276_s28, %s4654_s11  ;;  %p4659_p0 = scmp.lt.s32.totalorder %s276_s28, %s276_s28 }
 0x16f   :  { %p4660_p1 = scmp.lt.s32.totalorder %s4658_s4, %s4654_s11 }
 0x171   :  { %p4661_p2 = por %p4660_p1, %p4659_p0 }
 0x173   :  { %p4662_p3 = pnand %p4661_p2, %p4655_p13 }
 0x175   :  { %4665 = shalt.err (!%p4662_p3)
}
 0x176   :  { %s5617_s15 = sld [smem:[#allocation58_spill]]  ;;  %s4807_s3 = smov [#allocation31]  }
 0x177   :  { %278 = dma.hbm_to_vmem [thread:$0]  %s5616_s8, 16, %s276_s28, [#allocation27]  }
 0x178   :  { %s295_s13 = sshll.u32 %s4807_s3, 4  ;;  %s296_s13 = int_to_ptr.vmem [resolvable:$true] %s295_s13 }
 0x17c   :  { %s4666_s14 = scalar_lea.hbm %s5617_s15, 16 }
 0x17d   :  { %p4667_p4 = scmp.ne.s32.totalorder %s5617_s15, %s4666_s14  ;;  %p4670_p5 = scmp.lt.u32.totalorder %s4666_s14, %s5617_s15 }
 0x17f   :  { %p4672_p6 = pnand %p4670_p5, %p4667_p4 }
 0x181   :  { %4675 = shalt.err (!%p4672_p6)
}
 0x182   :  { %s4676_s16 = scalar_lea.vmem %s296_s13, 16  ;;  %s4680_s24 = scalar_lea.vmem %s296_s13, 32 }
 0x183   :  { %p4677_p7 = scmp.ne.s32.totalorder %s296_s13, %s4676_s16  ;;  %p4681_p8 = scmp.lt.s32.totalorder %s296_s13, %s296_s13 }
 0x184   :  { %p4682_p9 = scmp.lt.s32.totalorder %s4680_s24, %s4676_s16 }
 0x186   :  { %p4683_p10 = por %p4682_p9, %p4681_p8 }
 0x188   :  { %p4684_p11 = pnand %p4683_p10, %p4677_p7 }
 0x18a   :  { %4687 = shalt.err (!%p4684_p11)
}
 0x18b   :  { %298 = dma.hbm_to_vmem [thread:$0]  %s5617_s15, 16, %s296_s13, [#allocation30]  }
 0x18c   :  { %4732 = dma.done.wait [#allocation3], 256  }
 0x18d   :  { %4733 = vsyncadd [#allocation3], 4294967040 }
 0x18e   :  { %4734 = dma.done.wait [#allocation6], 512  }
 0x18f   :  { %4735 = vsyncadd [#allocation6], 4294966784 }
 0x190   :  { %4736 = dma.done.wait [#allocation9], 32  }
 0x191   :  { %4737 = vsyncadd [#allocation9], 4294967264 }
 0x192   :  { %4738 = dma.done.wait [#allocation12], 528  }
 0x193   :  { %4739 = vsyncadd [#allocation12], 4294966768 }
 0x194   :  { %4740 = dma.done.wait [#allocation15], 528  }
 0x195   :  { %4741 = vsyncadd [#allocation15], 4294966768 }
 0x196   :  { %4742 = dma.done.wait [#allocation18], 528  }
 0x197   :  { %4743 = vsyncadd [#allocation18], 4294966768 }
 0x198   :  { %4744 = dma.done.wait [#allocation21], 528  }
 0x199   :  { %4745 = vsyncadd [#allocation21], 4294966768 }
 0x19a   :  { %4746 = dma.done.wait [#allocation24], 32  }
 0x19b   :  { %4747 = vsyncadd [#allocation24], 4294967264 }
 0x19c   :  { %4748 = dma.done.wait [#allocation27], 32  }
 0x19d   :  { %4749 = vsyncadd [#allocation27], 4294967264 }
 0x19e   :  { %4750 = dma.done.wait [#allocation30], 32  }
 0x19f   :  { %4751 = vsyncadd [#allocation30], 4294967264  ;;  %s5618_s18 = sld [smem:[#allocation48_spill]]  ;;  %s5619_s9 = sld [smem:[#allocation49_spill]]  ;;  %vm385_vm0 = vcmask 261120   ;;  %v5113_v5 = vld [vmem:[#allocation2] sm:$0xff] }
 0x1a0   :  { %3566 = vmatprep.mubr.msk.f32.mxu1 %vm385_vm0, %v5113_v5  ;;  %3588 = vmatprep.mubr.msk.f32.mxu0 %vm385_vm0, %v5113_v5  ;;  %v5123_v12 = vld [vmem:[#allocation2 + $0x8] sm:$0xff]  ;;  %v3314_v14 = vld [vmem:[#allocation8] ss:$0 sm:$0xff]  ;;  %vm639_vm1 = vcmask 64512   ;;  %s4808_s22 = smov 120   ;;  %v553_v27 = vld [vmem:[#allocation11] sm:$0xff] }
 0x1a1   :  { %v3317_v19 = vld [vmem:[#allocation10] ss:$0 sm:$0xff]  ;;  %vm5145_vm2 = vmpackc.low %vm639_vm1, %vm639_vm1  ;;  %v554_v28 = vld [vmem:[#allocation11 + $0x8] sm:$0xff]  ;;  %vm727_vm3 = vcmask 130048   ;;  %s4809_s29 = smov 112   ;;  %s4810_s30 = smov 104  }
 0x1a2   :  { %v555_v29 = vld [vmem:[#allocation11 + $0x10] sm:$0xff]  ;;  %v3842_v30 = vpack.c.bf16 %v554_v28, %v553_v27  ;;  %v556_v31 = vld [vmem:[#allocation11 + $0x18] sm:$0xff]  ;;  %v5173_v39 = vld [vmem:[#allocation5 + $0x8] sm:$0xff]  ;;  %s4811_s23 = smov 16   ;;  %s5622_s6 = sld [smem:[#allocation50_spill]]  ;;  %vm1461_vm4 = vcmask 195584  }
 0x1a3   :  { %v3846_v32 = vpack.c.bf16 %v556_v31, %v555_v29  ;;  %v5175_v40 = vld [vmem:[#allocation5] sm:$0xff]  ;;  %s4812_s26 = smov 24   ;;  %s5623_s25 = sld [smem:[#allocation47_spill]]  ;;  %vm3068_vm7 = vcmask 523264  }
 0x1a4   :  { %3843 = vmatprep.subr.bf16.mxu0 %v3842_v30  ;;  %s5624_s0 = sld [smem:[#allocation55_spill]]  ;;  %s5625_s5 = sld [smem:[#allocation53_spill]] }
 0x1a5   :  { %v374_v0 = vld [vmem:[%s5618_s18] sm:$0xff]  ;;  %v375_v1 = vld [vmem:[%s5618_s18 + $0x8] sm:$0xff]  ;;  %v376_v2 = vld [vmem:[%s5618_s18 + $0x10] sm:$0xff]  ;;  %3845 = vmatpush3.bf16.msra.mxu0 %v3842_v30  ;;  %s5626_s28 = sld [smem:[#allocation54_spill]]  ;;  %s5627_s1 = sld [smem:[#allocation59_spill]] }
 0x1a6   :  { %v3826_v3 = vpack.c.bf16 %v375_v1, %v374_v0  ;;  %v377_v4 = vld [vmem:[%s5618_s18 + $0x18] sm:$0xff]  ;;  %v467_v7 = vld [vmem:[%s5619_s9] sm:$0xff]  ;;  %v468_v8 = vld [vmem:[%s5619_s9 + $0x8] sm:$0xff]  ;;  %3847 = vmatprep.subr.bf16.mxu0 %v3846_v32  ;;  %s5628_s20 = sld [smem:[#allocation60_spill]]  ;;  %s4815_s17 = smov 64  }
 0x1a7   :  { %v3830_v6 = vpack.c.bf16 %v377_v4, %v376_v2  ;;  %v3834_v9 = vpack.c.bf16 %v468_v8, %v467_v7  ;;  %v469_v10 = vld [vmem:[%s5619_s9 + $0x10] sm:$0xff]  ;;  %v470_v11 = vld [vmem:[%s5619_s9 + $0x18] sm:$0xff] }
 0x1a8   :  { %3827 = vmatprep.subr.bf16.mxu1 %v3826_v3  ;;  %v3838_v13 = vpack.c.bf16 %v470_v11, %v469_v10  ;;  %v3320_v1 = vld [vmem:[#allocation13] ss:$0 sm:$0xff] }
 0x1a9   :  { %3829 = vmatpush3.bf16.msra.mxu1 %v3826_v3  ;;  %3849 = vmatpush3.bf16.msra.mxu0 %v3846_v32 }
 0x1aa   :  { %3831 = vmatprep.subr.bf16.mxu1 %v3830_v6 }
 0x1ac   :  { %3589 = vmatmul.mubr.msk.f32.vlgmr.msra.gmra.mrb[0].mxu0 %vm385_vm0, %v5123_v12 }
 0x1ad   :  { %3833 = vmatpush3.bf16.msra.mxu1 %v3830_v6 }
 0x1ae   :  { %3835 = vmatprep.subr.bf16.mxu1 %v3834_v9 }
 0x1b0   :  { %3567 = vmatmul.mubr.msk.f32.vlgmr.msra.gmra.mrb[0].mxu1 %vm385_vm0, %v5123_v12 }
 0x1b1   :  { %3837 = vmatpush3.bf16.msra.mxu1 %v3834_v9  ;;  %3577 = vmatprep.mubr.msk.f32.mxu1 %vm385_vm0, %v5113_v5 }
 0x1b2   :  { %3839 = vmatprep.subr.bf16.mxu1 %v3838_v13 }
 0x1b5   :  { %3841 = vmatpush3.bf16.msra.mxu1 %v3838_v13 }
 0x1b8   :  { %3578 = vmatmul.mubr.msk.f32.vlgmr.msra.gmra.mrb[2].mxu1 %vm385_vm0, %v5123_v12 }
 0x27f   :  { %v3590_v59 = vpop.f32.mrb[0].mxu0 }
 0x280   :  { %v630_v0 = vpop.f32.mrb[1].mxu0  ;;  %v5187_v2 = vadd.f32 %v3590_v59, %v3320_v1 }
 0x281   :  { %v5189_v3 = vadd.f32 %v3320_v1, %v630_v0 }
 0x283   :  { %v3568_v15 = vpop.f32.mrb[0].mxu1  ;;  %v3856_v4 = vpack.c.bf16 %v5187_v2, %v5189_v3 }
 0x284   :  { %v5131_v16 = vadd.f32 %v3568_v15, %v3314_v14  ;;  %v458_v17 = vpop.f32.mrb[1].mxu1 }
 0x285   :  { %v5133_v18 = vadd.f32 %v3314_v14, %v458_v17  ;;  %3857 = vmatprep.subr.bf16.mxu0 %v3856_v4 }
 0x286   :  { %833 = vrot.lane.b32.xlu1 %v5131_v16, %s4808_s22  ;;  %3859 = vmatpush3.bf16.msra.mxu0 %v3856_v4 }
 0x287   :  { %3595 = vmatprep.mubr.msk.f32.mxu1 %vm639_vm1, %v5133_v18 }
 0x28b   :  { %v3579_v20 = vpop.f32.mrb[2].mxu1 }
 0x28c   :  { %v5139_v21 = vadd.f32 %v3579_v20, %v3317_v19  ;;  %v544_v22 = vpop.f32.mrb[3].mxu1 }
 0x28d   :  { %v5141_v23 = vadd.f32 %v3317_v19, %v544_v22  ;;  %v5199_v19 = vpack.i.bf16 %v5187_v2, %v5189_v3 }
 0x28f   :  { %v5151_v25 = vpack.i.bf16 %v5139_v21, %v5141_v23  ;;  %v3850_v26 = vpack.c.bf16 %v5139_v21, %v5141_v23 }
 0x291   :  { %4097 = vrot.lane.b32.xlu0 %v5151_v25, %s4808_s22  ;;  %3852 = vmatprep.subr.msk.bf16.mxu1 %vm5145_vm2, %v3850_v26 }
 0x292   :  { %3855 = vmatpush3.bf16.xpose.msk.msra.mxu1 %vm5145_vm2, %v3850_v26 }
 0x295   :  { %831 = vrot.lane.b32.xlu0 %v5133_v18, %s4808_s22 }
 0x299   :  { %3596 = vmatmul.mubr.msk.f32.vlgmr.msra.gmra.mrb[4].mxu1 %vm639_vm1, %v5131_v16 }
 0x2f8   :  { %v834_v38 = vpop.permute.xlu1 %833 }
 0x303   :  { %v4098_v33 = vpop.permute.xlu0 %4097 }
 0x304   :  { %v4100_v34 = vunpack.i.h.bf16 %v4098_v33  ;;  %v4099_v35 = vunpack.i.l.bf16 %v4098_v33 }
 0x306   :  { %v3860_v36 = vpack.c.bf16 %v4100_v34, %v4099_v35 }
 0x307   :  { %v832_v37 = vpop.permute.xlu0 %831 }
 0x308   :  { %3862 = vmatprep.subr.msk.bf16.mxu1 %vm5145_vm2, %v3860_v36  ;;  %3609 = vmatprep.mubr.msk.f32.mxu1 %vm639_vm1, %v832_v37 }
 0x309   :  { %3865 = vmatpush3.bf16.xpose.msk.msra.mxu1 %vm5145_vm2, %v3860_v36 }
 0x310   :  { %3610 = vmatmul.mubr.msk.f32.vlgmr.msra.gmra.mrb[6].mxu1 %vm639_vm1, %v834_v38 }
 0x36c   :  { %v3597_v41 = vpop.f32.mrb[4].mxu1 }
 0x36d   :  { %v724_v42 = vadd.f32 %v3597_v41, %v5173_v39  ;;  %v718_v43 = vpop.f32.mrb[5].mxu1 }
 0x36e   :  { %v719_v44 = vadd.f32 %v718_v43, %v5175_v40 }
 0x36f   :  { %v731_v45 = vsel %vm727_vm3, %v724_v42, -inf }
 0x370   :  { %732 = vmax.xlane.f32.xlu0 %v731_v45  ;;  %v728_v46 = vsel %vm727_vm3, %v719_v44, -inf }
 0x371   :  { %729 = vmax.xlane.f32.xlu1 %v728_v46 }
 0x3e3   :  { %v3611_v47 = vpop.f32.mrb[6].mxu1 }
 0x3e4   :  { %v919_v48 = vadd.f32 %v3611_v47, %v5173_v39  ;;  %v913_v49 = vpop.f32.mrb[7].mxu1 }
 0x3e5   :  { %v914_v50 = vadd.f32 %v913_v49, %v5175_v40 }
 0x3e6   :  { %v925_v51 = vsel %vm727_vm3, %v919_v48, -inf }
 0x3e7   :  { %926 = vmax.xlane.f32.xlu1 %v925_v51  ;;  %v922_v52 = vsel %vm727_vm3, %v914_v50, -inf }
 0x3e8   :  { %923 = vmax.xlane.f32.xlu0 %v922_v52 }
 0x3fd   :  { %v733_v53 = vpop.xlane.xlu0 %732 }
 0x3fe   :  { %v735_v54 = vsub.f32 %v724_v42, %v733_v53  ;;  %v730_v55 = vpop.xlane.xlu1 %729 }
 0x3ff   :  { %v734_v56 = vsub.f32 %v719_v44, %v730_v55 }
 0x400   :  { %v738_v57 = vmul.f32 1.442695, %v735_v54 }
 0x401   :  { %v736_v58 = vmul.f32 1.442695, %v734_v56 }
 0x402   :  { %4186 = vpow2.f32 %v738_v57 }
 0x403   :  { %4188 = vpow2.f32 %v736_v58 }
 0x40c   :  { %v4187_v60 = vpop.eup %4186 }
 0x40d   :  { %v4189_v61 = vpop.eup %4188  ;;  %v743_v62 = vsel %vm727_vm3, %v4187_v60, 0.0 }
 0x40e   :  { %744 = vadd.xlane.f32.xlu1 %v743_v62  ;;  %v740_v63 = vsel %vm727_vm3, %v4189_v61, 0.0 }
 0x40f   :  { %741 = vadd.xlane.f32.xlu0 %v740_v63 }
 0x474   :  { %v927_v6 = vpop.xlane.xlu1 %926 }
 0x475   :  { %v929_v7 = vsub.f32 %v919_v48, %v927_v6  ;;  %v924_v8 = vpop.xlane.xlu0 %923 }
 0x476   :  { %v928_v9 = vsub.f32 %v914_v50, %v924_v8 }
 0x477   :  { %v932_v10 = vmul.f32 1.442695, %v929_v7 }
 0x478   :  { %v930_v11 = vmul.f32 1.442695, %v928_v9 }
 0x479   :  { %4190 = vpow2.f32 %v932_v10 }
 0x47a   :  { %4192 = vpow2.f32 %v930_v11 }
 0x483   :  { %v4191_v13 = vpop.eup %4190 }
 0x484   :  { %v4193_v14 = vpop.eup %4192  ;;  %v937_v15 = vsel %vm727_vm3, %v4191_v13, 0.0 }
 0x485   :  { %938 = vadd.xlane.f32.xlu1 %v937_v15  ;;  %v934_v17 = vsel %vm727_vm3, %v4193_v14, 0.0 }
 0x486   :  { %935 = vadd.xlane.f32.xlu0 %v934_v17 }
 0x496   :  { %4107 = vrot.lane.b32.xlu1 %v5151_v25, %s4809_s29 }
 0x49a   :  { %1033 = vrot.lane.b32.xlu1 %v5133_v18, %s4809_s29 }
 0x49b   :  { %v745_v20 = vpop.xlane.xlu1 %744 }
 0x49c   :  { %4194 = vrcp.f32 %v745_v20  ;;  %4102 = vrot.lane.b32.xlu0 %v5199_v19, %s4808_s22  ;;  %v742_v22 = vpop.xlane.xlu0 %741 }
 0x49d   :  { %4196 = vrcp.f32 %v742_v22 }
 0x4a0   :  { %1035 = vrot.lane.b32.xlu0 %v5131_v16, %s4809_s29 }
 0x4a6   :  { %v4195_v26 = vpop.eup %4194 }
 0x4a7   :  { %v4197_v27 = vpop.eup %4196  ;;  %v749_v29 = vmul.f32 %v4195_v26, %v4187_v60 }
 0x4a8   :  { %v748_v28 = vmul.f32 %v4197_v27, %v4189_v61 }
 0x4aa   :  { %3602 = vmatprep.mubr.msk.f32.mxu0 %vm727_vm3, %v748_v28 }
 0x4ab   :  { %3603 = vmatmul.mubr.msk.f32.vlgmr.msra.gmra.mrb[2].mxu0 %vm727_vm3, %v749_v29 }
 0x512   :  { %v939_v30 = vpop.xlane.xlu1 %938 }
 0x513   :  { %4198 = vrcp.f32 %v939_v30  ;;  %v936_v31 = vpop.xlane.xlu0 %935 }
 0x514   :  { %4200 = vrcp.f32 %v936_v31 }
 0x516   :  { %v4108_v32 = vpop.permute.xlu1 %4107 }
 0x517   :  { %v4103_v33 = vpop.permute.xlu0 %4102  ;;  %v4110_v34 = vunpack.i.h.bf16 %v4108_v32  ;;  %v4109_v35 = vunpack.i.l.bf16 %v4108_v32 }
 0x518   :  { %v4105_v36 = vunpack.i.h.bf16 %v4103_v33  ;;  %v4104_v37 = vunpack.i.l.bf16 %v4103_v33 }
 0x519   :  { %v3870_v41 = vpack.c.bf16 %v4110_v34, %v4109_v35 }
 0x51a   :  { %v3866_v38 = vpack.c.bf16 %v4105_v36, %v4104_v37  ;;  %v1034_v46 = vpop.permute.xlu1 %1033 }
 0x51b   :  { %v1036_v47 = vpop.permute.xlu0 %1035 }
 0x51c   :  { %3867 = vmatprep.subr.bf16.mxu0 %v3866_v38 }
 0x51d   :  { %v4199_v42 = vpop.eup %4198  ;;  %3869 = vmatpush3.bf16.msra.mxu0 %v3866_v38 }
 0x51e   :  { %v4201_v43 = vpop.eup %4200  ;;  %3872 = vmatprep.subr.msk.bf16.mxu0 %vm5145_vm2, %v3870_v41  ;;  %v943_v45 = vmul.f32 %v4199_v42, %v4191_v13 }
 0x51f   :  { %v942_v44 = vmul.f32 %v4201_v43, %v4193_v14 }
 0x521   :  { %3616 = vmatprep.mubr.msk.f32.mxu0 %vm727_vm3, %v942_v44 }
 0x522   :  { %3617 = vmatmul.mubr.msk.f32.vlgmr.msra.gmra.mrb[4].mxu0 %vm727_vm3, %v943_v45 }
 0x523   :  { %3623 = vmatprep.mubr.msk.f32.mxu0 %vm639_vm1, %v1034_v46 }
 0x526   :  { %3875 = vmatpush3.bf16.xpose.msk.msra.mxu0 %vm5145_vm2, %v3870_v41 }
 0x52d   :  { %3624 = vmatmul.mubr.msk.f32.vlgmr.msra.gmra.mrb[6].mxu0 %vm639_vm1, %v1036_v47 }
 0x57e   :  { %v5217_v48 = vpop.f32.mrb[2].mxu0 }
 0x57f   :  { %v5219_v49 = vpop.f32.mrb[3].mxu0 }
 0x5f5   :  { %v5221_v50 = vpop.f32.mrb[4].mxu0 }
 0x5f6   :  { %v5223_v51 = vpop.f32.mrb[5].mxu0 }
 0x600   :  { %v3625_v52 = vpop.f32.mrb[6].mxu0 }
 0x601   :  { %v1121_v53 = vadd.f32 %v3625_v52, %v5173_v39  ;;  %v1115_v54 = vpop.f32.mrb[7].mxu0 }
 0x602   :  { %v1116_v55 = vadd.f32 %v1115_v54, %v5175_v40 }
 0x603   :  { %v1127_v56 = vsel %vm727_vm3, %v1121_v53, -inf }
 0x604   :  { %1128 = vmax.xlane.f32.xlu0 %v1127_v56  ;;  %v1124_v57 = vsel %vm727_vm3, %v1116_v55, -inf }
 0x605   :  { %1125 = vmax.xlane.f32.xlu1 %v1124_v57  ;;  %v1464_v57 = vld [vmem:[%s5622_s6] sm:$0xff] }
 0x691   :  { %v1129_v58 = vpop.xlane.xlu0 %1128 }
 0x692   :  { %v1131_v59 = vsub.f32 %v1121_v53, %v1129_v58  ;;  %v1126_v60 = vpop.xlane.xlu1 %1125  ;;  %v1465_v58 = vld [vmem:[%s5622_s6 + $0x8] sm:$0xff] }
 0x693   :  { %v1130_v61 = vsub.f32 %v1116_v55, %v1126_v60  ;;  %v3890_v60 = vpack.c.bf16 %v1465_v58, %v1464_v57 }
 0x694   :  { %v1134_v62 = vmul.f32 1.442695, %v1131_v59  ;;  %v1466_v59 = vld [vmem:[%s5622_s6 + $0x10] sm:$0xff] }
 0x695   :  { %v1132_v63 = vmul.f32 1.442695, %v1130_v61  ;;  %v1467_v61 = vld [vmem:[%s5622_s6 + $0x18] sm:$0xff] }
 0x696   :  { %4202 = vpow2.f32 %v1134_v62  ;;  %v3894_v62 = vpack.c.bf16 %v1467_v61, %v1466_v59 }
 0x697   :  { %4204 = vpow2.f32 %v1132_v63 }
 0x6a0   :  { %v4203_v0 = vpop.eup %4202 }
 0x6a1   :  { %v4205_v1 = vpop.eup %4204  ;;  %v1139_v4 = vsel %vm727_vm3, %v4203_v0, 0.0 }
 0x6a2   :  { %1140 = vadd.xlane.f32.xlu1 %v1139_v4  ;;  %v1136_v6 = vsel %vm727_vm3, %v4205_v1, 0.0 }
 0x6a3   :  { %1137 = vadd.xlane.f32.xlu0 %v1136_v6 }
 0x6b3   :  { %4117 = vrot.lane.b32.xlu1 %v5151_v25, %s4810_s30 }
 0x6b7   :  { %1233 = vrot.lane.b32.xlu1 %v5133_v18, %s4810_s30 }
 0x6b9   :  { %4112 = vrot.lane.b32.xlu0 %v5199_v19, %s4809_s29 }
 0x6bd   :  { %1235 = vrot.lane.b32.xlu0 %v5131_v16, %s4810_s30 }
 0x72f   :  { %v1141_v7 = vpop.xlane.xlu1 %1140 }
 0x730   :  { %4206 = vrcp.f32 %v1141_v7  ;;  %v1138_v8 = vpop.xlane.xlu0 %1137 }
 0x731   :  { %4208 = vrcp.f32 %v1138_v8 }
 0x733   :  { %v4118_v9 = vpop.permute.xlu1 %4117 }
 0x734   :  { %v4113_v10 = vpop.permute.xlu0 %4112  ;;  %v4120_v11 = vunpack.i.h.bf16 %v4118_v9  ;;  %v4119_v13 = vunpack.i.l.bf16 %v4118_v9 }
 0x735   :  { %v4115_v14 = vunpack.i.h.bf16 %v4113_v10  ;;  %v4114_v15 = vunpack.i.l.bf16 %v4113_v10 }
 0x736   :  { %v3880_v17 = vpack.c.bf16 %v4120_v11, %v4119_v13 }
 0x737   :  { %v3876_v25 = vpack.c.bf16 %v4115_v14, %v4114_v15  ;;  %v1234_v26 = vpop.permute.xlu1 %1233 }
 0x738   :  { %v1236_v27 = vpop.permute.xlu0 %1235 }
 0x739   :  { %3877 = vmatprep.subr.bf16.mxu1 %v3876_v25 }
 0x73a   :  { %v4207_v18 = vpop.eup %4206  ;;  %3879 = vmatpush3.bf16.msra.mxu1 %v3876_v25 }
 0x73b   :  { %v4209_v20 = vpop.eup %4208  ;;  %3882 = vmatprep.subr.msk.bf16.mxu1 %vm5145_vm2, %v3880_v17  ;;  %v1145_v22 = vmul.f32 %v4207_v18, %v4203_v0 }
 0x73c   :  { %v1144_v16 = vmul.f32 %v4209_v20, %v4205_v1 }
 0x73e   :  { %3630 = vmatprep.mubr.msk.f32.mxu1 %vm727_vm3, %v1144_v16 }
 0x73f   :  { %3631 = vmatmul.mubr.msk.f32.vlgmr.msra.gmra.mrb[8].mxu1 %vm727_vm3, %v1145_v22 }
 0x740   :  { %3637 = vmatprep.mubr.msk.f32.mxu1 %vm639_vm1, %v1234_v26 }
 0x743   :  { %3885 = vmatpush3.bf16.xpose.msk.msra.mxu1 %vm5145_vm2, %v3880_v17  ;;  %v3347_v17 = vld [vmem:[#allocation14] ss:$0 sm:$0xff] }
 0x74a   :  { %3638 = vmatmul.mubr.msk.f32.vlgmr.msra.gmra.mrb[10].mxu1 %vm639_vm1, %v1236_v27 }
 0x812   :  { %v3632_v28 = vpop.f32.mrb[8].mxu1 }
 0x813   :  { %v1224_v29 = vpop.f32.mrb[9].mxu1 }
 0x81d   :  { %v3639_v30 = vpop.f32.mrb[10].mxu1 }
 0x81e   :  { %v1321_v31 = vadd.f32 %v3639_v30, %v5173_v39  ;;  %v1315_v32 = vpop.f32.mrb[11].mxu1 }
 0x81f   :  { %v1316_v33 = vadd.f32 %v1315_v32, %v5175_v40 }
 0x820   :  { %v1327_v34 = vsel %vm727_vm3, %v1321_v31, -inf }
 0x821   :  { %1328 = vmax.xlane.f32.xlu0 %v1327_v34  ;;  %v1324_v35 = vsel %vm727_vm3, %v1316_v33, -inf }
 0x822   :  { %1325 = vmax.xlane.f32.xlu1 %v1324_v35 }
 0x8ae   :  { %v1329_v36 = vpop.xlane.xlu0 %1328 }
 0x8af   :  { %v1331_v37 = vsub.f32 %v1321_v31, %v1329_v36  ;;  %v1326_v38 = vpop.xlane.xlu1 %1325 }
 0x8b0   :  { %v1330_v41 = vsub.f32 %v1316_v33, %v1326_v38 }
 0x8b1   :  { %v1334_v42 = vmul.f32 1.442695, %v1331_v37 }
 0x8b2   :  { %v1332_v43 = vmul.f32 1.442695, %v1330_v41  ;;  %v1697_v41 = vld [vmem:[#allocation19 + $0x10] sm:$0xff] }
 0x8b3   :  { %4210 = vpow2.f32 %v1334_v42  ;;  %v1698_v42 = vld [vmem:[#allocation19 + $0x18] sm:$0xff] }
 0x8b4   :  { %4212 = vpow2.f32 %v1332_v43  ;;  %v3910_v43 = vpack.c.bf16 %v1698_v42, %v1697_v41  ;;  %v3360_v41 = vld [vmem:[#allocation23] ss:$0 sm:$0xff] }
 0x8bd   :  { %v4211_v44 = vpop.eup %4210 }
 0x8be   :  { %v4213_v45 = vpop.eup %4212  ;;  %v1339_v39 = vsel %vm727_vm3, %v4211_v44, 0.0 }
 0x8bf   :  { %1340 = vadd.xlane.f32.xlu1 %v1339_v39  ;;  %v1336_v40 = vsel %vm727_vm3, %v4213_v45, 0.0  ;;  %v5293_v39 = vld [vmem:[%s5623_s25 + $0x10] sm:$0xff] }
 0x8c0   :  { %1337 = vadd.xlane.f32.xlu0 %v1336_v40  ;;  %v5298_v40 = vld [vmem:[%s5623_s25 + $0x18] sm:$0xff] }
 0x8d0   :  { %1435 = vrot.lane.b32.xlu1 %v5223_v51, %s4790_s7 }
 0x8d4   :  { %1437 = vrot.lane.b32.xlu1 %v5221_v50, %s4790_s7 }
 0x8d6   :  { %4122 = vrot.lane.b32.xlu0 %v5199_v19, %s4810_s30 }
 0x8d8   :  { %1445 = vrot.lane.b32.xlu1 %v3632_v28, %s4811_s23  ;;  %v1695_v28 = vld [vmem:[#allocation19] sm:$0xff] }
 0x8da   :  { %1443 = vrot.lane.b32.xlu0 %v1224_v29, %s4811_s23  ;;  %v1696_v29 = vld [vmem:[#allocation19 + $0x8] sm:$0xff] }
 0x8db   :  { %v3906_v30 = vpack.c.bf16 %v1696_v29, %v1695_v28  ;;  %v1804_v28 = vld [vmem:[#allocation22 + $0x8] sm:$0xff]  ;;  %v1805_v29 = vld [vmem:[#allocation22 + $0x10] sm:$0xff] }
 0x94c   :  { %v1341_v46 = vpop.xlane.xlu1 %1340 }
 0x94d   :  { %4214 = vrcp.f32 %v1341_v46  ;;  %v1338_v47 = vpop.xlane.xlu0 %1337  ;;  %v1603_v46 = vld [vmem:[#allocation16] sm:$0xff] }
 0x94e   :  { %4216 = vrcp.f32 %v1338_v47  ;;  %v1604_v47 = vld [vmem:[#allocation16 + $0x8] sm:$0xff] }
 0x950   :  { %v1436_v1 = vpop.permute.xlu1 %1435 }
 0x951   :  { %v4123_v52 = vpop.permute.xlu0 %4122  ;;  %v1457_v8 = vsel %vm639_vm1, %v5219_v49, %v1436_v1 }
 0x952   :  { %v4125_v51 = vunpack.i.h.bf16 %v4123_v52  ;;  %v4124_v53 = vunpack.i.l.bf16 %v4123_v52  ;;  %v3898_v52 = vpack.c.bf16 %v1604_v47, %v1603_v46 }
 0x954   :  { %v3886_v50 = vpack.c.bf16 %v4125_v51, %v4124_v53  ;;  %v1438_v4 = vpop.permute.xlu1 %1437  ;;  %3899 = vmatprep.subr.bf16.mxu1 %v3898_v52  ;;  %v1605_v51 = vld [vmem:[#allocation16 + $0x10] sm:$0xff]  ;;  %v1606_v53 = vld [vmem:[#allocation16 + $0x18] sm:$0xff] }
 0x955   :  { %v1444_v7 = vpop.permute.xlu0 %1443  ;;  %v1458_v10 = vsel %vm639_vm1, %v5217_v48, %v1438_v4  ;;  %3901 = vmatpush3.bf16.msra.mxu1 %v3898_v52 }
 0x956   :  { %3887 = vmatprep.subr.bf16.mxu0 %v3886_v50  ;;  %v1459_v11 = vsel %vm727_vm3, %v1457_v8, %v1444_v7  ;;  %v3355_v8 = vld [vmem:[#allocation20] ss:$0 sm:$0xff] }
 0x957   :  { %v4215_v54 = vpop.eup %4214  ;;  %3889 = vmatpush3.bf16.msra.mxu0 %v3886_v50  ;;  %v3902_v50 = vpack.c.bf16 %v1606_v53, %v1605_v51 }
 0x958   :  { %v4217_v19 = vpop.eup %4216  ;;  %v1345_v56 = vmul.f32 %v4215_v54, %v4211_v44  ;;  %3891 = vmatprep.subr.bf16.mxu0 %v3890_v60  ;;  %v1446_v6 = vpop.permute.xlu1 %1445  ;;  %v366_v44 = vld [vmem:[%s5623_s25] sm:$0xff] }
 0x959   :  { %v1344_v55 = vmul.f32 %v4217_v19, %v4213_v45  ;;  %v1460_v14 = vsel %vm727_vm3, %v1458_v10, %v1446_v6  ;;  %v5288_v45 = vld [vmem:[%s5623_s25 + $0x8] sm:$0xff]  ;;  %3903 = vmatprep.subr.bf16.mxu1 %v3902_v50 }
 0x95a   :  { %3905 = vmatpush3.bf16.msra.mxu1 %v3902_v50 }
 0x95b   :  { %3644 = vmatprep.mubr.msk.f32.mxu0 %vm727_vm3, %v1344_v55 }
 0x95c   :  { %3645 = vmatmul.mubr.msk.f32.vlgmr.msra.gmra.mrb[8].mxu0 %vm727_vm3, %v1345_v56 }
 0x95d   :  { %3893 = vmatpush3.bf16.msra.mxu0 %v3890_v60  ;;  %v3350_v60 = vld [vmem:[%s5624_s0] ss:$0 sm:$0xff] }
 0x95e   :  { %3895 = vmatprep.subr.bf16.mxu0 %v3894_v62 }
 0x961   :  { %3897 = vmatpush3.bf16.msra.mxu0 %v3894_v62  ;;  %v3351_v62 = vld [vmem:[#allocation25] ss:$0 sm:$0xff] }
 0x962   :  { %3907 = vmatprep.subr.bf16.mxu0 %v3906_v30 }
 0xa2f   :  { %v3646_v63 = vpop.f32.mrb[8].mxu0 }
 0xa30   :  { %1453 = vrot.lane.b32.xlu1 %v3646_v63, %s4812_s26  ;;  %v1424_v0 = vpop.f32.mrb[9].mxu0 }
 0xa31   :  { %1451 = vrot.lane.b32.xlu0 %v1424_v0, %s4812_s26 }
 0xaa2   :  { %v1454_v9 = vpop.permute.xlu1 %1453 }
 0xaa3   :  { %v1452_v13 = vpop.permute.xlu0 %1451  ;;  %v1463_v25 = vsel %vm1461_vm4, %v1460_v14, %v1454_v9 }
 0xaa4   :  { %v1462_v15 = vsel %vm1461_vm4, %v1459_v11, %v1452_v13 }
 0xaa5   :  { %3655 = vmatprep.mubr.msk.f32.mxu0 %vm385_vm0, %v1462_v15 }
 0xaa6   :  { %3656 = vmatmul.mubr.msk.f32.vlgmr.msra.gmra.mrb[10].mxu0 %vm385_vm0, %v1463_v25 }
 0xaa7   :  { %3909 = vmatpush3.bf16.msra.mxu0 %v3906_v30  ;;  %3677 = vmatprep.mubr.msk.f32.mxu0 %vm385_vm0, %v366_v44 }
 0xaa8   :  { %3911 = vmatprep.subr.bf16.mxu0 %v3910_v43 }
 0xaab   :  { %3913 = vmatpush3.bf16.msra.mxu0 %v3910_v43 }
 0xaae   :  { %3678 = vmatmul.mubr.msk.f32.vlgmr.msra.gmra.mrb[12].mxu0 %vm385_vm0, %v5288_v45 }
 0xaaf   :  { %3680 = vmatprep.mubr.msk.f32.mxu0 %vm385_vm0, %v5293_v39 }
 0xab2   :  { %3681 = vmatmul.mubr.msk.f32.gmra.mrb[14].mxu0 %vm385_vm0, %v5298_v40 }
 0xb79   :  { %v3657_v18 = vpop.f32.mrb[10].mxu0 }
 0xb7a   :  { %v1553_v49 = vadd.f32 %v3657_v18, %v3347_v17  ;;  %v1547_v20 = vpop.f32.mrb[11].mxu0 }
 0xb7b   :  { %v1548_v16 = vadd.f32 %v3347_v17, %v1547_v20  ;;  %v3352_v20 = vld [vmem:[#allocation17] ss:$0 sm:$0xff] }
 0xb7c   :  { %v1557_v48 = vadd.f32 %v1553_v49, %v5123_v12 }
 0xb7d   :  { %v1556_v22 = vadd.f32 %v1548_v16, %v5113_v5 }
 0xb7e   :  { %v1563_v26 = vsel %vm385_vm0, %v1557_v48, 0.0 }
 0xb7f   :  { %1564 = vadd.xlane.f32.xlu1 %v1563_v26  ;;  %v1560_v27 = vsel %vm385_vm0, %v1556_v22, 0.0 }
 0xb80   :  { %1561 = vadd.xlane.f32.xlu0 %v1560_v27  ;;  %v1803_v27 = vld [vmem:[#allocation22] sm:$0xff] }
 0xb81   :  { %v3679_v9 = vpop.f32.mrb[12].mxu0  ;;  %v3914_v30 = vpack.c.bf16 %v1804_v28, %v1803_v27 }
 0xb82   :  { %v5312_v10 = vadd.f32 %v3679_v9, %v3355_v8  ;;  %v1784_v11 = vpop.f32.mrb[13].mxu0 }
 0xb83   :  { %v5314_v13 = vadd.f32 %v3355_v8, %v1784_v11  ;;  %3915 = vmatprep.subr.bf16.mxu1 %v3914_v30 }
 0xb85   :  { %v3922_v14 = vpack.c.bf16 %v5312_v10, %v5314_v13  ;;  %v3682_v15 = vpop.f32.mrb[14].mxu0 }
 0xb86   :  { %v5322_v25 = vadd.f32 %v3682_v15, %v3355_v8  ;;  %v1794_v17 = vpop.f32.mrb[15].mxu0 }
 0xb87   :  { %3924 = vmatprep.subr.msk.bf16.mxu0 %vm5145_vm2, %v3922_v14  ;;  %v5324_v18 = vadd.f32 %v3355_v8, %v1794_v17 }
 0xb88   :  { %3927 = vmatpush3.bf16.xpose.msk.msra.mxu0 %vm5145_vm2, %v3922_v14 }
 0xb89   :  { %v3928_v49 = vpack.c.bf16 %v5322_v25, %v5324_v18 }
 0xb8b   :  { %3930 = vmatprep.subr.msk.bf16.mxu0 %vm5145_vm2, %v3928_v49 }
 0xb90   :  { %3933 = vmatpush3.bf16.xpose.msk.msra.mxu0 %vm5145_vm2, %v3928_v49 }
 0xc0c   :  { %v1565_v31 = vpop.xlane.xlu1 %1564 }
 0xc0d   :  { %v1568_v32 = vmul.f32 0.03125, %v1565_v31  ;;  %v1562_v33 = vpop.xlane.xlu0 %1561  ;;  %v1806_v31 = vld [vmem:[#allocation22 + $0x18] sm:$0xff] }
 0xc0e   :  { %v1567_v34 = vmul.f32 0.03125, %v1562_v33  ;;  %v5346_v33 = vld [vmem:[#allocation7 + $0x8] sm:$0xff] }
 0xc0f   :  { %v1570_v12 = vsub.f32 %v1557_v48, %v1568_v32  ;;  %v3918_v32 = vpack.c.bf16 %v1806_v31, %v1805_v29 }
 0xc10   :  { %v1569_v35 = vsub.f32 %v1556_v22, %v1567_v34  ;;  %v5348_v34 = vld [vmem:[#allocation7] sm:$0xff] }
 0xc11   :  { %v1572_v37 = vmul.f32 %v1570_v12, %v1570_v12 }
 0xc12   :  { %v1571_v5 = vmul.f32 %v1569_v35, %v1569_v35 }
 0xc13   :  { %v1576_v38 = vsel %vm385_vm0, %v1572_v37, 0.0 }
 0xc14   :  { %v1573_v36 = vsel %vm385_vm0, %v1571_v5, 0.0 }
 0xc15   :  { %1574 = vadd.xlane.f32.xlu0 %v1573_v36 }
 0xc19   :  { %1577 = vadd.xlane.f32.xlu0 %v1576_v38 }
 0xca2   :  { %v1575_v54 = vpop.xlane.xlu0 %1574 }
 0xca3   :  { %v1579_v19 = vmul.f32 0.03125, %v1575_v54 }
 0xca5   :  { %v1581_v55 = vadd.f32 1e-05, %v1579_v19 }
 0xca6   :  { %v1578_v56 = vpop.xlane.xlu0 %1577 }
 0xca7   :  { %4218 = vrsqrt.f32 %v1581_v55  ;;  %v1580_v57 = vmul.f32 0.03125, %v1578_v56 }
 0xca9   :  { %v1582_v58 = vadd.f32 1e-05, %v1580_v57 }
 0xcab   :  { %4220 = vrsqrt.f32 %v1582_v58 }
 0xcb1   :  { %v4219_v59 = vpop.eup %4218 }
 0xcb2   :  { %v1585_v61 = vmul.f32 %v4219_v59, %v1569_v35 }
 0xcb4   :  { %v1593_v63 = vmul.f32 %v3350_v60, %v1585_v61  ;;  %v5370_v61 = vpack.i.bf16 %v5312_v10, %v5314_v13 }
 0xcb5   :  { %v4221_v0 = vpop.eup %4220 }
 0xcb6   :  { %v1586_v1 = vmul.f32 %v4221_v0, %v1570_v12  ;;  %v5303_v4 = vadd.f32 %v3351_v62, %v1593_v63 }
 0xcb8   :  { %v1594_v6 = vmul.f32 %v3350_v60, %v1586_v1  ;;  %3666 = vmatprep.mubr.msk.f32.mxu1 %vm385_vm0, %v5303_v4 }
 0xcba   :  { %v5307_v7 = vadd.f32 %v3351_v62, %v1594_v6  ;;  %v5376_v62 = vpack.i.bf16 %v5322_v25, %v5324_v18 }
 0xcbc   :  { %3667 = vmatmul.mubr.msk.f32.vlgmr.msra.gmra.mrb[12].mxu1 %vm385_vm0, %v5307_v7 }
 0xcbd   :  { %3691 = vmatprep.mubr.msk.f32.mxu1 %vm385_vm0, %v366_v44  ;;  %3917 = vmatpush3.bf16.msra.mxu1 %v3914_v30 }
 0xcbe   :  { %3919 = vmatprep.subr.bf16.mxu1 %v3918_v32 }
 0xcc1   :  { %3921 = vmatpush3.bf16.msra.mxu1 %v3918_v32 }
 0xcc4   :  { %3692 = vmatmul.mubr.msk.f32.vlgmr.msra.gmra.mrb[14].mxu1 %vm385_vm0, %v5288_v45 }
 0xcc5   :  { %3694 = vmatprep.mubr.msk.f32.mxu1 %vm385_vm0, %v5293_v39 }
 0xcc8   :  { %3695 = vmatmul.mubr.msk.f32.gmra.mrb[16].mxu1 %vm385_vm0, %v5298_v40 }
 0xd8f   :  { %v3668_v16 = vpop.f32.mrb[12].mxu1 }
 0xd90   :  { %v1686_v48 = vpop.f32.mrb[13].mxu1  ;;  %v5334_v26 = vadd.f32 %v3668_v16, %v3352_v20 }
 0xd91   :  { %v5332_v22 = vadd.f32 %v3352_v20, %v1686_v48 }
 0xd93   :  { %3705 = vmatprep.mubr.msk.f32.mxu0 %vm639_vm1, %v5332_v22 }
 0xd94   :  { %3706 = vmatmul.mubr.msk.f32.vlgmr.msra.gmra.mrb[16].mxu0 %vm639_vm1, %v5334_v26 }
 0xd97   :  { %v3693_v42 = vpop.f32.mrb[14].mxu1 }
 0xd98   :  { %v5354_v43 = vadd.f32 %v3693_v42, %v3360_v41  ;;  %v1880_v44 = vpop.f32.mrb[15].mxu1 }
 0xd99   :  { %v5356_v45 = vadd.f32 %v3360_v41, %v1880_v44 }
 0xd9b   :  { %v3696_v39 = vpop.f32.mrb[16].mxu1  ;;  %v3934_v40 = vpack.c.bf16 %v5354_v43, %v5356_v45 }
 0xd9c   :  { %v5360_v46 = vadd.f32 %v3696_v39, %v3360_v41  ;;  %v1890_v47 = vpop.f32.mrb[17].mxu1 }
 0xd9d   :  { %v5362_v52 = vadd.f32 %v3360_v41, %v1890_v47  ;;  %3935 = vmatprep.subr.bf16.mxu1 %v3934_v40 }
 0xd9e   :  { %3937 = vmatpush3.bf16.msra.mxu1 %v3934_v40 }
 0xd9f   :  { %v3938_v60 = vpack.c.bf16 %v5360_v46, %v5362_v52 }
 0xda1   :  { %3939 = vmatprep.subr.bf16.mxu1 %v3938_v60 }
 0xda2   :  { %3941 = vmatpush3.bf16.msra.mxu1 %v3938_v60 }
 0xe67   :  { %v3707_v12 = vpop.f32.mrb[16].mxu0 }
 0xe68   :  { %v1989_v35 = vadd.f32 %v3707_v12, %v5346_v33  ;;  %v1983_v5 = vpop.f32.mrb[17].mxu0 }
 0xe69   :  { %v1984_v36 = vadd.f32 %v1983_v5, %v5348_v34 }
 0xe6a   :  { %v1995_v37 = vsel %vm385_vm0, %v1989_v35, -inf }
 0xe6b   :  { %1996 = vmax.xlane.f32.xlu0 %v1995_v37  ;;  %v1992_v38 = vsel %vm385_vm0, %v1984_v36, -inf  ;;  %v5406_v37 = vpack.i.bf16 %v5354_v43, %v5356_v45 }
 0xe6c   :  { %1993 = vmax.xlane.f32.xlu1 %v1992_v38 }
 0xef8   :  { %v1997_v51 = vpop.xlane.xlu0 %1996 }
 0xef9   :  { %v1999_v53 = vsub.f32 %v1989_v35, %v1997_v51  ;;  %v1994_v50 = vpop.xlane.xlu1 %1993 }
 0xefa   :  { %v1998_v54 = vsub.f32 %v1984_v36, %v1994_v50 }
 0xefb   :  { %v2002_v19 = vmul.f32 1.442695, %v1999_v53 }
 0xefc   :  { %v2000_v55 = vmul.f32 1.442695, %v1998_v54 }
 0xefd   :  { %4222 = vpow2.f32 %v2002_v19 }
 0xefe   :  { %4224 = vpow2.f32 %v2000_v55 }
 0xf07   :  { %v4223_v56 = vpop.eup %4222 }
 0xf08   :  { %v4225_v57 = vpop.eup %4224  ;;  %v2007_v58 = vsel %vm385_vm0, %v4223_v56, 0.0 }
 0xf09   :  { %2008 = vadd.xlane.f32.xlu0 %v2007_v58  ;;  %v2004_v59 = vsel %vm385_vm0, %v4225_v57, 0.0 }
 0xf0a   :  { %2005 = vadd.xlane.f32.xlu1 %v2004_v59 }
 0xf1b   :  { %4127 = vrot.lane.b32.xlu1 %v5370_v61, %s4808_s22 }
 0xf1f   :  { %4132 = vrot.lane.b32.xlu0 %v5376_v62, %s4808_s22  ;;  %2095 = vrot.lane.b32.xlu1 %v5332_v22, %s4808_s22 }
 0xf23   :  { %2097 = vrot.lane.b32.xlu1 %v5334_v26, %s4808_s22 }
 0xf96   :  { %v2009_v63 = vpop.xlane.xlu0 %2008 }
 0xf97   :  { %4226 = vrcp.f32 %v2009_v63  ;;  %v2006_v0 = vpop.xlane.xlu1 %2005 }
 0xf98   :  { %4228 = vrcp.f32 %v2006_v0 }
 0xf9a   :  { %v4133_v11 = vpop.permute.xlu0 %4132 }
 0xf9b   :  { %v4128_v1 = vpop.permute.xlu1 %4127  ;;  %v4135_v17 = vunpack.i.h.bf16 %v4133_v11  ;;  %v4134_v49 = vunpack.i.l.bf16 %v4133_v11 }
 0xf9c   :  { %v4130_v6 = vunpack.i.h.bf16 %v4128_v1  ;;  %v4129_v8 = vunpack.i.l.bf16 %v4128_v1 }
 0xf9d   :  { %v3948_v48 = vpack.c.bf16 %v4135_v17, %v4134_v49 }
 0xf9e   :  { %v3942_v9 = vpack.c.bf16 %v4130_v6, %v4129_v8 }
 0xf9f   :  { %v2096_v27 = vpop.permute.xlu1 %2095 }
 0xfa0   :  { %3944 = vmatprep.subr.msk.bf16.mxu1 %vm5145_vm2, %v3942_v9 }
 0xfa1   :  { %v4227_v14 = vpop.eup %4226 }
 0xfa2   :  { %v4229_v15 = vpop.eup %4228  ;;  %v2013_v16 = vmul.f32 %v4227_v14, %v4223_v56 }
 0xfa3   :  { %v2012_v20 = vmul.f32 %v4229_v15, %v4225_v57  ;;  %v2098_v28 = vpop.permute.xlu1 %2097  ;;  %v5420_v57 = vpack.i.bf16 %v5360_v46, %v5362_v52 }
 0xfa5   :  { %3716 = vmatprep.mubr.msk.f32.mxu1 %vm385_vm0, %v2012_v20 }
 0xfa6   :  { %3717 = vmatmul.mubr.msk.f32.vlgmr.msra.gmra.mrb[18].mxu1 %vm385_vm0, %v2013_v16 }
 0xfa7   :  { %3947 = vmatpush3.bf16.xpose.msk.msra.mxu1 %vm5145_vm2, %v3942_v9  ;;  %3727 = vmatprep.mubr.msk.f32.mxu1 %vm639_vm1, %v2096_v27 }
 0xfa8   :  { %3950 = vmatprep.subr.msk.bf16.mxu1 %vm5145_vm2, %v3948_v48 }
 0xfaf   :  { %3953 = vmatpush3.bf16.xpose.msk.msra.mxu1 %vm5145_vm2, %v3948_v48 }
 0xfb6   :  { %3728 = vmatmul.mubr.msk.f32.vlgmr.msra.gmra.mrb[20].mxu1 %vm639_vm1, %v2098_v28 }
0x1079   :  { %v5396_v29 = vpop.f32.mrb[18].mxu1 }
0x107a   :  { %v5398_v30 = vpop.f32.mrb[19].mxu1 }
0x1089   :  { %v3729_v31 = vpop.f32.mrb[20].mxu1 }
0x108a   :  { %v2191_v32 = vadd.f32 %v3729_v31, %v5346_v33  ;;  %v2185_v12 = vpop.f32.mrb[21].mxu1 }
0x108b   :  { %v2186_v35 = vadd.f32 %v2185_v12, %v5348_v34 }
0x108c   :  { %v2197_v5 = vsel %vm385_vm0, %v2191_v32, -inf }
0x108d   :  { %2198 = vmax.xlane.f32.xlu1 %v2197_v5  ;;  %v2194_v36 = vsel %vm385_vm0, %v2186_v35, -inf }
0x108e   :  { %2195 = vmax.xlane.f32.xlu0 %v2194_v36 }
0x109e   :  { %4137 = vrot.lane.b32.xlu1 %v5406_v37, %s4808_s22 }
0x10a2   :  { %4147 = vrot.lane.b32.xlu1 %v5370_v61, %s4809_s29 }
0x10a6   :  { %4152 = vrot.lane.b32.xlu1 %v5376_v62, %s4809_s29 }
0x10aa   :  { %2315 = vrot.lane.b32.xlu1 %v5334_v26, %s4809_s29 }
0x111a   :  { %v2199_v38 = vpop.xlane.xlu1 %2198 }
0x111b   :  { %v2201_v41 = vsub.f32 %v2191_v32, %v2199_v38  ;;  %v2196_v42 = vpop.xlane.xlu0 %2195 }
0x111c   :  { %v2200_v44 = vsub.f32 %v2186_v35, %v2196_v42 }
0x111d   :  { %v2204_v39 = vmul.f32 1.442695, %v2201_v41 }
0x111e   :  { %v2202_v40 = vmul.f32 1.442695, %v2200_v44  ;;  %v4138_v47 = vpop.permute.xlu1 %4137 }
0x111f   :  { %4230 = vpow2.f32 %v2204_v39  ;;  %v4140_v51 = vunpack.i.h.bf16 %v4138_v47  ;;  %v4139_v53 = vunpack.i.l.bf16 %v4138_v47 }
0x1120   :  { %4232 = vpow2.f32 %v2202_v40 }
0x1121   :  { %v3954_v50 = vpack.c.bf16 %v4140_v51, %v4139_v53 }
0x1122   :  { %v4148_v60 = vpop.permute.xlu1 %4147 }
0x1123   :  { %3955 = vmatprep.subr.bf16.mxu0 %v3954_v50  ;;  %v4150_v0 = vunpack.i.h.bf16 %v4148_v60  ;;  %v4149_v1 = vunpack.i.l.bf16 %v4148_v60 }
0x1124   :  { %3957 = vmatpush3.bf16.msra.mxu0 %v3954_v50 }
0x1125   :  { %v3962_v11 = vpack.c.bf16 %v4150_v0, %v4149_v1 }
0x1126   :  { %v4153_v17 = vpop.permute.xlu1 %4152 }
0x1127   :  { %v4155_v16 = vunpack.i.h.bf16 %v4153_v17  ;;  %v4154_v48 = vunpack.i.l.bf16 %v4153_v17 }
0x1129   :  { %v4231_v54 = vpop.eup %4230  ;;  %v3968_v28 = vpack.c.bf16 %v4155_v16, %v4154_v48 }
0x112a   :  { %v2209_v19 = vsel %vm385_vm0, %v4231_v54, 0.0  ;;  %v4233_v55 = vpop.eup %4232  ;;  %v2316_v31 = vpop.permute.xlu1 %2315 }
0x112b   :  { %2210 = vadd.xlane.f32.xlu0 %v2209_v19  ;;  %v2206_v56 = vsel %vm385_vm0, %v4233_v55, 0.0 }
0x112f   :  { %2207 = vadd.xlane.f32.xlu0 %v2206_v56 }
0x1145   :  { %4142 = vrot.lane.b32.xlu0 %v5420_v57, %s4808_s22 }
0x1149   :  { %2313 = vrot.lane.b32.xlu0 %v5332_v22, %s4809_s29 }
0x11b8   :  { %v2211_v58 = vpop.xlane.xlu0 %2210 }
0x11b9   :  { %4234 = vrcp.f32 %v2211_v58 }
0x11bc   :  { %v2208_v59 = vpop.xlane.xlu0 %2207 }
0x11bd   :  { %4236 = vrcp.f32 %v2208_v59 }
0x11c0   :  { %v4143_v63 = vpop.permute.xlu0 %4142 }
0x11c1   :  { %v4145_v6 = vunpack.i.h.bf16 %v4143_v63  ;;  %v4144_v8 = vunpack.i.l.bf16 %v4143_v63 }
0x11c3   :  { %v3958_v9 = vpack.c.bf16 %v4145_v6, %v4144_v8  ;;  %v4235_v14 = vpop.eup %4234 }
0x11c4   :  { %v2215_v20 = vmul.f32 %v4235_v14, %v4231_v54  ;;  %v2314_v27 = vpop.permute.xlu0 %2313 }
0x11c5   :  { %3959 = vmatprep.subr.bf16.mxu0 %v3958_v9 }
0x11c6   :  { %3961 = vmatpush3.bf16.msra.mxu0 %v3958_v9 }
0x11c7   :  { %v4237_v15 = vpop.eup %4236  ;;  %3964 = vmatprep.subr.msk.bf16.mxu0 %vm5145_vm2, %v3962_v11 }
0x11c8   :  { %v2214_v49 = vmul.f32 %v4237_v15, %v4233_v55 }
0x11ca   :  { %3738 = vmatprep.mubr.msk.f32.mxu0 %vm385_vm0, %v2214_v49 }
0x11cb   :  { %3739 = vmatmul.mubr.msk.f32.vlgmr.msra.gmra.mrb[18].mxu0 %vm385_vm0, %v2215_v20 }
0x11cc   :  { %3749 = vmatprep.mubr.msk.f32.mxu0 %vm639_vm1, %v2314_v27 }
0x11cf   :  { %3967 = vmatpush3.bf16.xpose.msk.msra.mxu0 %vm5145_vm2, %v3962_v11 }
0x11d0   :  { %3970 = vmatprep.subr.msk.bf16.mxu0 %vm5145_vm2, %v3968_v28 }
0x11d7   :  { %3973 = vmatpush3.bf16.xpose.msk.msra.mxu0 %vm5145_vm2, %v3968_v28 }
0x11de   :  { %3750 = vmatmul.mubr.msk.f32.vlgmr.msra.gmra.mrb[20].mxu0 %vm639_vm1, %v2316_v31 }
0x129e   :  { %v5438_v32 = vpop.f32.mrb[18].mxu0 }
0x129f   :  { %v5440_v12 = vpop.f32.mrb[19].mxu0 }
0x12b1   :  { %v3751_v35 = vpop.f32.mrb[20].mxu0 }
0x12b2   :  { %v2409_v5 = vadd.f32 %v3751_v35, %v5346_v33  ;;  %v2403_v36 = vpop.f32.mrb[21].mxu0 }
0x12b3   :  { %v2404_v38 = vadd.f32 %v2403_v36, %v5348_v34 }
0x12b4   :  { %v2415_v41 = vsel %vm385_vm0, %v2409_v5, -inf }
0x12b5   :  { %2416 = vmax.xlane.f32.xlu1 %v2415_v41  ;;  %v2412_v42 = vsel %vm385_vm0, %v2404_v38, -inf }
0x12b6   :  { %2413 = vmax.xlane.f32.xlu0 %v2412_v42 }
0x12c6   :  { %4157 = vrot.lane.b32.xlu1 %v5406_v37, %s4809_s29 }
0x12ca   :  { %4167 = vrot.lane.b32.xlu1 %v5370_v61, %s4810_s30 }
0x12ce   :  { %4172 = vrot.lane.b32.xlu1 %v5376_v62, %s4810_s30 }
0x12d2   :  { %2529 = vrot.lane.b32.xlu1 %v5334_v26, %s4810_s30 }
0x1342   :  { %v2417_v44 = vpop.xlane.xlu1 %2416 }
0x1343   :  { %v2419_v39 = vsub.f32 %v2409_v5, %v2417_v44  ;;  %v2414_v40 = vpop.xlane.xlu0 %2413 }
0x1344   :  { %v2418_v47 = vsub.f32 %v2404_v38, %v2414_v40 }
0x1345   :  { %v2422_v51 = vmul.f32 1.442695, %v2419_v39 }
0x1346   :  { %v2420_v53 = vmul.f32 1.442695, %v2418_v47  ;;  %v4158_v50 = vpop.permute.xlu1 %4157 }
0x1347   :  { %4238 = vpow2.f32 %v2422_v51  ;;  %v4160_v54 = vunpack.i.h.bf16 %v4158_v50  ;;  %v4159_v19 = vunpack.i.l.bf16 %v4158_v50 }
0x1348   :  { %4240 = vpow2.f32 %v2420_v53 }
0x1349   :  { %v3974_v55 = vpack.c.bf16 %v4160_v54, %v4159_v19 }
0x134a   :  { %v4168_v60 = vpop.permute.xlu1 %4167 }
0x134b   :  { %3975 = vmatprep.subr.bf16.mxu1 %v3974_v55  ;;  %v4170_v0 = vunpack.i.h.bf16 %v4168_v60  ;;  %v4169_v1 = vunpack.i.l.bf16 %v4168_v60 }
0x134c   :  { %3977 = vmatpush3.bf16.msra.mxu1 %v3974_v55 }
0x134d   :  { %v3982_v11 = vpack.c.bf16 %v4170_v0, %v4169_v1  ;;  %v2771_v0 = vld [vmem:[%s5625_s5] sm:$0xff]  ;;  %v2772_v1 = vld [vmem:[%s5625_s5 + $0x8] sm:$0xff] }
0x134e   :  { %v4173_v17 = vpop.permute.xlu1 %4172 }
0x134f   :  { %v4175_v20 = vunpack.i.h.bf16 %v4173_v17  ;;  %v4174_v16 = vunpack.i.l.bf16 %v4173_v17 }
0x1351   :  { %v4239_v61 = vpop.eup %4238  ;;  %v3988_v27 = vpack.c.bf16 %v4175_v20, %v4174_v16 }
0x1352   :  { %v2427_v62 = vsel %vm385_vm0, %v4239_v61, 0.0  ;;  %v4241_v56 = vpop.eup %4240  ;;  %v2530_v28 = vpop.permute.xlu1 %2529 }
0x1353   :  { %2428 = vadd.xlane.f32.xlu0 %v2427_v62  ;;  %v2424_v26 = vsel %vm385_vm0, %v4241_v56, 0.0 }
0x1357   :  { %2425 = vadd.xlane.f32.xlu0 %v2424_v26 }
0x136d   :  { %4162 = vrot.lane.b32.xlu0 %v5420_v57, %s4809_s29 }
0x1371   :  { %2527 = vrot.lane.b32.xlu0 %v5332_v22, %s4810_s30 }
0x13e0   :  { %v2429_v58 = vpop.xlane.xlu0 %2428 }
0x13e1   :  { %4242 = vrcp.f32 %v2429_v58 }
0x13e4   :  { %v2426_v59 = vpop.xlane.xlu0 %2425 }
0x13e5   :  { %4244 = vrcp.f32 %v2426_v59 }
0x13e8   :  { %v4163_v63 = vpop.permute.xlu0 %4162 }
0x13e9   :  { %v4165_v6 = vunpack.i.h.bf16 %v4163_v63  ;;  %v4164_v8 = vunpack.i.l.bf16 %v4163_v63 }
0x13eb   :  { %v3978_v9 = vpack.c.bf16 %v4165_v6, %v4164_v8  ;;  %v4243_v14 = vpop.eup %4242  ;;  %v2773_v6 = vld [vmem:[%s5625_s5 + $0x10] sm:$0xff]  ;;  %v4002_v8 = vpack.c.bf16 %v2772_v1, %v2771_v0  ;;  %v3400_v0 = vld [vmem:[#allocation26] ss:$0 sm:$0xff] }
0x13ec   :  { %v2433_v49 = vmul.f32 %v4243_v14, %v4239_v61  ;;  %v2528_v48 = vpop.permute.xlu0 %2527 }
0x13ed   :  { %3979 = vmatprep.subr.bf16.mxu1 %v3978_v9 }
0x13ee   :  { %3981 = vmatpush3.bf16.msra.mxu1 %v3978_v9  ;;  %v2774_v9 = vld [vmem:[%s5625_s5 + $0x18] sm:$0xff] }
0x13ef   :  { %v4245_v15 = vpop.eup %4244  ;;  %3984 = vmatprep.subr.msk.bf16.mxu1 %vm5145_vm2, %v3982_v11 }
0x13f0   :  { %v2432_v22 = vmul.f32 %v4245_v15, %v4241_v56 }
0x13f2   :  { %3760 = vmatprep.mubr.msk.f32.mxu1 %vm385_vm0, %v2432_v22 }
0x13f3   :  { %3761 = vmatmul.mubr.msk.f32.vlgmr.msra.gmra.mrb[22].mxu1 %vm385_vm0, %v2433_v49 }
0x13f4   :  { %3771 = vmatprep.mubr.msk.f32.mxu1 %vm639_vm1, %v2528_v48 }
0x13f7   :  { %3987 = vmatpush3.bf16.xpose.msk.msra.mxu1 %vm5145_vm2, %v3982_v11  ;;  %v4006_v11 = vpack.c.bf16 %v2774_v9, %v2773_v6  ;;  %v3401_v6 = vld [vmem:[#allocation28] ss:$0 sm:$0xff] }
0x13f8   :  { %3990 = vmatprep.subr.msk.bf16.mxu1 %vm5145_vm2, %v3988_v27 }
0x13ff   :  { %3993 = vmatpush3.bf16.xpose.msk.msra.mxu1 %vm5145_vm2, %v3988_v27 }
0x1406   :  { %3772 = vmatmul.mubr.msk.f32.vlgmr.msra.gmra.mrb[24].mxu1 %vm639_vm1, %v2530_v28 }
0x14c6   :  { %v3762_v31 = vpop.f32.mrb[22].mxu1 }
0x14c7   :  { %v2518_v35 = vpop.f32.mrb[23].mxu1 }
0x14d9   :  { %v3773_v5 = vpop.f32.mrb[24].mxu1 }
0x14da   :  { %v2623_v36 = vadd.f32 %v3773_v5, %v5346_v33  ;;  %v2617_v38 = vpop.f32.mrb[25].mxu1 }
0x14db   :  { %v2618_v41 = vadd.f32 %v2617_v38, %v5348_v34  ;;  %v3397_v38 = vld [vmem:[%s5626_s28] ss:$0 sm:$0xff] }
0x14dc   :  { %v2629_v42 = vsel %vm385_vm0, %v2623_v36, -inf }
0x14dd   :  { %2630 = vmax.xlane.f32.xlu1 %v2629_v42  ;;  %v2626_v44 = vsel %vm385_vm0, %v2618_v41, -inf }
0x14de   :  { %2627 = vmax.xlane.f32.xlu0 %v2626_v44 }
0x14ee   :  { %4177 = vrot.lane.b32.xlu1 %v5406_v37, %s4810_s30 }
0x14f2   :  { %2743 = vrot.lane.b32.xlu1 %v5440_v12, %s4790_s7 }
0x14f6   :  { %2745 = vrot.lane.b32.xlu1 %v5438_v32, %s4790_s7 }
0x14fa   :  { %2753 = vrot.lane.b32.xlu1 %v3762_v31, %s4811_s23 }
0x156a   :  { %v2631_v24 = vpop.xlane.xlu1 %2630 }
0x156b   :  { %v2633_v33 = vsub.f32 %v2623_v36, %v2631_v24  ;;  %v2628_v34 = vpop.xlane.xlu0 %2627 }
0x156c   :  { %v2632_v39 = vsub.f32 %v2618_v41, %v2628_v34 }
0x156d   :  { %v2636_v40 = vmul.f32 1.442695, %v2633_v33 }
0x156e   :  { %v2634_v47 = vmul.f32 1.442695, %v2632_v39  ;;  %v4178_v51 = vpop.permute.xlu1 %4177 }
0x156f   :  { %4246 = vpow2.f32 %v2636_v40  ;;  %v4180_v53 = vunpack.i.h.bf16 %v4178_v51  ;;  %v4179_v50 = vunpack.i.l.bf16 %v4178_v51 }
0x1570   :  { %4248 = vpow2.f32 %v2634_v47 }
0x1571   :  { %v3994_v37 = vpack.c.bf16 %v4180_v53, %v4179_v50 }
0x1572   :  { %v2744_v17 = vpop.permute.xlu1 %2743 }
0x1573   :  { %3995 = vmatprep.subr.bf16.mxu0 %v3994_v37  ;;  %v2765_v16 = vsel %vm639_vm1, %v5398_v30, %v2744_v17 }
0x1574   :  { %3997 = vmatpush3.bf16.msra.mxu0 %v3994_v37 }
0x1576   :  { %v2746_v22 = vpop.permute.xlu1 %2745 }
0x1577   :  { %v2766_v27 = vsel %vm639_vm1, %v5396_v29, %v2746_v22  ;;  %v3053_v22 = vld [vmem:[%s4966_s12] sm:$0xff] }
0x1579   :  { %v4247_v12 = vpop.eup %4246 }
0x157a   :  { %v2641_v54 = vsel %vm385_vm0, %v4247_v12, 0.0  ;;  %v4249_v32 = vpop.eup %4248  ;;  %v2754_v49 = vpop.permute.xlu1 %2753 }
0x157b   :  { %2642 = vadd.xlane.f32.xlu0 %v2641_v54  ;;  %v2638_v19 = vsel %vm385_vm0, %v4249_v32, 0.0  ;;  %v2909_v54 = vld [vmem:[%s5627_s1] sm:$0xff] }
0x157f   :  { %2639 = vadd.xlane.f32.xlu0 %v2638_v19 }
0x1595   :  { %4182 = vrot.lane.b32.xlu0 %v5420_v57, %s4810_s30 }
0x1599   :  { %2751 = vrot.lane.b32.xlu0 %v2518_v35, %s4811_s23  ;;  %v2768_v35 = vsel %vm727_vm3, %v2766_v27, %v2754_v49  ;;  %v3054_v49 = vld [vmem:[%s4966_s12 + $0x8] sm:$0xff] }
0x1608   :  { %v2643_v55 = vpop.xlane.xlu0 %2642 }
0x1609   :  { %4250 = vrcp.f32 %v2643_v55  ;;  %v2911_v55 = vld [vmem:[%s5627_s1 + $0x10] sm:$0xff] }
0x160c   :  { %v2640_v61 = vpop.xlane.xlu0 %2639 }
0x160d   :  { %4252 = vrcp.f32 %v2640_v61  ;;  %v2912_v61 = vld [vmem:[%s5627_s1 + $0x18] sm:$0xff] }
0x1610   :  { %v4183_v62 = vpop.permute.xlu0 %4182 }
0x1611   :  { %v4185_v56 = vunpack.i.h.bf16 %v4183_v62  ;;  %v4184_v26 = vunpack.i.l.bf16 %v4183_v62  ;;  %v4014_v62 = vpack.c.bf16 %v2912_v61, %v2911_v55 }
0x1613   :  { %v3998_v58 = vpack.c.bf16 %v4185_v56, %v4184_v26  ;;  %v4251_v59 = vpop.eup %4250 }
0x1614   :  { %v2647_v57 = vmul.f32 %v4251_v59, %v4247_v12  ;;  %v2752_v20 = vpop.permute.xlu0 %2751 }
0x1615   :  { %3999 = vmatprep.subr.bf16.mxu0 %v3998_v58  ;;  %v2767_v28 = vsel %vm727_vm3, %v2765_v16, %v2752_v20  ;;  %v4018_v20 = vpack.c.bf16 %v3054_v49, %v3053_v22  ;;  %v3055_v16 = vld [vmem:[%s4966_s12 + $0x10] sm:$0xff] }
0x1616   :  { %4001 = vmatpush3.bf16.msra.mxu0 %v3998_v58 }
0x1617   :  { %v4253_v60 = vpop.eup %4252  ;;  %4003 = vmatprep.subr.bf16.mxu0 %v4002_v8 }
0x1618   :  { %v2646_v63 = vmul.f32 %v4253_v60, %v4249_v32  ;;  %v2910_v32 = vld [vmem:[%s5627_s1 + $0x8] sm:$0xff] }
0x1619   :  { %v4010_v19 = vpack.c.bf16 %v2910_v32, %v2909_v54 }
0x161a   :  { %3782 = vmatprep.mubr.msk.f32.mxu0 %vm385_vm0, %v2646_v63 }
0x161b   :  { %3783 = vmatmul.mubr.msk.f32.vlgmr.msra.gmra.mrb[22].mxu0 %vm385_vm0, %v2647_v57  ;;  %4011 = vmatprep.subr.bf16.mxu1 %v4010_v19 }
0x161c   :  { %4005 = vmatpush3.bf16.msra.mxu0 %v4002_v8  ;;  %4013 = vmatpush3.bf16.msra.mxu1 %v4010_v19 }
0x161d   :  { %4007 = vmatprep.subr.bf16.mxu0 %v4006_v11  ;;  %4015 = vmatprep.subr.bf16.mxu1 %v4014_v62 }
0x1620   :  { %4009 = vmatpush3.bf16.msra.mxu0 %v4006_v11  ;;  %4017 = vmatpush3.bf16.msra.mxu1 %v4014_v62 }
0x1621   :  { %4019 = vmatprep.subr.bf16.mxu0 %v4018_v20 }
0x16ee   :  { %v3784_v14 = vpop.f32.mrb[22].mxu0 }
0x16ef   :  { %2761 = vrot.lane.b32.xlu1 %v3784_v14, %s4812_s26  ;;  %v2732_v15 = vpop.f32.mrb[23].mxu0 }
0x16f0   :  { %2759 = vrot.lane.b32.xlu0 %v2732_v15, %s4812_s26 }
0x1761   :  { %v2762_v48 = vpop.permute.xlu1 %2761 }
0x1762   :  { %v2760_v31 = vpop.permute.xlu0 %2759  ;;  %v2770_v36 = vsel %vm1461_vm4, %v2768_v35, %v2762_v48  ;;  %v3056_v48 = vld [vmem:[%s4966_s12 + $0x18] sm:$0xff] }
0x1763   :  { %v2769_v5 = vsel %vm1461_vm4, %v2767_v28, %v2760_v31  ;;  %v4022_v27 = vpack.c.bf16 %v3056_v48, %v3055_v16  ;;  %v3057_v28 = vld [vmem:[%s4966_s12 + $0x20] sm:$0xff]  ;;  %v3058_v31 = vld [vmem:[%s4966_s12 + $0x28] sm:$0xff] }
0x1764   :  { %3793 = vmatprep.mubr.msk.f32.mxu0 %vm385_vm0, %v2769_v5  ;;  %v4026_v35 = vpack.c.bf16 %v3058_v31, %v3057_v28  ;;  %v3059_v5 = vld [vmem:[%s4966_s12 + $0x30] sm:$0xff]  ;;  %v4813_v28 = vmov 1.0  }
0x1765   :  { %3794 = vmatmul.mubr.msk.f32.vlgmr.msra.gmra.mrb[24].mxu0 %vm385_vm0, %v2770_v36  ;;  %v3060_v36 = vld [vmem:[%s4966_s12 + $0x38] sm:$0xff]  ;;  %s4814_s12 = smov 32  }
0x1766   :  { %4021 = vmatpush3.bf16.msra.mxu0 %v4018_v20 }
0x1767   :  { %4023 = vmatprep.subr.bf16.mxu0 %v4022_v27 }
0x176a   :  { %4025 = vmatpush3.bf16.msra.mxu0 %v4022_v27 }
0x176b   :  { %4027 = vmatprep.subr.bf16.mxu0 %v4026_v35 }
0x176e   :  { %4029 = vmatpush3.bf16.msra.mxu0 %v4026_v35 }
0x1838   :  { %v3795_v41 = vpop.f32.mrb[24].mxu0 }
0x1839   :  { %v2860_v30 = vadd.f32 %v3795_v41, %v3397_v38  ;;  %v2854_v42 = vpop.f32.mrb[25].mxu0  ;;  %v3402_v41 = vld [vmem:[%s5628_s20] ss:$0 sm:$0xff] }
0x183a   :  { %v2855_v44 = vadd.f32 %v3397_v38, %v2854_v42  ;;  %v4030_v38 = vpack.c.bf16 %v3060_v36, %v3059_v5 }
0x183b   :  { %v2864_v29 = vadd.f32 %v2860_v30, %v5307_v7 }
0x183c   :  { %v2863_v24 = vadd.f32 %v2855_v44, %v5303_v4  ;;  %4031 = vmatprep.subr.bf16.mxu0 %v4030_v38 }
0x183d   :  { %v2870_v33 = vsel %vm385_vm0, %v2864_v29, 0.0  ;;  %4033 = vmatpush3.bf16.msra.mxu0 %v4030_v38 }
0x183e   :  { %2871 = vadd.xlane.f32.xlu1 %v2870_v33  ;;  %v2867_v34 = vsel %vm385_vm0, %v2863_v24, 0.0 }
0x183f   :  { %2868 = vadd.xlane.f32.xlu0 %v2867_v34 }
0x18cb   :  { %v2872_v39 = vpop.xlane.xlu1 %2871 }
0x18cc   :  { %v2874_v40 = vmul.f32 0.03125, %v2872_v39  ;;  %v2869_v47 = vpop.xlane.xlu0 %2868 }
0x18cd   :  { %v2873_v51 = vmul.f32 0.03125, %v2869_v47 }
0x18ce   :  { %v2876_v53 = vsub.f32 %v2864_v29, %v2874_v40 }
0x18cf   :  { %v2875_v50 = vsub.f32 %v2863_v24, %v2873_v51 }
0x18d0   :  { %v2878_v4 = vmul.f32 %v2876_v53, %v2876_v53 }
0x18d1   :  { %v2877_v37 = vmul.f32 %v2875_v50, %v2875_v50 }
0x18d2   :  { %v2882_v12 = vsel %vm385_vm0, %v2878_v4, 0.0 }
0x18d3   :  { %v2879_v7 = vsel %vm385_vm0, %v2877_v37, 0.0 }
0x18d4   :  { %2880 = vadd.xlane.f32.xlu0 %v2879_v7 }
0x18d8   :  { %2883 = vadd.xlane.f32.xlu0 %v2882_v12 }
0x1961   :  { %v2881_v56 = vpop.xlane.xlu0 %2880 }
0x1962   :  { %v2885_v26 = vmul.f32 0.03125, %v2881_v56 }
0x1964   :  { %v2887_v58 = vadd.f32 1e-05, %v2885_v26 }
0x1965   :  { %v2884_v59 = vpop.xlane.xlu0 %2883 }
0x1966   :  { %4254 = vrsqrt.f32 %v2887_v58  ;;  %v2886_v60 = vmul.f32 0.03125, %v2884_v59 }
0x1968   :  { %v2888_v63 = vadd.f32 1e-05, %v2886_v60 }
0x196a   :  { %4256 = vrsqrt.f32 %v2888_v63 }
0x1970   :  { %v4255_v57 = vpop.eup %4254 }
0x1971   :  { %v2891_v1 = vmul.f32 %v4255_v57, %v2875_v50 }
0x1973   :  { %v2899_v8 = vmul.f32 %v3400_v0, %v2891_v1 }
0x1974   :  { %v4257_v9 = vpop.eup %4256 }
0x1975   :  { %v2892_v11 = vmul.f32 %v4257_v9, %v2876_v53  ;;  %v5517_v14 = vadd.f32 %v3401_v6, %v2899_v8 }
0x1977   :  { %v2900_v15 = vmul.f32 %v3400_v0, %v2892_v11  ;;  %3804 = vmatprep.mubr.msk.f32.mxu1 %vm385_vm0, %v5517_v14 }
0x1979   :  { %v5521_v17 = vadd.f32 %v3401_v6, %v2900_v15 }
0x197b   :  { %3805 = vmatmul.mubr.msk.f32.vlgmr.msra.gmra.mrb[26].mxu1 %vm385_vm0, %v5521_v17 }
0x1a4e   :  { %v3806_v30 = vpop.f32.mrb[26].mxu1 }
0x1a4f   :  { %v2998_v42 = vadd.f32 %v3806_v30, %v3402_v41  ;;  %v2992_v44 = vpop.f32.mrb[27].mxu1 }
0x1a50   :  { %v2993_v29 = vadd.f32 %v3402_v41, %v2992_v44 }
0x1a51   :  { %v3004_v24 = vmul.f32 0.70710677, %v2998_v42 }
0x1a52   :  { %v3003_v33 = vmul.f32 0.70710677, %v2993_v29  ;;  %v3001_v30 = vmul.f32 0.5, %v2993_v29 }
0x1a53   :  { %v3010_v34 = vand.u32 2147483647, %v3004_v24  ;;  %vm3006_vm5 = vcmp.lt.f32.partialorder %v3004_v24, 0.0  ;;  %v3405_v24 = vld [vmem:[%s4971_s21] ss:$0 sm:$0xff]  ;;  %s4816_s21 = smov [#allocation33]  }
0x1a54   :  { %v3009_v39 = vand.u32 2147483647, %v3003_v33  ;;  %vm3005_vm6 = vcmp.lt.f32.partialorder %v3003_v33, 0.0  ;;  %v3008_v31 = vsel %vm3006_vm5, -1.0, %v4813_v28  ;;  %s3258_s8 = sshll.u32 %s4816_s21, 4  ;;  %s3259_s8 = int_to_ptr.vmem [resolvable:$true] %s3258_s8 }
0x1a55   :  { %v3012_v40 = vmul.f32 0.3275911, %v3010_v34  ;;  %v3036_v50 = vsub.f32 0.0, %v3010_v34  ;;  %v3007_v36 = vsel %vm3005_vm6, -1.0, %v4813_v28  ;;  %s4688_s10 = scalar_lea.vmem %s3259_s8, 512  ;;  %p4693_p13 = scmp.lt.s32.totalorder %s3259_s8, %s3259_s8 }
0x1a56   :  { %v3011_v47 = vmul.f32 0.3275911, %v3009_v39  ;;  %v3035_v37 = vsub.f32 0.0, %v3009_v39  ;;  %p4689_p12 = scmp.ne.s32.totalorder %s3259_s8, %s4688_s10  ;;  %p4694_p0 = scmp.lt.s32.totalorder %s4688_s10, %s4688_s10 }
0x1a57   :  { %v3014_v51 = vadd.f32 1.0, %v3012_v40  ;;  %v3038_v4 = vmul.f32 %v3036_v50, %v3010_v34  ;;  %v3002_v34 = vmul.f32 0.5, %v2998_v42 }
0x1a58   :  { %v3013_v53 = vadd.f32 1.0, %v3011_v47  ;;  %v3037_v32 = vmul.f32 %v3035_v37, %v3009_v39  ;;  %p4695_p1 = por %p4694_p0, %p4693_p13 }
0x1a59   :  { %4258 = vrcp.f32 %v3014_v51  ;;  %v3041_v61 = vmul.f32 1.442695, %v3038_v4 }
0x1a5a   :  { %4260 = vrcp.f32 %v3013_v53  ;;  %v3039_v26 = vmul.f32 1.442695, %v3037_v32  ;;  %p4696_p2 = pnand %p4695_p1, %p4689_p12 }
0x1a5b   :  { %4262 = vpow2.f32 %v3041_v61 }
0x1a5c   :  { %4264 = vpow2.f32 %v3039_v26 }
0x1a63   :  { %v4259_v7 = vpop.eup %4258 }
0x1a64   :  { %v4261_v12 = vpop.eup %4260  ;;  %v3018_v54 = vmul.f32 1.0614054, %v4259_v7 }
0x1a65   :  { %v3017_v19 = vmul.f32 1.0614054, %v4261_v12  ;;  %v4263_v22 = vpop.eup %4262 }
0x1a66   :  { %v3020_v55 = vadd.f32 -1.4531521, %v3018_v54  ;;  %v4265_v20 = vpop.eup %4264 }
0x1a67   :  { %v3019_v62 = vadd.f32 -1.4531521, %v3017_v19 }
0x1a68   :  { %v3022_v56 = vmul.f32 %v4259_v7, %v3020_v55 }
0x1a69   :  { %v3021_v58 = vmul.f32 %v4261_v12, %v3019_v62 }
0x1a6a   :  { %v3024_v59 = vadd.f32 1.4214138, %v3022_v56 }
0x1a6b   :  { %v3023_v60 = vadd.f32 1.4214138, %v3021_v58 }
0x1a6c   :  { %v3026_v63 = vmul.f32 %v4259_v7, %v3024_v59 }
0x1a6d   :  { %v3025_v57 = vmul.f32 %v4261_v12, %v3023_v60 }
0x1a6e   :  { %v3028_v0 = vadd.f32 -0.28449672, %v3026_v63 }
0x1a6f   :  { %v3027_v1 = vadd.f32 -0.28449672, %v3025_v57 }
0x1a70   :  { %v3030_v6 = vmul.f32 %v4259_v7, %v3028_v0 }
0x1a71   :  { %v3029_v8 = vmul.f32 %v4261_v12, %v3027_v1 }
0x1a72   :  { %v3032_v9 = vadd.f32 0.2548296, %v3030_v6 }
0x1a73   :  { %v3031_v11 = vadd.f32 0.2548296, %v3029_v8 }
0x1a74   :  { %v3034_v15 = vmul.f32 %v4259_v7, %v3032_v9 }
0x1a75   :  { %v3033_v49 = vmul.f32 %v4261_v12, %v3031_v11  ;;  %v3408_v11 = vld [vmem:[#allocation29] ss:$0 sm:$0xff] }
0x1a76   :  { %v3044_v16 = vmul.f32 %v4263_v22, %v3034_v15 }
0x1a77   :  { %v3043_v48 = vmul.f32 %v4265_v20, %v3033_v49 }
0x1a78   :  { %v3046_v27 = vsub.f32 1.0, %v3044_v16 }
0x1a79   :  { %v3045_v35 = vsub.f32 1.0, %v3043_v48 }
0x1a7a   :  { %v3048_v5 = vmul.f32 %v3046_v27, %v3008_v31 }
0x1a7b   :  { %v3047_v38 = vmul.f32 %v3045_v35, %v3007_v36 }
0x1a7c   :  { %v3050_v41 = vadd.f32 1.0, %v3048_v5 }
0x1a7d   :  { %v3049_v44 = vadd.f32 1.0, %v3047_v38 }
0x1a7e   :  { %v3052_v40 = vmul.f32 %v3050_v41, %v3002_v34 }
0x1a7f   :  { %v3051_v39 = vmul.f32 %v3049_v44, %v3001_v30 }
0x1a81   :  { %3823 = vmatprep.mubr.msk.f32.mxu0 %vm3068_vm7, %v3051_v39 }
0x1a82   :  { %3824 = vmatmul.mubr.msk.f32.vlgmr.msra.gmra.mrb[26].mxu0 %vm3068_vm7, %v3052_v40 }
0x1b55   :  { %v3825_v33 = vpop.f32.mrb[26].mxu0 }
0x1b56   :  { %v3147_v47 = vadd.f32 %v3825_v33, %v3405_v24  ;;  %v3141_v51 = vpop.f32.mrb[27].mxu0 }
0x1b57   :  { %v3142_v53 = vadd.f32 %v3405_v24, %v3141_v51 }
0x1b58   :  { %v3151_v50 = vadd.f32 %v3147_v47, %v5521_v17 }
0x1b59   :  { %v3150_v37 = vadd.f32 %v3142_v53, %v5517_v14 }
0x1b5a   :  { %v3157_v29 = vsel %vm385_vm0, %v3151_v50, 0.0 }
0x1b5b   :  { %3158 = vadd.xlane.f32.xlu0 %v3157_v29  ;;  %v3154_v42 = vsel %vm385_vm0, %v3150_v37, 0.0 }
0x1b5c   :  { %3155 = vadd.xlane.f32.xlu1 %v3154_v42 }
0x1b6d   :  { %3196 = vrot.lane.b32.xlu1 %v5141_v23, %s4814_s12 }
0x1b71   :  { %3202 = vrot.lane.b32.xlu1 %v5189_v3, %s4815_s17 }
0x1b75   :  { %3204 = vrot.lane.b32.xlu1 %v5187_v2, %s4815_s17 }
0x1b79   :  { %3219 = vrot.lane.b32.xlu1 %v5354_v43, %s4814_s12 }
0x1be8   :  { %v3159_v7 = vpop.xlane.xlu0 %3158 }
0x1be9   :  { %v3161_v17 = vmul.f32 0.03125, %v3159_v7  ;;  %v3156_v4 = vpop.xlane.xlu1 %3155 }
0x1bea   :  { %v3160_v14 = vmul.f32 0.03125, %v3156_v4 }
0x1beb   :  { %v3163_v12 = vsub.f32 %v3151_v50, %v3161_v17 }
0x1bec   :  { %v3162_v54 = vsub.f32 %v3150_v37, %v3160_v14 }
0x1bed   :  { %v5545_v32 = vpop.permute.xlu1 %3196  ;;  %v3165_v19 = vmul.f32 %v3163_v12, %v3163_v12 }
0x1bee   :  { %v3164_v55 = vmul.f32 %v3162_v54, %v3162_v54 }
0x1bef   :  { %v3169_v61 = vsel %vm385_vm0, %v3165_v19, 0.0 }
0x1bf0   :  { %3170 = vadd.xlane.f32.xlu0 %v3169_v61  ;;  %v3166_v23 = vsel %vm385_vm0, %v3164_v55, 0.0 }
0x1bf1   :  { %3167 = vadd.xlane.f32.xlu1 %v3166_v23  ;;  %v5549_v3 = vpop.permute.xlu1 %3202 }
0x1bf5   :  { %v3205_v2 = vpop.permute.xlu1 %3204 }
0x1bf9   :  { %v3220_v43 = vpop.permute.xlu1 %3219 }
0x1bfa   :  { %v3230_v62 = vsel %vm385_vm0, %v5312_v10, %v3220_v43 }
0x1bfb   :  { %v3234_v56 = vsel %vm3068_vm7, %v3230_v62, 0.0 }
0x1bfc   :  { %3238 = vst [vmem:[#allocation33 + $0x8] sm:$0xff] %v3234_v56 }
0x1c02   :  { %3223 = vrot.lane.b32.xlu1 %v5360_v46, %s4814_s12 }
0x1c06   :  { %3198 = vrot.lane.b32.xlu0 %v5139_v21, %s4814_s12 }
0x1c0a   :  { %3217 = vrot.lane.b32.xlu0 %v5356_v45, %s4814_s12 }
0x1c0e   :  { %3221 = vrot.lane.b32.xlu0 %v5362_v52, %s4814_s12 }
0x1c7d   :  { %v3171_v26 = vpop.xlane.xlu0 %3170 }
0x1c7e   :  { %v3173_v58 = vmul.f32 0.03125, %v3171_v26  ;;  %v3168_v59 = vpop.xlane.xlu1 %3167 }
0x1c7f   :  { %v3172_v60 = vmul.f32 0.03125, %v3168_v59 }
0x1c80   :  { %v3175_v63 = vadd.f32 1e-05, %v3173_v58 }
0x1c81   :  { %v3174_v57 = vadd.f32 1e-05, %v3172_v60  ;;  %v3199_v0 = vpop.permute.xlu0 %3198 }
0x1c82   :  { %4266 = vrsqrt.f32 %v3175_v63  ;;  %v3224_v10 = vpop.permute.xlu1 %3223 }
0x1c83   :  { %4268 = vrsqrt.f32 %v3174_v57  ;;  %v3232_v1 = vsel %vm385_vm0, %v5322_v25, %v3224_v10 }
0x1c84   :  { %v3236_v46 = vsel %vm3068_vm7, %v3232_v1, 0.0 }
0x1c85   :  { %3240 = vst [vmem:[#allocation33 + $0x18] sm:$0xff] %v3236_v46  ;;  %v3218_v21 = vpop.permute.xlu0 %3217 }
0x1c86   :  { %v3229_v45 = vsel %vm385_vm0, %v5314_v13, %v3218_v21 }
0x1c87   :  { %v3233_v52 = vsel %vm3068_vm7, %v3229_v45, 0.0 }
0x1c88   :  { %3237 = vst [vmem:[#allocation33] sm:$0xff] %v3233_v52 }
0x1c89   :  { %v3222_v6 = vpop.permute.xlu0 %3221 }
0x1c8a   :  { %v3231_v8 = vsel %vm385_vm0, %v5324_v18, %v3222_v6 }
0x1c8b   :  { %v3235_v9 = vsel %vm3068_vm7, %v3231_v8, 0.0 }
0x1c8c   :  { %v4267_v25 = vpop.eup %4266  ;;  %3239 = vst [vmem:[#allocation33 + $0x10] sm:$0xff] %v3235_v9 }
0x1c8d   :  { %v4269_v15 = vpop.eup %4268  ;;  %v3179_v22 = vmul.f32 %v4267_v25, %v3163_v12 }
0x1c8e   :  { %4699 = shalt.err (!%p4696_p2)
}
0x1c8f   :  { %s4700_s11 = scalar_lea.hbm %s4981_s19, 512 }
0x1c90   :  { %p4701_p3 = scmp.ne.s32.totalorder %s4981_s19, %s4700_s11  ;;  %p4704_p4 = scmp.lt.u32.totalorder %s4700_s11, %s4981_s19 }
0x1c92   :  { %p4706_p5 = pnand %p4704_p4, %p4701_p3 }
0x1c94   :  { %4709 = shalt.err (!%p4706_p5)
}
0x1c95   :  { %3264 = dma.vmem_to_hbm [thread:$0]  %s3259_s8, 512, %s4981_s19, [#allocation34], %s4789_s2, %s4789_s2, %s4790_s7   ;;  %v3409_v13 = vld [vmem:[#allocation31] ss:$0 sm:$0xff]  ;;  %v3178_v18 = vmul.f32 %v4269_v15, %v3162_v54  ;;  %v3187_v49 = vmul.f32 %v3408_v11, %v3179_v22  ;;  %vm3212_vm8 = vcmask 785408  }
0x1c96   :  { %s4817_s4 = smov [#allocation32]  }
0x1c97   :  { %v3186_v20 = vmul.f32 %v3408_v11, %v3178_v18  ;;  %v3195_v16 = vadd.f32 %v3409_v13, %v3187_v49  ;;  %s3246_s15 = sshll.u32 %s4817_s4, 4  ;;  %s3247_s15 = int_to_ptr.vmem [resolvable:$true] %s3246_s15 }
0x1c98   :  { %s4710_s19 = scalar_lea.vmem %s3247_s15, 256  ;;  %p4715_p7 = scmp.lt.s32.totalorder %s3247_s15, %s3247_s15 }
0x1c99   :  { %v3194_v48 = vadd.f32 %v3409_v13, %v3186_v20  ;;  %v3209_v27 = vsel %vm385_vm0, %v3195_v16, %v3199_v0  ;;  %p4711_p6 = scmp.ne.s32.totalorder %s3247_s15, %s4710_s19  ;;  %p4716_p8 = scmp.lt.s32.totalorder %s4710_s19, %s4710_s19 }
0x1c9a   :  { %v3211_v28 = vsel %vm3068_vm7, %v3209_v27, %v3205_v2 }
0x1c9b   :  { %v3208_v31 = vsel %vm385_vm0, %v3194_v48, %v5545_v32  ;;  %v3214_v5 = vsel %vm3212_vm8, %v3211_v28, 0.0  ;;  %p4717_p9 = por %p4716_p8, %p4715_p7 }
0x1c9c   :  { %v3210_v35 = vsel %vm3068_vm7, %v3208_v31, %v5549_v3  ;;  %3216 = vst [vmem:[#allocation32 + $0x8] sm:$0xff] %v3214_v5 }
0x1c9d   :  { %v3213_v36 = vsel %vm3212_vm8, %v3210_v35, 0.0  ;;  %p4718_p10 = pnand %p4717_p9, %p4711_p6 }
0x1c9e   :  { %3215 = vst [vmem:[#allocation32] sm:$0xff] %v3213_v36 }
0x1c9f   :  { %4721 = shalt.err (!%p4718_p10)
}
0x1ca0   :  { %s4722_s3 = scalar_lea.hbm %s4976_s27, 256 }
0x1ca1   :  { %p4723_p11 = scmp.ne.s32.totalorder %s4976_s27, %s4722_s3  ;;  %p4726_p12 = scmp.lt.u32.totalorder %s4722_s3, %s4976_s27 }
0x1ca3   :  { %p4728_p13 = pnand %p4726_p12, %p4723_p11 }
0x1ca5   :  { %4731 = shalt.err (!%p4728_p13)
}
0x1ca6   :  { %3252 = dma.vmem_to_hbm [thread:$0]  %s3247_s15, 256, %s4976_s27, [#allocation4], %s4789_s2, %s4789_s2, %s4790_s7  }
0x1ca7   :  { %4752 = dma.done.wait [#allocation4], 256  }
0x1ca8   :  { %4753 = vsyncadd [#allocation4], 4294967040 }
0x1ca9   :  { %4754 = dma.done.wait [#allocation34], 512  }
0x1caa   :  { %4755 = vsyncadd [#allocation34], 4294966784 }
0x1cab   :  { %3271 = vsyncpa [#allocation3], 1 }
0x1cac   :  { %3272 = vsyncpa [#allocation6], 1 }
0x1cad   :  { %3273 = vsyncpa [#allocation9], 1 }
0x1cae   :  { %3274 = vsyncpa [#allocation12], 1 }
0x1caf   :  { %3275 = vsyncpa [#allocation15], 1 }
0x1cb0   :  { %3276 = vsyncpa [#allocation18], 1 }
0x1cb1   :  { %3277 = vsyncpa [#allocation21], 1 }
0x1cb2   :  { %3278 = vsyncpa [#allocation24], 1 }
0x1cb3   :  { %3279 = vsyncpa [#allocation27], 1 }
0x1cb4   :  { %3280 = vsyncpa [#allocation30], 1 }
0x1cb5   :  { %3281 = vsyncpa [#allocation4], 1 }
0x1cb6   :  { %3282 = vsyncpa [#allocation34], 1 }

</bundles_post_ra>
